<compile_context>
chip_gen: v7x
topology: tpu7x:2x2x1
jax: 0.10.0
libtpu: 0.0.40
codegen_flags: <defaults>
</compile_context>

<pallas_src>
import numpy as np
import jax
import jax.numpy as jnp
from jax.experimental import pallas as pl
from jax.experimental.pallas import tpu as pltpu

EPS = 1e-5
FILTERS = 4
NUM_CLASSES = 10
LANES = 128

# Row offsets inside the packed f32 constant slab `mats`.
_CP_OFF = 0          # 8 x [128,128] column-pool matrices (4 blocks x 2 parities)
_GS2_OFF = 1024      # lane-group -> channel sum (block 2)
_GT2_OFF = 1152      # channel -> lane broadcast (block 2)
_GS4_OFF = 1280
_GT4_OFF = 1408
_W1H0_OFF = 1536     # fc1 with flatten permutation folded in (pooled h = 0)
_W1H1_OFF = 1664     # fc1 (pooled h = 1)
_WF2_OFF = 1792
_WOP_OFF = 1920
_VEC_OFF = 2048      # 16 x 128 packed bias / gamma / beta / softmax-pad vectors
_MATS_ROWS = 2064


# ----------------------------- host-side builders --------------------------- #

def _banded_fused(k_hwio, win):
    """3x3 kernel [3,3,Cin,Cout] -> tap-fused banded weight [3*128, 128]."""
    ci, co = k_hwio.shape[2], k_hwio.shape[3]
    out = np.zeros((3 * LANES, LANES), np.float32)
    for dh in range(3):            # row block dh: multiplies x[r-1+dh]
        for dw in range(3):
            for w in range(win):
                wi = w + dw - 1
                if 0 <= wi < win:
                    out[dh * LANES + wi * ci: dh * LANES + wi * ci + ci,
                        w * co: w * co + co] = k_hwio[dh, dw]
    return out


def _colpool(win, c):
    """[2,128,128]: even/odd-w lane-group selection (width-half of 2x2 pool)."""
    out = np.zeros((2, LANES, LANES), np.float32)
    for par in (0, 1):
        for w2 in range(win // 2):
            for ch in range(c):
                out[par, (2 * w2 + par) * c + ch, w2 * c + ch] = 1.0
    return out


def _group_sum(win, c):
    """[128,128]: sums the `win` lane groups per channel (lane w*c+ch -> col ch)."""
    m = np.zeros((LANES, LANES), np.float32)
    for w in range(win):
        for ch in range(c):
            m[w * c + ch, ch] = 1.0
    return m


def _group_tile(win, c):
    """[128,128]: broadcasts per-channel values (lane ch) back to lanes w*c+ch."""
    m = np.zeros((LANES, LANES), np.float32)
    for w in range(win):
        for ch in range(c):
            m[ch, w * c + ch] = 1.0
    return m


def _fc1_heads(wf1):
    """Fold the NCHW flatten permutation into fc1 -> [2,128,128] (one per pooled h)."""
    out = np.zeros((2, LANES, LANES), np.float32)
    for h in (0, 1):
        for w2 in range(2):
            for ch in range(16):
                out[h, w2 * 16 + ch, :64] = wf1[ch * 4 + h * 2 + w2, :]
    return out


# ------------------------------- parameters --------------------------------- #

def init_params(key):
    ks = jax.random.split(key, 12)
    f = FILTERS

    def rnd(k, shape, scale=0.1):
        return scale * jax.random.normal(k, shape, jnp.float32)

    return {
        "k1": rnd(ks[0], (3, 3, 3, f)),        "b1": rnd(ks[1], (1, f)),
        "k2": rnd(ks[2], (3, 3, f, 2 * f)),
        "g2": jnp.ones((1, 2 * f), jnp.float32), "be2": jnp.zeros((1, 2 * f), jnp.float32),
        "k3": rnd(ks[3], (3, 3, 2 * f, 4 * f)), "b3": rnd(ks[4], (1, 4 * f)),
        "k4": rnd(ks[5], (3, 3, 4 * f, 4 * f)),
        "g4": jnp.ones((1, 4 * f), jnp.float32), "be4": jnp.zeros((1, 4 * f), jnp.float32),
        "wf1": rnd(ks[6], (4 * f * 2 * 2, 64)), "bf1": rnd(ks[7], (1, 64)),
        "wf2": rnd(ks[8], (64, 32)),            "bf2": rnd(ks[9], (1, 32)),
        "wo": rnd(ks[10], (32, NUM_CLASSES)),   "bo": rnd(ks[11], (1, NUM_CLASSES)),
    }


def prepare(params):
    """One-time, batch-size-independent packing of parameters into 2 operands."""
    f = FILTERS
    p = {k: np.asarray(v, np.float32) for k, v in params.items()}

    # fused banded conv weights, bf16, [4*384, 128]
    wbs = np.concatenate([
        _banded_fused(p["k1"], 32),
        _banded_fused(p["k2"], 16),
        _banded_fused(p["k3"], 8),
        _banded_fused(p["k4"], 4),
    ], axis=0)

    blocks = []
    for (w, c) in ((32, f), (16, 2 * f), (8, 4 * f), (4, 4 * f)):   # column-pool
        cpe, cpo = _colpool(w, c)
        blocks += [cpe, cpo]
    blocks += [_group_sum(16, 2 * f), _group_tile(16, 2 * f),        # BN 2
               _group_sum(4, 4 * f), _group_tile(4, 4 * f)]          # BN 4
    w1h = _fc1_heads(p["wf1"])                                       # head
    wf2p = np.zeros((LANES, LANES), np.float32); wf2p[:64, :32] = p["wf2"]
    wopp = np.zeros((LANES, LANES), np.float32); wopp[:32, :NUM_CLASSES] = p["wo"]
    blocks += [w1h[0], w1h[1], wf2p, wopp]

    vecs = np.zeros((16, LANES), np.float32)
    vecs[0] = np.kron(np.ones((1, 32), np.float32), p["b1"])[0]      # conv1 bias per lane
    vecs[1] = np.kron(np.ones((1, 8), np.float32), p["b3"])[0]       # conv3 bias per lane
    vecs[2, :2 * f] = p["g2"][0]; vecs[3, :2 * f] = p["be2"][0]
    vecs[4, :4 * f] = p["g4"][0]; vecs[5, :4 * f] = p["be4"][0]
    vecs[6, :64] = p["bf1"][0]
    vecs[7, :32] = p["bf2"][0]
    vecs[8, :] = -1e30; vecs[8, :NUM_CLASSES] = p["bo"][0]           # softmax pad trick
    blocks += [vecs]

    mats = np.concatenate(blocks, axis=0)
    assert mats.shape == (_MATS_ROWS, LANES)
    return {"wbs": jnp.asarray(wbs, jnp.bfloat16),
            "mats": jnp.asarray(mats, jnp.float32)}


# ------------------------------ fused kernel -------------------------------- #

def _make_kernel(N):
    cnt2 = float(N * 16 * 16)   # BN2 pixel count per channel
    cnt4 = float(N * 4 * 4)     # BN4 pixel count per channel

    def kernel(x_ref, wbs_ref, mats_ref, out_ref, ybuf):
        f32 = jnp.float32

        def dotf(a, b):
            return jnp.dot(a, b, preferred_element_type=f32)

        def dotb(a, b):   # bf16-native MXU matmul, f32 accumulate
            return jnp.dot(a.astype(jnp.bfloat16), b, preferred_element_type=f32)

        vecs = mats_ref[_VEC_OFF:_VEC_OFF + 16, :]            # packed small vectors

        def conv(x, blk, h_size):
            """3x3 conv (pad=1) on a dense [N*H,128] slab as ONE fused bf16 matmul."""
            r = x.shape[0]
            h = jax.lax.broadcasted_iota(jnp.int32, (r, 1), 0) % h_size
            up = jnp.where(h == 0, 0.0, pltpu.roll(x, 1, 0))            # x[row-1]
            dn = jnp.where(h == h_size - 1, 0.0, pltpu.roll(x, r - 1, 0))  # x[row+1]
            xcat = jnp.concatenate([up, x, dn], axis=1)                  # [r, 384]
            wb = wbs_ref[blk * 384:(blk + 1) * 384, :]                   # [384,128] bf16
            return dotb(xcat, wb)

        def pool(blk, r):
            """2x2 maxpool on ybuf[:r]: strided-row max + tiny column-repack matmuls."""
            ev = ybuf[pl.ds(0, r // 2, stride=2), :]
            od = ybuf[pl.ds(1, r // 2, stride=2), :]
            rp = jnp.maximum(ev, od)
            cpe = mats_ref[_CP_OFF + (2 * blk) * 128:_CP_OFF + (2 * blk + 1) * 128, :]
            cpo = mats_ref[_CP_OFF + (2 * blk + 1) * 128:_CP_OFF + (2 * blk + 2) * 128, :]
            return jnp.maximum(dotf(rp, cpe), dotf(rp, cpo))

        def bnorm(y, gs_off, gt_off, gamma, beta, count):
            """Training-mode BN, single pass: var = max(E[y^2] - mean^2, 0), f32 stats."""
            r = y.shape[0]
            ones = jnp.ones((1, r), f32)
            s = dotf(ones, jnp.concatenate([y, y * y], axis=1))          # [1, 256]
            gs = mats_ref[gs_off:gs_off + 128, :]
            inv = 1.0 / count
            mean_c = dotf(s[:, :128], gs) * inv
            var_c = jnp.maximum(dotf(s[:, 128:], gs) * inv - mean_c * mean_c, 0.0)
            scale_c = gamma * jax.lax.rsqrt(var_c + EPS)
            shift_c = beta - mean_c * scale_c
            gt = mats_ref[gt_off:gt_off + 128, :]
            return y * dotf(scale_c, gt) + dotf(shift_c, gt)

        # block 1: conv1 + bias + relu, 2x2 maxpool        32x32x3 -> 16x16x4
        y = jnp.maximum(conv(x_ref[...], 0, 32) + vecs[0:1, :], 0.0)
        ybuf[0:N * 32, :] = y
        x = pool(0, N * 32)
        # block 2: conv2 (no bias) + bn2 + relu, maxpool   16x16x4 -> 8x8x8
        y = conv(x, 1, 16)
        y = jnp.maximum(bnorm(y, _GS2_OFF, _GT2_OFF, vecs[2:3, :], vecs[3:4, :], cnt2), 0.0)
        ybuf[0:N * 16, :] = y
        x = pool(1, N * 16)
        # block 3: conv3 + bias + relu, maxpool             8x8x8 -> 4x4x16
        y = jnp.maximum(conv(x, 2, 8) + vecs[1:2, :], 0.0)
        ybuf[0:N * 8, :] = y
        x = pool(2, N * 8)
        # block 4: conv4 (no bias) + bn4 + relu, maxpool    4x4x16 -> 2x2x16
        y = conv(x, 3, 4)
        y = jnp.maximum(bnorm(y, _GS4_OFF, _GT4_OFF, vecs[4:5, :], vecs[5:6, :], cnt4), 0.0)
        ybuf[0:N * 4, :] = y
        p4 = pool(3, N * 4)                                  # [2N,128], lanes>=32 are 0
        ybuf[4 * N:6 * N, :] = p4
        x0 = ybuf[pl.ds(4 * N, N, stride=2), :]              # pooled h=0 rows, [N,128]
        x1 = ybuf[pl.ds(4 * N + 1, N, stride=2), :]          # pooled h=1 rows, [N,128]
        # head: flatten permutation folded into fc1; fc1 -> fc2 -> out -> softmax
        z1 = (dotf(x0, mats_ref[_W1H0_OFF:_W1H0_OFF + 128, :])
              + dotf(x1, mats_ref[_W1H1_OFF:_W1H1_OFF + 128, :]) + vecs[6:7, :])
        h1 = jnp.maximum(z1, 0.0)
        h2 = jnp.maximum(dotf(h1, mats_ref[_WF2_OFF:_WF2_OFF + 128, :]) + vecs[7:8, :], 0.0)
        logits = dotf(h2, mats_ref[_WOP_OFF:_WOP_OFF + 128, :]) + vecs[8:9, :]
        m = jnp.max(logits, axis=1, keepdims=True)
        e = jnp.exp(logits - m)                              # padding lanes -> exactly 0
        out_ref[...] = e / jnp.sum(e, axis=1, keepdims=True)

    return kernel


# --------------------------------- forward ---------------------------------- #

def forward(prep, x_nchw):
    N = x_nchw.shape[0]
    # layout prep: NCHW -> dense lane-padded slab [N*32, 128] (lane = w*3 + c)
    x = jnp.transpose(x_nchw.astype(jnp.float32), (0, 2, 3, 1)).reshape(N * 32, 96)
    x = jnp.pad(x, ((0, 0), (0, LANES - 96)))

    vmem = pl.BlockSpec(memory_space=pltpu.MemorySpace.VMEM)
    out = pl.pallas_call(
        _make_kernel(N),
        out_shape=jax.ShapeDtypeStruct((N, LANES), jnp.float32),
        in_specs=[vmem, vmem, vmem],
        out_specs=vmem,
        scratch_shapes=[pltpu.VMEM((N * 32, LANES), jnp.float32)],
        compiler_params=pltpu.CompilerParams(vmem_limit_bytes=32 * 1024 * 1024),
    )(x, prep["wbs"], prep["mats"])
    return out[:, :NUM_CLASSES]


if __name__ == "__main__":
    key = jax.random.PRNGKey(0)
    pkey, xkey = jax.random.split(key)
    params = init_params(pkey)
    # CIFAR-10 shaped input (fc1 requires 32x32 spatial input), batch=2.
    x = jax.random.normal(xkey, (2, 3, 32, 32), jnp.float32)

    prep = prepare(params)
    fwd = jax.jit(forward)
    out = jax.block_until_ready(fwd(prep, x))

    assert out.shape == (2, NUM_CLASSES)
    assert bool(jnp.all(jnp.isfinite(out)))
    assert bool(jnp.allclose(jnp.sum(out, axis=1), 1.0, atol=1e-4))
    print("KERNEL_OK")
</pallas_src>

<mosaic_0001>
module attributes {stable_mosaic.version = 11 : i64} {
  func.func @kernel(%arg0: memref<64x128xf32, #tpu.memory_space<vmem>>, %arg1: memref<1536x128xbf16, #tpu.memory_space<vmem>>, %arg2: memref<2064x128xf32, #tpu.memory_space<vmem>>, %arg3: memref<2x128xf32, #tpu.memory_space<vmem>>, %arg4: memref<64x128xf32, #tpu.memory_space<vmem>>) attributes {dimension_semantics = [], scalar_prefetch = 0 : i64, scratch_operands = 1 : i64, tpu.core_type = #tpu.core_type<tc>} {
    %c2048 = arith.constant 2048 : index
    %c0 = arith.constant 0 : index
    %0 = vector.load %arg2[%c2048, %c0] : memref<2064x128xf32, #tpu.memory_space<vmem>>, vector<16x128xf32>
    %c0_0 = arith.constant 0 : index
    %c0_1 = arith.constant 0 : index
    %1 = vector.load %arg0[%c0_0, %c0_1] : memref<64x128xf32, #tpu.memory_space<vmem>>, vector<64x128xf32>
    %2 = tpu.iota {dimensions = array<i32: 0>} : vector<64x1xi32>
    %c32_i32 = arith.constant 32 : i32
    %c0_i32 = arith.constant 0 : i32
    %3 = arith.cmpi eq, %c32_i32, %c0_i32 : i32
    %c1_i32 = arith.constant 1 : i32
    %4 = arith.select %3, %c1_i32, %c32_i32 : i32
    %5 = vector.broadcast %4 : i32 to vector<64x1xi32>
    %6 = arith.remsi %2, %5 : vector<64x1xi32>
    %c0_i32_2 = arith.constant 0 : i32
    %7 = vector.broadcast %c0_i32_2 : i32 to vector<64x1xi32>
    %8 = arith.cmpi ne, %6, %7 : vector<64x1xi32>
    %c0_i32_3 = arith.constant 0 : i32
    %9 = vector.broadcast %c0_i32_3 : i32 to vector<64x1xi32>
    %10 = arith.cmpi slt, %6, %9 : vector<64x1xi32>
    %c0_i32_4 = arith.constant 0 : i32
    %11 = arith.cmpi slt, %4, %c0_i32_4 : i32
    %12 = vector.broadcast %11 : i1 to vector<64x1xi1>
    %13 = vector.broadcast %12 : vector<64x1xi1> to vector<64x1xi1>
    %14 = arith.xori %10, %13 : vector<64x1xi1>
    %15 = arith.andi %14, %8 : vector<64x1xi1>
    %16 = vector.broadcast %4 : i32 to vector<64x1xi32>
    %17 = arith.addi %6, %16 : vector<64x1xi32>
    %18 = arith.select %15, %17, %6 : vector<64x1xi1>, vector<64x1xi32>
    %c0_i32_5 = arith.constant 0 : i32
    %19 = vector.broadcast %c0_i32_5 : i32 to vector<64x1xi32>
    %20 = arith.cmpi eq, %18, %19 : vector<64x1xi32>
    %c1_i32_6 = arith.constant 1 : i32
    %21 = tpu.dynamic_rotate %1 by %c1_i32_6 dim 0 : vector<64x128xf32>, i32 -> vector<64x128xf32>
    %cst = arith.constant 0.000000e+00 : f32
    %22 = vector.shape_cast %20 : vector<64x1xi1> to vector<64x1xi1>
    %23 = vector.broadcast %22 : vector<64x1xi1> to vector<64x128xi1>
    %24 = vector.broadcast %cst : f32 to vector<64x128xf32>
    %25 = arith.select %23, %24, %21 : vector<64x128xi1>, vector<64x128xf32>
    %c31_i32 = arith.constant 31 : i32
    %26 = vector.broadcast %c31_i32 : i32 to vector<64x1xi32>
    %27 = arith.cmpi eq, %18, %26 : vector<64x1xi32>
    %c63_i32 = arith.constant 63 : i32
    %28 = tpu.dynamic_rotate %1 by %c63_i32 dim 0 : vector<64x128xf32>, i32 -> vector<64x128xf32>
    %cst_7 = arith.constant 0.000000e+00 : f32
    %29 = vector.shape_cast %27 : vector<64x1xi1> to vector<64x1xi1>
    %30 = vector.broadcast %29 : vector<64x1xi1> to vector<64x128xi1>
    %31 = vector.broadcast %cst_7 : f32 to vector<64x128xf32>
    %32 = arith.select %30, %31, %28 : vector<64x128xi1>, vector<64x128xf32>
    %33 = tpu.concatenate %25, %1, %32 in 1 : vector<64x128xf32>, vector<64x128xf32>, vector<64x128xf32> -> vector<64x384xf32>
    %c0_8 = arith.constant 0 : index
    %c0_9 = arith.constant 0 : index
    %34 = vector.load %arg1[%c0_8, %c0_9] : memref<1536x128xbf16, #tpu.memory_space<vmem>>, vector<384x128xbf16>
    %35 = arith.truncf %33 : vector<64x384xf32> to vector<64x384xbf16>
    %cst_10 = arith.constant dense<0.000000e+00> : vector<64x128xf32>
    %36 = tpu.matmul %35, %34, %cst_10 {dimension_numbers = #tpu.dot_dimension_numbers<[1], [0], [0], [1], [0, 0, 1, 1], [], []>} : vector<64x384xbf16>, vector<384x128xbf16>, vector<64x128xf32> -> vector<64x128xf32>
    %37 = vector.extract_strided_slice %0 {offsets = [0, 0], sizes = [1, 128], strides = [1, 1]} : vector<16x128xf32> to vector<1x128xf32>
    %38 = vector.broadcast %37 : vector<1x128xf32> to vector<64x128xf32>
    %39 = arith.addf %36, %38 : vector<64x128xf32>
    %cst_11 = arith.constant 0.000000e+00 : f32
    %40 = vector.broadcast %cst_11 : f32 to vector<64x128xf32>
    %41 = arith.maximumf %39, %40 : vector<64x128xf32>
    %c0_12 = arith.constant 0 : index
    %c0_13 = arith.constant 0 : index
    %42 = vector.load %arg4[%c0_12, %c0_13] : memref<64x128xf32, #tpu.memory_space<vmem>>, vector<64x128xf32>
    tpu.vector_store %arg4[%c0_12, %c0_13], %41 {strides = array<i32>} : memref<64x128xf32, #tpu.memory_space<vmem>>, vector<64x128xf32>,
    %c0_14 = arith.constant 0 : index
    %c0_15 = arith.constant 0 : index
    %43 = tpu.strided_load %arg4[%c0_14, %c0_15] {strides = array<i32: 2, 1>} : memref<64x128xf32, #tpu.memory_space<vmem>>, vector<32x128xf32>
    %c1 = arith.constant 1 : index
    %c0_16 = arith.constant 0 : index
    %44 = tpu.strided_load %arg4[%c1, %c0_16] {strides = array<i32: 2, 1>} : memref<64x128xf32, #tpu.memory_space<vmem>>, vector<32x128xf32>
    %45 = arith.maximumf %43, %44 : vector<32x128xf32>
    %c0_17 = arith.constant 0 : index
    %c0_18 = arith.constant 0 : index
    %46 = vector.load %arg2[%c0_17, %c0_18] : memref<2064x128xf32, #tpu.memory_space<vmem>>, vector<128x128xf32>
    %c128 = arith.constant 128 : index
    %c0_19 = arith.constant 0 : index
    %47 = vector.load %arg2[%c128, %c0_19] : memref<2064x128xf32, #tpu.memory_space<vmem>>, vector<128x128xf32>
    %cst_20 = arith.constant dense<0.000000e+00> : vector<32x128xf32>
    %48 = tpu.matmul %45, %46, %cst_20 {dimension_numbers = #tpu.dot_dimension_numbers<[1], [0], [0], [1], [0, 0, 1, 1], [], []>} : vector<32x128xf32>, vector<128x128xf32>, vector<32x128xf32> -> vector<32x128xf32>
    %cst_21 = arith.constant dense<0.000000e+00> : vector<32x128xf32>
    %49 = tpu.matmul %45, %47, %cst_21 {dimension_numbers = #tpu.dot_dimension_numbers<[1], [0], [0], [1], [0, 0, 1, 1], [], []>} : vector<32x128xf32>, vector<128x128xf32>, vector<32x128xf32> -> vector<32x128xf32>
    %50 = arith.maximumf %48, %49 : vector<32x128xf32>
    %51 = tpu.iota {dimensions = array<i32: 0>} : vector<32x1xi32>
    %c16_i32 = arith.constant 16 : i32
    %c0_i32_22 = arith.constant 0 : i32
    %52 = arith.cmpi eq, %c16_i32, %c0_i32_22 : i32
    %c1_i32_23 = arith.constant 1 : i32
    %53 = arith.select %52, %c1_i32_23, %c16_i32 : i32
    %54 = vector.broadcast %53 : i32 to vector<32x1xi32>
    %55 = arith.remsi %51, %54 : vector<32x1xi32>
    %c0_i32_24 = arith.constant 0 : i32
    %56 = vector.broadcast %c0_i32_24 : i32 to vector<32x1xi32>
    %57 = arith.cmpi ne, %55, %56 : vector<32x1xi32>
    %c0_i32_25 = arith.constant 0 : i32
    %58 = vector.broadcast %c0_i32_25 : i32 to vector<32x1xi32>
    %59 = arith.cmpi slt, %55, %58 : vector<32x1xi32>
    %c0_i32_26 = arith.constant 0 : i32
    %60 = arith.cmpi slt, %53, %c0_i32_26 : i32
    %61 = vector.broadcast %60 : i1 to vector<32x1xi1>
    %62 = vector.broadcast %61 : vector<32x1xi1> to vector<32x1xi1>
    %63 = arith.xori %59, %62 : vector<32x1xi1>
    %64 = arith.andi %63, %57 : vector<32x1xi1>
    %65 = vector.broadcast %53 : i32 to vector<32x1xi32>
    %66 = arith.addi %55, %65 : vector<32x1xi32>
    %67 = arith.select %64, %66, %55 : vector<32x1xi1>, vector<32x1xi32>
    %c0_i32_27 = arith.constant 0 : i32
    %68 = vector.broadcast %c0_i32_27 : i32 to vector<32x1xi32>
    %69 = arith.cmpi eq, %67, %68 : vector<32x1xi32>
    %c1_i32_28 = arith.constant 1 : i32
    %70 = tpu.dynamic_rotate %50 by %c1_i32_28 dim 0 : vector<32x128xf32>, i32 -> vector<32x128xf32>
    %cst_29 = arith.constant 0.000000e+00 : f32
    %71 = vector.shape_cast %69 : vector<32x1xi1> to vector<32x1xi1>
    %72 = vector.broadcast %71 : vector<32x1xi1> to vector<32x128xi1>
    %73 = vector.broadcast %cst_29 : f32 to vector<32x128xf32>
    %74 = arith.select %72, %73, %70 : vector<32x128xi1>, vector<32x128xf32>
    %c15_i32 = arith.constant 15 : i32
    %75 = vector.broadcast %c15_i32 : i32 to vector<32x1xi32>
    %76 = arith.cmpi eq, %67, %75 : vector<32x1xi32>
    %c31_i32_30 = arith.constant 31 : i32
    %77 = tpu.dynamic_rotate %50 by %c31_i32_30 dim 0 : vector<32x128xf32>, i32 -> vector<32x128xf32>
    %cst_31 = arith.constant 0.000000e+00 : f32
    %78 = vector.shape_cast %76 : vector<32x1xi1> to vector<32x1xi1>
    %79 = vector.broadcast %78 : vector<32x1xi1> to vector<32x128xi1>
    %80 = vector.broadcast %cst_31 : f32 to vector<32x128xf32>
    %81 = arith.select %79, %80, %77 : vector<32x128xi1>, vector<32x128xf32>
    %82 = tpu.concatenate %74, %50, %81 in 1 : vector<32x128xf32>, vector<32x128xf32>, vector<32x128xf32> -> vector<32x384xf32>
    %c384 = arith.constant 384 : index
    %c0_32 = arith.constant 0 : index
    %83 = vector.load %arg1[%c384, %c0_32] : memref<1536x128xbf16, #tpu.memory_space<vmem>>, vector<384x128xbf16>
    %84 = arith.truncf %82 : vector<32x384xf32> to vector<32x384xbf16>
    %cst_33 = arith.constant dense<0.000000e+00> : vector<32x128xf32>
    %85 = tpu.matmul %84, %83, %cst_33 {dimension_numbers = #tpu.dot_dimension_numbers<[1], [0], [0], [1], [0, 0, 1, 1], [], []>} : vector<32x384xbf16>, vector<384x128xbf16>, vector<32x128xf32> -> vector<32x128xf32>
    %86 = vector.extract_strided_slice %0 {offsets = [2, 0], sizes = [1, 128], strides = [1, 1]} : vector<16x128xf32> to vector<1x128xf32>
    %87 = vector.extract_strided_slice %0 {offsets = [3, 0], sizes = [1, 128], strides = [1, 1]} : vector<16x128xf32> to vector<1x128xf32>
    %cst_34 = arith.constant 1.000000e+00 : f32
    %88 = vector.broadcast %cst_34 : f32 to vector<1x32xf32>
    %89 = arith.mulf %85, %85 : vector<32x128xf32>
    %90 = tpu.concatenate %85, %89 in 1 : vector<32x128xf32>, vector<32x128xf32> -> vector<32x256xf32>
    %cst_35 = arith.constant dense<0.000000e+00> : vector<1x256xf32>
    %91 = tpu.matmul %88, %90, %cst_35 {dimension_numbers = #tpu.dot_dimension_numbers<[1], [0], [0], [1], [0, 0, 1, 1], [], []>} : vector<1x32xf32>, vector<32x256xf32>, vector<1x256xf32> -> vector<1x256xf32>
    %c1024 = arith.constant 1024 : index
    %c0_36 = arith.constant 0 : index
    %92 = vector.load %arg2[%c1024, %c0_36] : memref<2064x128xf32, #tpu.memory_space<vmem>>, vector<128x128xf32>
    %93 = vector.extract_strided_slice %91 {offsets = [0, 0], sizes = [1, 128], strides = [1, 1]} : vector<1x256xf32> to vector<1x128xf32>
    %cst_37 = arith.constant dense<0.000000e+00> : vector<1x128xf32>
    %94 = tpu.matmul %93, %92, %cst_37 {dimension_numbers = #tpu.dot_dimension_numbers<[1], [0], [0], [1], [0, 0, 1, 1], [], []>} : vector<1x128xf32>, vector<128x128xf32>, vector<1x128xf32> -> vector<1x128xf32>
    %cst_38 = arith.constant 0.001953125 : f32
    %95 = vector.broadcast %cst_38 : f32 to vector<1x128xf32>
    %96 = arith.mulf %94, %95 : vector<1x128xf32>
    %97 = vector.extract_strided_slice %91 {offsets = [0, 128], sizes = [1, 128], strides = [1, 1]} : vector<1x256xf32> to vector<1x128xf32>
    %cst_39 = arith.constant dense<0.000000e+00> : vector<1x128xf32>
    %98 = tpu.matmul %97, %92, %cst_39 {dimension_numbers = #tpu.dot_dimension_numbers<[1], [0], [0], [1], [0, 0, 1, 1], [], []>} : vector<1x128xf32>, vector<128x128xf32>, vector<1x128xf32> -> vector<1x128xf32>
    %cst_40 = arith.constant 0.001953125 : f32
    %99 = vector.broadcast %cst_40 : f32 to vector<1x128xf32>
    %100 = arith.mulf %98, %99 : vector<1x128xf32>
    %101 = arith.mulf %96, %96 : vector<1x128xf32>
    %102 = arith.subf %100, %101 : vector<1x128xf32>
    %cst_41 = arith.constant 0.000000e+00 : f32
    %103 = vector.broadcast %cst_41 : f32 to vector<1x128xf32>
    %104 = arith.maximumf %102, %103 : vector<1x128xf32>
    %cst_42 = arith.constant 9.99999974E-6 : f32
    %105 = vector.broadcast %cst_42 : f32 to vector<1x128xf32>
    %106 = arith.addf %104, %105 : vector<1x128xf32>
    %107 = math.rsqrt %106 : vector<1x128xf32>
    %108 = arith.mulf %86, %107 : vector<1x128xf32>
    %109 = arith.mulf %96, %108 : vector<1x128xf32>
    %110 = arith.subf %87, %109 : vector<1x128xf32>
    %c1152 = arith.constant 1152 : index
    %c0_43 = arith.constant 0 : index
    %111 = vector.load %arg2[%c1152, %c0_43] : memref<2064x128xf32, #tpu.memory_space<vmem>>, vector<128x128xf32>
    %cst_44 = arith.constant dense<0.000000e+00> : vector<1x128xf32>
    %112 = tpu.matmul %108, %111, %cst_44 {dimension_numbers = #tpu.dot_dimension_numbers<[1], [0], [0], [1], [0, 0, 1, 1], [], []>} : vector<1x128xf32>, vector<128x128xf32>, vector<1x128xf32> -> vector<1x128xf32>
    %113 = vector.broadcast %112 : vector<1x128xf32> to vector<32x128xf32>
    %114 = arith.mulf %85, %113 : vector<32x128xf32>
    %cst_45 = arith.constant dense<0.000000e+00> : vector<1x128xf32>
    %115 = tpu.matmul %110, %111, %cst_45 {dimension_numbers = #tpu.dot_dimension_numbers<[1], [0], [0], [1], [0, 0, 1, 1], [], []>} : vector<1x128xf32>, vector<128x128xf32>, vector<1x128xf32> -> vector<1x128xf32>
    %116 = vector.broadcast %115 : vector<1x128xf32> to vector<32x128xf32>
    %117 = arith.addf %114, %116 : vector<32x128xf32>
    %cst_46 = arith.constant 0.000000e+00 : f32
    %118 = vector.broadcast %cst_46 : f32 to vector<32x128xf32>
    %119 = arith.maximumf %117, %118 : vector<32x128xf32>
    %c0_47 = arith.constant 0 : index
    %c0_48 = arith.constant 0 : index
    %120 = vector.load %arg4[%c0_47, %c0_48] : memref<64x128xf32, #tpu.memory_space<vmem>>, vector<32x128xf32>
    tpu.vector_store %arg4[%c0_47, %c0_48], %119 {strides = array<i32>} : memref<64x128xf32, #tpu.memory_space<vmem>>, vector<32x128xf32>,
    %c0_49 = arith.constant 0 : index
    %c0_50 = arith.constant 0 : index
    %121 = tpu.strided_load %arg4[%c0_49, %c0_50] {strides = array<i32: 2, 1>} : memref<64x128xf32, #tpu.memory_space<vmem>>, vector<16x128xf32>
    %c1_51 = arith.constant 1 : index
    %c0_52 = arith.constant 0 : index
    %122 = tpu.strided_load %arg4[%c1_51, %c0_52] {strides = array<i32: 2, 1>} : memref<64x128xf32, #tpu.memory_space<vmem>>, vector<16x128xf32>
    %123 = arith.maximumf %121, %122 : vector<16x128xf32>
    %c256 = arith.constant 256 : index
    %c0_53 = arith.constant 0 : index
    %124 = vector.load %arg2[%c256, %c0_53] : memref<2064x128xf32, #tpu.memory_space<vmem>>, vector<128x128xf32>
    %c384_54 = arith.constant 384 : index
    %c0_55 = arith.constant 0 : index
    %125 = vector.load %arg2[%c384_54, %c0_55] : memref<2064x128xf32, #tpu.memory_space<vmem>>, vector<128x128xf32>
    %cst_56 = arith.constant dense<0.000000e+00> : vector<16x128xf32>
    %126 = tpu.matmul %123, %124, %cst_56 {dimension_numbers = #tpu.dot_dimension_numbers<[1], [0], [0], [1], [0, 0, 1, 1], [], []>} : vector<16x128xf32>, vector<128x128xf32>, vector<16x128xf32> -> vector<16x128xf32>
    %cst_57 = arith.constant dense<0.000000e+00> : vector<16x128xf32>
    %127 = tpu.matmul %123, %125, %cst_57 {dimension_numbers = #tpu.dot_dimension_numbers<[1], [0], [0], [1], [0, 0, 1, 1], [], []>} : vector<16x128xf32>, vector<128x128xf32>, vector<16x128xf32> -> vector<16x128xf32>
    %128 = arith.maximumf %126, %127 : vector<16x128xf32>
    %129 = tpu.iota {dimensions = array<i32: 0>} : vector<16x1xi32>
    %c8_i32 = arith.constant 8 : i32
    %c0_i32_58 = arith.constant 0 : i32
    %130 = arith.cmpi eq, %c8_i32, %c0_i32_58 : i32
    %c1_i32_59 = arith.constant 1 : i32
    %131 = arith.select %130, %c1_i32_59, %c8_i32 : i32
    %132 = vector.broadcast %131 : i32 to vector<16x1xi32>
    %133 = arith.remsi %129, %132 : vector<16x1xi32>
    %c0_i32_60 = arith.constant 0 : i32
    %134 = vector.broadcast %c0_i32_60 : i32 to vector<16x1xi32>
    %135 = arith.cmpi ne, %133, %134 : vector<16x1xi32>
    %c0_i32_61 = arith.constant 0 : i32
    %136 = vector.broadcast %c0_i32_61 : i32 to vector<16x1xi32>
    %137 = arith.cmpi slt, %133, %136 : vector<16x1xi32>
    %c0_i32_62 = arith.constant 0 : i32
    %138 = arith.cmpi slt, %131, %c0_i32_62 : i32
    %139 = vector.broadcast %138 : i1 to vector<16x1xi1>
    %140 = vector.broadcast %139 : vector<16x1xi1> to vector<16x1xi1>
    %141 = arith.xori %137, %140 : vector<16x1xi1>
    %142 = arith.andi %141, %135 : vector<16x1xi1>
    %143 = vector.broadcast %131 : i32 to vector<16x1xi32>
    %144 = arith.addi %133, %143 : vector<16x1xi32>
    %145 = arith.select %142, %144, %133 : vector<16x1xi1>, vector<16x1xi32>
    %c0_i32_63 = arith.constant 0 : i32
    %146 = vector.broadcast %c0_i32_63 : i32 to vector<16x1xi32>
    %147 = arith.cmpi eq, %145, %146 : vector<16x1xi32>
    %c1_i32_64 = arith.constant 1 : i32
    %148 = tpu.dynamic_rotate %128 by %c1_i32_64 dim 0 : vector<16x128xf32>, i32 -> vector<16x128xf32>
    %cst_65 = arith.constant 0.000000e+00 : f32
    %149 = vector.shape_cast %147 : vector<16x1xi1> to vector<16x1xi1>
    %150 = vector.broadcast %149 : vector<16x1xi1> to vector<16x128xi1>
    %151 = vector.broadcast %cst_65 : f32 to vector<16x128xf32>
    %152 = arith.select %150, %151, %148 : vector<16x128xi1>, vector<16x128xf32>
    %c7_i32 = arith.constant 7 : i32
    %153 = vector.broadcast %c7_i32 : i32 to vector<16x1xi32>
    %154 = arith.cmpi eq, %145, %153 : vector<16x1xi32>
    %c15_i32_66 = arith.constant 15 : i32
    %155 = tpu.dynamic_rotate %128 by %c15_i32_66 dim 0 : vector<16x128xf32>, i32 -> vector<16x128xf32>
    %cst_67 = arith.constant 0.000000e+00 : f32
    %156 = vector.shape_cast %154 : vector<16x1xi1> to vector<16x1xi1>
    %157 = vector.broadcast %156 : vector<16x1xi1> to vector<16x128xi1>
    %158 = vector.broadcast %cst_67 : f32 to vector<16x128xf32>
    %159 = arith.select %157, %158, %155 : vector<16x128xi1>, vector<16x128xf32>
    %160 = tpu.concatenate %152, %128, %159 in 1 : vector<16x128xf32>, vector<16x128xf32>, vector<16x128xf32> -> vector<16x384xf32>
    %c768 = arith.constant 768 : index
    %c0_68 = arith.constant 0 : index
    %161 = vector.load %arg1[%c768, %c0_68] : memref<1536x128xbf16, #tpu.memory_space<vmem>>, vector<384x128xbf16>
    %162 = arith.truncf %160 : vector<16x384xf32> to vector<16x384xbf16>
    %cst_69 = arith.constant dense<0.000000e+00> : vector<16x128xf32>
    %163 = tpu.matmul %162, %161, %cst_69 {dimension_numbers = #tpu.dot_dimension_numbers<[1], [0], [0], [1], [0, 0, 1, 1], [], []>} : vector<16x384xbf16>, vector<384x128xbf16>, vector<16x128xf32> -> vector<16x128xf32>
    %164 = vector.extract_strided_slice %0 {offsets = [1, 0], sizes = [1, 128], strides = [1, 1]} : vector<16x128xf32> to vector<1x128xf32>
    %165 = vector.broadcast %164 : vector<1x128xf32> to vector<16x128xf32>
    %166 = arith.addf %163, %165 : vector<16x128xf32>
    %cst_70 = arith.constant 0.000000e+00 : f32
    %167 = vector.broadcast %cst_70 : f32 to vector<16x128xf32>
    %168 = arith.maximumf %166, %167 : vector<16x128xf32>
    %c0_71 = arith.constant 0 : index
    %c0_72 = arith.constant 0 : index
    %169 = vector.load %arg4[%c0_71, %c0_72] : memref<64x128xf32, #tpu.memory_space<vmem>>, vector<16x128xf32>
    tpu.vector_store %arg4[%c0_71, %c0_72], %168 {strides = array<i32>} : memref<64x128xf32, #tpu.memory_space<vmem>>, vector<16x128xf32>,
    %c0_73 = arith.constant 0 : index
    %c0_74 = arith.constant 0 : index
    %170 = tpu.strided_load %arg4[%c0_73, %c0_74] {strides = array<i32: 2, 1>} : memref<64x128xf32, #tpu.memory_space<vmem>>, vector<8x128xf32>
    %c1_75 = arith.constant 1 : index
    %c0_76 = arith.constant 0 : index
    %171 = tpu.strided_load %arg4[%c1_75, %c0_76] {strides = array<i32: 2, 1>} : memref<64x128xf32, #tpu.memory_space<vmem>>, vector<8x128xf32>
    %172 = arith.maximumf %170, %171 : vector<8x128xf32>
    %c512 = arith.constant 512 : index
    %c0_77 = arith.constant 0 : index
    %173 = vector.load %arg2[%c512, %c0_77] : memref<2064x128xf32, #tpu.memory_space<vmem>>, vector<128x128xf32>
    %c640 = arith.constant 640 : index
    %c0_78 = arith.constant 0 : index
    %174 = vector.load %arg2[%c640, %c0_78] : memref<2064x128xf32, #tpu.memory_space<vmem>>, vector<128x128xf32>
    %cst_79 = arith.constant dense<0.000000e+00> : vector<8x128xf32>
    %175 = tpu.matmul %172, %173, %cst_79 {dimension_numbers = #tpu.dot_dimension_numbers<[1], [0], [0], [1], [0, 0, 1, 1], [], []>} : vector<8x128xf32>, vector<128x128xf32>, vector<8x128xf32> -> vector<8x128xf32>
    %cst_80 = arith.constant dense<0.000000e+00> : vector<8x128xf32>
    %176 = tpu.matmul %172, %174, %cst_80 {dimension_numbers = #tpu.dot_dimension_numbers<[1], [0], [0], [1], [0, 0, 1, 1], [], []>} : vector<8x128xf32>, vector<128x128xf32>, vector<8x128xf32> -> vector<8x128xf32>
    %177 = arith.maximumf %175, %176 : vector<8x128xf32>
    %178 = tpu.iota {dimensions = array<i32: 0>} : vector<8x1xi32>
    %c4_i32 = arith.constant 4 : i32
    %c0_i32_81 = arith.constant 0 : i32
    %179 = arith.cmpi eq, %c4_i32, %c0_i32_81 : i32
    %c1_i32_82 = arith.constant 1 : i32
    %180 = arith.select %179, %c1_i32_82, %c4_i32 : i32
    %181 = vector.broadcast %180 : i32 to vector<8x1xi32>
    %182 = arith.remsi %178, %181 : vector<8x1xi32>
    %c0_i32_83 = arith.constant 0 : i32
    %183 = vector.broadcast %c0_i32_83 : i32 to vector<8x1xi32>
    %184 = arith.cmpi ne, %182, %183 : vector<8x1xi32>
    %c0_i32_84 = arith.constant 0 : i32
    %185 = vector.broadcast %c0_i32_84 : i32 to vector<8x1xi32>
    %186 = arith.cmpi slt, %182, %185 : vector<8x1xi32>
    %c0_i32_85 = arith.constant 0 : i32
    %187 = arith.cmpi slt, %180, %c0_i32_85 : i32
    %188 = vector.broadcast %187 : i1 to vector<8x1xi1>
    %189 = vector.broadcast %188 : vector<8x1xi1> to vector<8x1xi1>
    %190 = arith.xori %186, %189 : vector<8x1xi1>
    %191 = arith.andi %190, %184 : vector<8x1xi1>
    %192 = vector.broadcast %180 : i32 to vector<8x1xi32>
    %193 = arith.addi %182, %192 : vector<8x1xi32>
    %194 = arith.select %191, %193, %182 : vector<8x1xi1>, vector<8x1xi32>
    %c0_i32_86 = arith.constant 0 : i32
    %195 = vector.broadcast %c0_i32_86 : i32 to vector<8x1xi32>
    %196 = arith.cmpi eq, %194, %195 : vector<8x1xi32>
    %c1_i32_87 = arith.constant 1 : i32
    %197 = tpu.dynamic_rotate %177 by %c1_i32_87 dim 0 : vector<8x128xf32>, i32 -> vector<8x128xf32>
    %cst_88 = arith.constant 0.000000e+00 : f32
    %198 = vector.shape_cast %196 : vector<8x1xi1> to vector<8x1xi1>
    %199 = vector.broadcast %198 : vector<8x1xi1> to vector<8x128xi1>
    %200 = vector.broadcast %cst_88 : f32 to vector<8x128xf32>
    %201 = arith.select %199, %200, %197 : vector<8x128xi1>, vector<8x128xf32>
    %c3_i32 = arith.constant 3 : i32
    %202 = vector.broadcast %c3_i32 : i32 to vector<8x1xi32>
    %203 = arith.cmpi eq, %194, %202 : vector<8x1xi32>
    %c7_i32_89 = arith.constant 7 : i32
    %204 = tpu.dynamic_rotate %177 by %c7_i32_89 dim 0 : vector<8x128xf32>, i32 -> vector<8x128xf32>
    %cst_90 = arith.constant 0.000000e+00 : f32
    %205 = vector.shape_cast %203 : vector<8x1xi1> to vector<8x1xi1>
    %206 = vector.broadcast %205 : vector<8x1xi1> to vector<8x128xi1>
    %207 = vector.broadcast %cst_90 : f32 to vector<8x128xf32>
    %208 = arith.select %206, %207, %204 : vector<8x128xi1>, vector<8x128xf32>
    %209 = tpu.concatenate %201, %177, %208 in 1 : vector<8x128xf32>, vector<8x128xf32>, vector<8x128xf32> -> vector<8x384xf32>
    %c1152_91 = arith.constant 1152 : index
    %c0_92 = arith.constant 0 : index
    %210 = vector.load %arg1[%c1152_91, %c0_92] : memref<1536x128xbf16, #tpu.memory_space<vmem>>, vector<384x128xbf16>
    %211 = arith.truncf %209 : vector<8x384xf32> to vector<8x384xbf16>
    %cst_93 = arith.constant dense<0.000000e+00> : vector<8x128xf32>
    %212 = tpu.matmul %211, %210, %cst_93 {dimension_numbers = #tpu.dot_dimension_numbers<[1], [0], [0], [1], [0, 0, 1, 1], [], []>} : vector<8x384xbf16>, vector<384x128xbf16>, vector<8x128xf32> -> vector<8x128xf32>
    %213 = vector.extract_strided_slice %0 {offsets = [4, 0], sizes = [1, 128], strides = [1, 1]} : vector<16x128xf32> to vector<1x128xf32>
    %214 = vector.extract_strided_slice %0 {offsets = [5, 0], sizes = [1, 128], strides = [1, 1]} : vector<16x128xf32> to vector<1x128xf32>
    %cst_94 = arith.constant 1.000000e+00 : f32
    %215 = vector.broadcast %cst_94 : f32 to vector<1x8xf32>
    %216 = arith.mulf %212, %212 : vector<8x128xf32>
    %217 = tpu.concatenate %212, %216 in 1 : vector<8x128xf32>, vector<8x128xf32> -> vector<8x256xf32>
    %cst_95 = arith.constant dense<0.000000e+00> : vector<1x256xf32>
    %218 = tpu.matmul %215, %217, %cst_95 {dimension_numbers = #tpu.dot_dimension_numbers<[1], [0], [0], [1], [0, 0, 1, 1], [], []>} : vector<1x8xf32>, vector<8x256xf32>, vector<1x256xf32> -> vector<1x256xf32>
    %c1280 = arith.constant 1280 : index
    %c0_96 = arith.constant 0 : index
    %219 = vector.load %arg2[%c1280, %c0_96] : memref<2064x128xf32, #tpu.memory_space<vmem>>, vector<128x128xf32>
    %220 = vector.extract_strided_slice %218 {offsets = [0, 0], sizes = [1, 128], strides = [1, 1]} : vector<1x256xf32> to vector<1x128xf32>
    %cst_97 = arith.constant dense<0.000000e+00> : vector<1x128xf32>
    %221 = tpu.matmul %220, %219, %cst_97 {dimension_numbers = #tpu.dot_dimension_numbers<[1], [0], [0], [1], [0, 0, 1, 1], [], []>} : vector<1x128xf32>, vector<128x128xf32>, vector<1x128xf32> -> vector<1x128xf32>
    %cst_98 = arith.constant 3.125000e-02 : f32
    %222 = vector.broadcast %cst_98 : f32 to vector<1x128xf32>
    %223 = arith.mulf %221, %222 : vector<1x128xf32>
    %224 = vector.extract_strided_slice %218 {offsets = [0, 128], sizes = [1, 128], strides = [1, 1]} : vector<1x256xf32> to vector<1x128xf32>
    %cst_99 = arith.constant dense<0.000000e+00> : vector<1x128xf32>
    %225 = tpu.matmul %224, %219, %cst_99 {dimension_numbers = #tpu.dot_dimension_numbers<[1], [0], [0], [1], [0, 0, 1, 1], [], []>} : vector<1x128xf32>, vector<128x128xf32>, vector<1x128xf32> -> vector<1x128xf32>
    %cst_100 = arith.constant 3.125000e-02 : f32
    %226 = vector.broadcast %cst_100 : f32 to vector<1x128xf32>
    %227 = arith.mulf %225, %226 : vector<1x128xf32>
    %228 = arith.mulf %223, %223 : vector<1x128xf32>
    %229 = arith.subf %227, %228 : vector<1x128xf32>
    %cst_101 = arith.constant 0.000000e+00 : f32
    %230 = vector.broadcast %cst_101 : f32 to vector<1x128xf32>
    %231 = arith.maximumf %229, %230 : vector<1x128xf32>
    %cst_102 = arith.constant 9.99999974E-6 : f32
    %232 = vector.broadcast %cst_102 : f32 to vector<1x128xf32>
    %233 = arith.addf %231, %232 : vector<1x128xf32>
    %234 = math.rsqrt %233 : vector<1x128xf32>
    %235 = arith.mulf %213, %234 : vector<1x128xf32>
    %236 = arith.mulf %223, %235 : vector<1x128xf32>
    %237 = arith.subf %214, %236 : vector<1x128xf32>
    %c1408 = arith.constant 1408 : index
    %c0_103 = arith.constant 0 : index
    %238 = vector.load %arg2[%c1408, %c0_103] : memref<2064x128xf32, #tpu.memory_space<vmem>>, vector<128x128xf32>
    %cst_104 = arith.constant dense<0.000000e+00> : vector<1x128xf32>
    %239 = tpu.matmul %235, %238, %cst_104 {dimension_numbers = #tpu.dot_dimension_numbers<[1], [0], [0], [1], [0, 0, 1, 1], [], []>} : vector<1x128xf32>, vector<128x128xf32>, vector<1x128xf32> -> vector<1x128xf32>
    %240 = vector.broadcast %239 : vector<1x128xf32> to vector<8x128xf32>
    %241 = arith.mulf %212, %240 : vector<8x128xf32>
    %cst_105 = arith.constant dense<0.000000e+00> : vector<1x128xf32>
    %242 = tpu.matmul %237, %238, %cst_105 {dimension_numbers = #tpu.dot_dimension_numbers<[1], [0], [0], [1], [0, 0, 1, 1], [], []>} : vector<1x128xf32>, vector<128x128xf32>, vector<1x128xf32> -> vector<1x128xf32>
    %243 = vector.broadcast %242 : vector<1x128xf32> to vector<8x128xf32>
    %244 = arith.addf %241, %243 : vector<8x128xf32>
    %cst_106 = arith.constant 0.000000e+00 : f32
    %245 = vector.broadcast %cst_106 : f32 to vector<8x128xf32>
    %246 = arith.maximumf %244, %245 : vector<8x128xf32>
    %c0_107 = arith.constant 0 : index
    %c0_108 = arith.constant 0 : index
    %247 = vector.load %arg4[%c0_107, %c0_108] : memref<64x128xf32, #tpu.memory_space<vmem>>, vector<8x128xf32>
    tpu.vector_store %arg4[%c0_107, %c0_108], %246 {strides = array<i32>} : memref<64x128xf32, #tpu.memory_space<vmem>>, vector<8x128xf32>,
    %c0_109 = arith.constant 0 : index
    %c0_110 = arith.constant 0 : index
    %248 = tpu.strided_load %arg4[%c0_109, %c0_110] {strides = array<i32: 2, 1>} : memref<64x128xf32, #tpu.memory_space<vmem>>, vector<4x128xf32>
    %c1_111 = arith.constant 1 : index
    %c0_112 = arith.constant 0 : index
    %249 = tpu.strided_load %arg4[%c1_111, %c0_112] {strides = array<i32: 2, 1>} : memref<64x128xf32, #tpu.memory_space<vmem>>, vector<4x128xf32>
    %250 = arith.maximumf %248, %249 : vector<4x128xf32>
    %c768_113 = arith.constant 768 : index
    %c0_114 = arith.constant 0 : index
    %251 = vector.load %arg2[%c768_113, %c0_114] : memref<2064x128xf32, #tpu.memory_space<vmem>>, vector<128x128xf32>
    %c896 = arith.constant 896 : index
    %c0_115 = arith.constant 0 : index
    %252 = vector.load %arg2[%c896, %c0_115] : memref<2064x128xf32, #tpu.memory_space<vmem>>, vector<128x128xf32>
    %cst_116 = arith.constant dense<0.000000e+00> : vector<4x128xf32>
    %253 = tpu.matmul %250, %251, %cst_116 {dimension_numbers = #tpu.dot_dimension_numbers<[1], [0], [0], [1], [0, 0, 1, 1], [], []>} : vector<4x128xf32>, vector<128x128xf32>, vector<4x128xf32> -> vector<4x128xf32>
    %cst_117 = arith.constant dense<0.000000e+00> : vector<4x128xf32>
    %254 = tpu.matmul %250, %252, %cst_117 {dimension_numbers = #tpu.dot_dimension_numbers<[1], [0], [0], [1], [0, 0, 1, 1], [], []>} : vector<4x128xf32>, vector<128x128xf32>, vector<4x128xf32> -> vector<4x128xf32>
    %255 = arith.maximumf %253, %254 : vector<4x128xf32>
    %c8 = arith.constant 8 : index
    %c0_118 = arith.constant 0 : index
    %256 = vector.load %arg4[%c8, %c0_118] : memref<64x128xf32, #tpu.memory_space<vmem>>, vector<4x128xf32>
    tpu.vector_store %arg4[%c8, %c0_118], %255 {strides = array<i32>} : memref<64x128xf32, #tpu.memory_space<vmem>>, vector<4x128xf32>,
    %c8_119 = arith.constant 8 : index
    %c0_120 = arith.constant 0 : index
    %257 = tpu.strided_load %arg4[%c8_119, %c0_120] {strides = array<i32: 2, 1>} : memref<64x128xf32, #tpu.memory_space<vmem>>, vector<2x128xf32>
    %c9 = arith.constant 9 : index
    %c0_121 = arith.constant 0 : index
    %258 = tpu.strided_load %arg4[%c9, %c0_121] {strides = array<i32: 2, 1>} : memref<64x128xf32, #tpu.memory_space<vmem>>, vector<2x128xf32>
    %c1536 = arith.constant 1536 : index
    %c0_122 = arith.constant 0 : index
    %259 = vector.load %arg2[%c1536, %c0_122] : memref<2064x128xf32, #tpu.memory_space<vmem>>, vector<128x128xf32>
    %cst_123 = arith.constant dense<0.000000e+00> : vector<2x128xf32>
    %260 = tpu.matmul %257, %259, %cst_123 {dimension_numbers = #tpu.dot_dimension_numbers<[1], [0], [0], [1], [0, 0, 1, 1], [], []>} : vector<2x128xf32>, vector<128x128xf32>, vector<2x128xf32> -> vector<2x128xf32>
    %c1664 = arith.constant 1664 : index
    %c0_124 = arith.constant 0 : index
    %261 = vector.load %arg2[%c1664, %c0_124] : memref<2064x128xf32, #tpu.memory_space<vmem>>, vector<128x128xf32>
    %cst_125 = arith.constant dense<0.000000e+00> : vector<2x128xf32>
    %262 = tpu.matmul %258, %261, %cst_125 {dimension_numbers = #tpu.dot_dimension_numbers<[1], [0], [0], [1], [0, 0, 1, 1], [], []>} : vector<2x128xf32>, vector<128x128xf32>, vector<2x128xf32> -> vector<2x128xf32>
    %263 = arith.addf %260, %262 : vector<2x128xf32>
    %264 = vector.extract_strided_slice %0 {offsets = [6, 0], sizes = [1, 128], strides = [1, 1]} : vector<16x128xf32> to vector<1x128xf32>
    %265 = vector.broadcast %264 : vector<1x128xf32> to vector<2x128xf32>
    %266 = arith.addf %263, %265 : vector<2x128xf32>
    %cst_126 = arith.constant 0.000000e+00 : f32
    %267 = vector.broadcast %cst_126 : f32 to vector<2x128xf32>
    %268 = arith.maximumf %266, %267 : vector<2x128xf32>
    %c1792 = arith.constant 1792 : index
    %c0_127 = arith.constant 0 : index
    %269 = vector.load %arg2[%c1792, %c0_127] : memref<2064x128xf32, #tpu.memory_space<vmem>>, vector<128x128xf32>
    %cst_128 = arith.constant dense<0.000000e+00> : vector<2x128xf32>
    %270 = tpu.matmul %268, %269, %cst_128 {dimension_numbers = #tpu.dot_dimension_numbers<[1], [0], [0], [1], [0, 0, 1, 1], [], []>} : vector<2x128xf32>, vector<128x128xf32>, vector<2x128xf32> -> vector<2x128xf32>
    %271 = vector.extract_strided_slice %0 {offsets = [7, 0], sizes = [1, 128], strides = [1, 1]} : vector<16x128xf32> to vector<1x128xf32>
    %272 = vector.broadcast %271 : vector<1x128xf32> to vector<2x128xf32>
    %273 = arith.addf %270, %272 : vector<2x128xf32>
    %cst_129 = arith.constant 0.000000e+00 : f32
    %274 = vector.broadcast %cst_129 : f32 to vector<2x128xf32>
    %275 = arith.maximumf %273, %274 : vector<2x128xf32>
    %c1920 = arith.constant 1920 : index
    %c0_130 = arith.constant 0 : index
    %276 = vector.load %arg2[%c1920, %c0_130] : memref<2064x128xf32, #tpu.memory_space<vmem>>, vector<128x128xf32>
    %cst_131 = arith.constant dense<0.000000e+00> : vector<2x128xf32>
    %277 = tpu.matmul %275, %276, %cst_131 {dimension_numbers = #tpu.dot_dimension_numbers<[1], [0], [0], [1], [0, 0, 1, 1], [], []>} : vector<2x128xf32>, vector<128x128xf32>, vector<2x128xf32> -> vector<2x128xf32>
    %278 = vector.extract_strided_slice %0 {offsets = [8, 0], sizes = [1, 128], strides = [1, 1]} : vector<16x128xf32> to vector<1x128xf32>
    %279 = vector.broadcast %278 : vector<1x128xf32> to vector<2x128xf32>
    %280 = arith.addf %277, %279 : vector<2x128xf32>
    %cst_132 = arith.constant dense<0xFF800000> : vector<2xf32>
    %281 = vector.multi_reduction <maximumf>, %280, %cst_132 [1] : vector<2x128xf32> to vector<2xf32>
    %282 = vector.shape_cast %281 : vector<2xf32> to vector<2x1xf32>
    %283 = vector.broadcast %282 : vector<2x1xf32> to vector<2x128xf32>
    %284 = arith.subf %280, %283 : vector<2x128xf32>
    %285 = math.exp %284 : vector<2x128xf32>
    %cst_133 = arith.constant dense<0.000000e+00> : vector<2xf32>
    %286 = vector.multi_reduction <add>, %285, %cst_133 [1] : vector<2x128xf32> to vector<2xf32>
    %287 = vector.shape_cast %286 : vector<2xf32> to vector<2x1xf32>
    %288 = vector.broadcast %287 : vector<2x1xf32> to vector<2x128xf32>
    %289 = arith.divf %285, %288 : vector<2x128xf32>
    %c0_134 = arith.constant 0 : index
    %c0_135 = arith.constant 0 : index
    %290 = vector.load %arg3[%c0_134, %c0_135] : memref<2x128xf32, #tpu.memory_space<vmem>>, vector<2x128xf32>
    tpu.vector_store %arg3[%c0_134, %c0_135], %289 {strides = array<i32>} : memref<2x128xf32, #tpu.memory_space<vmem>>, vector<2x128xf32>,
    return
  }
}

</mosaic_0001>

<bundles_post_ra>
// kernel: forward.1
= control target key start
LH: loop header
LB: loop body
LE: loop exit
PB: predicated region body
PF: predicated region fallthrough
CT: control target
= control target key end

     0   :  { %8 = vsyncpa [#allocation4], 0  ;;  %s6367_s0 = inlined_call_operand.vmem [shape: f32[64,128], index: 0, kind: input, shape index: {}]   ;;  %s6368_s1 = inlined_call_operand.hbm [shape: bf16[1536,128], index: 1, kind: input, shape index: {}]   ;;  %s6369_s2 = inlined_call_operand.hbm [shape: f32[2064,128], index: 2, kind: input, shape index: {}]   ;;  %s6370_s3 = inlined_call_operand.hbm [shape: f32[2,128], index: 3, kind: output, shape index: {}]  }
   0x1   :  { %9 = vsyncpa [#allocation7], 0 }
   0x2   :  { %10 = vsyncpa [#allocation5], 0  ;;  %s5816_s12 = smov [#allocation3]   ;;  %s5744_s16 = scalar_lea.hbm %s6368_s1, 12288 }
   0x3   :  { %s18_s13 = sshll.u32 %s5816_s12, 4  ;;  %p5745_p0 = scmp.ne.s32.totalorder %s6368_s1, %s5744_s16  ;;  %s19_s13 = int_to_ptr.vmem [resolvable:$true] %s18_s13 }
   0x4   :  { %p5748_p1 = scmp.lt.u32.totalorder %s5744_s16, %s6368_s1 }
   0x6   :  { %p5750_p2 = pnand %p5748_p1, %p5745_p0 }
   0x8   :  { %5753 = shalt.err (!%p5750_p2)
}
   0x9   :  { %s5754_s21 = scalar_lea.vmem %s19_s13, 12288  ;;  %p5759_p4 = scmp.lt.s32.totalorder %s19_s13, %s19_s13 }
   0xa   :  { %p5755_p3 = scmp.ne.s32.totalorder %s19_s13, %s5754_s21  ;;  %p5760_p5 = scmp.lt.s32.totalorder %s5754_s21, %s5754_s21 }
   0xc   :  { %p5761_p6 = por %p5760_p5, %p5759_p4 }
   0xe   :  { %p5762_p7 = pnand %p5761_p6, %p5755_p3 }
  0x10   :  { %5765 = shalt.err (!%p5762_p7)
}
  0x11   :  { %s5817_s22 = smov 64   ;;  %s5818_s23 = smov 4  }
  0x12   :  { %24 = dma.hbm_to_vmem [thread:$0]  %s6368_s1, 12288, %s19_s13, [#allocation4], %s5817_s22, %s5817_s22, %s5818_s23  }
  0x13   :  { %s5819_s26 = smov [#allocation6]   ;;  %s5766_s30 = scalar_lea.hbm %s6369_s2, 33024 }
  0x14   :  { %s30_s27 = sshll.u32 %s5819_s26, 4  ;;  %p5767_p8 = scmp.ne.s32.totalorder %s6369_s2, %s5766_s30  ;;  %s31_s27 = int_to_ptr.vmem [resolvable:$true] %s30_s27 }
  0x15   :  { %p5770_p9 = scmp.lt.u32.totalorder %s5766_s30, %s6369_s2 }
  0x17   :  { %p5772_p10 = pnand %p5770_p9, %p5767_p8 }
  0x19   :  { %5775 = shalt.err (!%p5772_p10)
}
  0x1a   :  { %s5776_s8 = scalar_lea.vmem %s31_s27, 33024  ;;  %p5781_p12 = scmp.lt.s32.totalorder %s31_s27, %s31_s27 }
  0x1b   :  { %p5777_p11 = scmp.ne.s32.totalorder %s31_s27, %s5776_s8  ;;  %p5782_p13 = scmp.lt.s32.totalorder %s5776_s8, %s5776_s8 }
  0x1d   :  { %p5783_p0 = por %p5782_p13, %p5781_p12 }
  0x1f   :  { %p5784_p1 = pnand %p5783_p0, %p5777_p11 }
  0x21   :  { %5787 = shalt.err (!%p5784_p1)
}
  0x22   :  { %s5820_s1 = smov 128   ;;  %s5821_s9 = smov 8  }
  0x23   :  { %36 = dma.hbm_to_vmem [thread:$0]  %s6369_s2, 33024, %s31_s27, [#allocation7], %s5820_s1, %s5820_s1, %s5821_s9  }
  0x24   :  { %5810 = dma.done.wait [#allocation4], 12288  }
  0x25   :  { %5811 = vsyncadd [#allocation4], 4294955008 }
  0x26   :  { %5812 = dma.done.wait [#allocation7], 33024  }
  0x27   :  { %5813 = vsyncadd [#allocation7], 4294934272  ;;  %v5638_v0 = vld [vmem:[#allocation3 + $0x40] sm:$0xff]   ;;  %v5640_v2 = vld [vmem:[#allocation3 + $0x48] sm:$0xff]   ;;  %v54_v12 = vlaneseq  ;;  %vm5822_vm4 = vmmov 1  }
  0x28   :  { %v5639_v1 = vld [vmem:[#allocation3] sm:$0xff]   ;;  %3816 = vmatprep.subr.bf16.mxu0 %v5638_v0  ;;  %v5642_v4 = vld [vmem:[#allocation3 + $0x8] sm:$0xff]   ;;  %v5643_v5 = vld [vmem:[#allocation3 + $0x50] sm:$0xff]  }
  0x29   :  { %3817 = vmatpush3.bf16.msra.mxu0 %v5639_v1  ;;  %v5641_v3 = vld [vmem:[#allocation3 + $0x80] sm:$0xff]   ;;  %v5644_v6 = vld [vmem:[#allocation3 + $0x88] sm:$0xff]   ;;  %v5645_v7 = vld [vmem:[#allocation3 + $0x10] sm:$0xff]   ;;  %v5872_v16 = vshrl.u32 %v54_v12, 7 }
  0x2a   :  { %3818 = vmatprep.subr.bf16.mxu0 %v5640_v2  ;;  %4316 = vmatprep.subr.bf16.mxu1 %v5641_v3  ;;  %v5646_v8 = vld [vmem:[#allocation3 + $0x58] sm:$0xff]   ;;  %v5647_v9 = vld [vmem:[#allocation3 + $0x90] sm:$0xff]   ;;  %v5649_v11 = vld [vmem:[#allocation3 + $0x60] sm:$0xff]  }
  0x2b   :  { %4317 = vmatpush3.bf16.msra.mxu1 %v5641_v3  ;;  %v5648_v10 = vld [vmem:[#allocation3 + $0x18] sm:$0xff]   ;;  %v5651_v14 = vld [vmem:[#allocation3 + $0x20] sm:$0xff]   ;;  %v5652_v17 = vld [vmem:[#allocation3 + $0x68] sm:$0xff]   ;;  %v5875_v18 = vadd.s32 24, %v5872_v16  ;;  %v59_v20 = vadd.s32 32, %v5872_v16  ;;  %v62_v22 = vadd.s32 56, %v5872_v16 }
  0x2c   :  { %4318 = vmatprep.subr.bf16.mxu1 %v5644_v6  ;;  %v5650_v13 = vld [vmem:[#allocation3 + $0x98] sm:$0xff]   ;;  %v5653_v15 = vld [vmem:[#allocation3 + $0xa0] sm:$0xff]   ;;  %v5654_v19 = vld [vmem:[#allocation3 + $0x28] sm:$0xff]   ;;  %v67_v24 = vand.u32 31, %v5872_v16  ;;  %vm175_vm0 = vcmp.lt.s32.totalorder %v5872_v16, 1  ;;  %vm224_vm1 = vcmp.lt.s32.totalorder %v5872_v16, 7 }
  0x2d   :  { %3819 = vmatpush3.bf16.msra.mxu0 %v5642_v4  ;;  %v5656_v21 = vld [vmem:[#allocation3 + $0xa8] sm:$0xff]   ;;  %v5655_v23 = vld [vmem:[#allocation3 + $0x70] sm:$0xff]   ;;  %v5658_v26 = vld [vmem:[#allocation3 + $0x78] sm:$0xff]   ;;  %v88_v28 = vand.u32 31, %v5875_v18  ;;  %v95_v32 = vand.u32 31, %v59_v20  ;;  %v116_v33 = vand.u32 31, %v62_v22 }
  0x2e   :  { %3820 = vmatprep.subr.bf16.mxu0 %v5643_v5  ;;  %v5657_v25 = vld [vmem:[#allocation3 + $0x30] sm:$0xff]   ;;  %v5885_v29 = vld [vmem:[%s6367_s0] sm:$0xff]  ;;  %v5890_v30 = vld [vmem:[%s6367_s0 + $0x8] sm:$0xff]  ;;  %vm5905_vm2 = vcmp.ne.s32.totalorder %v67_v24, 0 }
  0x2f   :  { %4319 = vmatpush3.bf16.msra.mxu1 %v5644_v6  ;;  %v5659_v27 = vld [vmem:[#allocation3 + $0xb0] sm:$0xff]   ;;  %v5895_v31 = vld [vmem:[%s6367_s0 + $0x38] sm:$0xff]  ;;  %v167_v34 = vrot.slane %v5885_v29, 7  ;;  %v168_v35 = vrot.slane %v5890_v30, 7  ;;  %v216_v36 = vrot.slane %v5885_v29, 1  ;;  %v217_v37 = vrot.slane %v5890_v30, 1  ;;  %vm5948_vm5 = vmpackc.low %vm5822_vm4, %vm5905_vm2 }
  0x30   :  { %4320 = vmatprep.subr.bf16.mxu1 %v5647_v9  ;;  %v306_v38 = vpack.c.bf16 %v5890_v30, %v5885_v29  ;;  %v174_v39 = vrot.slane %v5895_v31, 7  ;;  %v48_v41 = vld [vmem:[%s6367_s0 + $0x10] sm:$0xff]  ;;  %v5919_v44 = vld [vmem:[%s6367_s0 + $0x18] sm:$0xff]  ;;  %v5924_v45 = vld [vmem:[%s6367_s0 + $0x20] sm:$0xff]  ;;  %vm5926_vm3 = vcmp.ne.s32.totalorder %v88_v28, 31  ;;  %vm5954_vm6 = vcmp.ne.s32.totalorder %v95_v32, 0 }
  0x31   :  { %3821 = vmatpush3.bf16.msra.mxu0 %v5645_v7  ;;  %v218_v42 = vrot.slane %v48_v41, 1  ;;  %v231_v43 = vsel %vm224_vm1, %v216_v36, %v217_v37  ;;  %v5660_v47 = vld [vmem:[#allocation3 + $0x38] sm:$0xff]   ;;  %v182_v48 = vsel %vm175_vm0, %v167_v34, %v168_v35  ;;  %v219_v51 = vrot.slane %v5919_v44, 1  ;;  %v5943_v53 = vld [vmem:[%s6367_s0 + $0x28] sm:$0xff]  ;;  %v52_v58 = vld [vmem:[%s6367_s0 + $0x30] sm:$0xff]  ;;  %s5827_s0 = smov [#allocation8]  }
  0x32   :  { %3822 = vmatprep.subr.bf16.mxu0 %v5646_v8  ;;  %v183_v49 = vsel %vm175_vm0, %v174_v39, %v167_v34  ;;  %v5661_v50 = vld [vmem:[#allocation3 + $0xb8] sm:$0xff]   ;;  %v220_v52 = vrot.slane %v5924_v45, 1  ;;  %497 = vmatprep.mubr.bf16.mxu0 %v306_v38  ;;  %v169_v56 = vrot.slane %v48_v41, 7  ;;  %v223_v59 = vrot.slane %v5895_v31, 1  ;;  %v630_v0 = vld [vmem:[#allocation6] sm:$0xff]  ;;  %v631_v1 = vld [vmem:[#allocation6 + $0x8] sm:$0xff] }
  0x33   :  { %4321 = vmatpush3.bf16.msra.mxu1 %v5647_v9  ;;  %v230_v55 = vsel %vm224_vm1, %v217_v37, %v218_v42  ;;  %vm5962_vm7 = vcmp.ne.s32.totalorder %v116_v33, 31  ;;  %v170_v62 = vrot.slane %v5919_v44, 7  ;;  %v172_v63 = vrot.slane %v5943_v53, 7  ;;  %v646_v6 = vld [vmem:[#allocation6 + $0x80] sm:$0xff]  ;;  %v647_v9 = vld [vmem:[#allocation6 + $0x88] sm:$0xff]  ;;  %vm5977_vm8 = vmpackc.low %vm5926_vm3, %vm5822_vm4  ;;  %s3642_s27 = sshll.u32 %s5827_s0, 4  ;;  %s3643_s27 = int_to_ptr.vmem [resolvable:$true] %s3642_s27 }
  0x34   :  { %4322 = vmatprep.subr.bf16.mxu1 %v5650_v13  ;;  %v307_v61 = vpack.c.bf16 %v230_v55, %v231_v43  ;;  %v3678_v2 = vpack.c.bf16 %v182_v48, %v183_v49  ;;  %v228_v3 = vsel %vm224_vm1, %v219_v51, %v220_v52  ;;  %v229_v4 = vsel %vm224_vm1, %v218_v42, %v219_v51  ;;  %vm5991_vm9 = vmpackc.low %vm5962_vm7, %vm5822_vm4  ;;  %v632_v37 = vld [vmem:[#allocation6 + $0x10] sm:$0xff]  ;;  %v633_v38 = vld [vmem:[#allocation6 + $0x18] sm:$0xff]  ;;  %s5788_s28 = scalar_lea.vmem %s3643_s27, 32  ;;  %p5793_p3 = scmp.lt.s32.totalorder %s3643_s27, %s3643_s27 }
  0x35   :  { %3823 = vmatpush3.bf16.msra.mxu0 %v5648_v10  ;;  %v221_v5 = vrot.slane %v5943_v53, 1  ;;  %v309_v7 = vpack.c.bf16 %v5919_v44, %v48_v41  ;;  %v222_v8 = vrot.slane %v52_v58, 1  ;;  %v181_v22 = vsel %vm175_vm0, %v168_v35, %v169_v56  ;;  %vm3681_vm10 = vmpackc.low %vm5822_vm4, %vm5954_vm6  ;;  %v648_v40 = vld [vmem:[#allocation6 + $0x90] sm:$0xff]  ;;  %v649_v42 = vld [vmem:[#allocation6 + $0x98] sm:$0xff]  ;;  %p5789_p2 = scmp.ne.s32.totalorder %s3643_s27, %s5788_s28  ;;  %p5794_p4 = scmp.lt.s32.totalorder %s5788_s28, %s5788_s28 }
  0x36   :  { %3824 = vmatprep.subr.bf16.mxu0 %v5649_v11  ;;  %4332 = vmatprep.mubr.bf16.mxu1 %v307_v61  ;;  %v171_v11 = vrot.slane %v5924_v45, 7  ;;  %v315_v33 = vpack.c.bf16 %v5895_v31, %v52_v58  ;;  %v5110_v41 = vpack.c.bf16 %v633_v38, %v632_v37  ;;  %v5142_v43 = vpack.c.bf16 %v649_v42, %v648_v40  ;;  %v634_v44 = vld [vmem:[#allocation6 + $0x20] sm:$0xff]  ;;  %v636_v48 = vld [vmem:[#allocation6 + $0x30] sm:$0xff]  ;;  %v637_v49 = vld [vmem:[#allocation6 + $0x38] sm:$0xff] }
  0x37   :  { %4323 = vmatpush3.bf16.msra.mxu1 %v5650_v13  ;;  %v227_v12 = vsel %vm224_vm1, %v220_v52, %v221_v5  ;;  %v173_v13 = vrot.slane %v52_v58, 7  ;;  %v650_v31 = vld [vmem:[#allocation6 + $0xa0] sm:$0xff]  ;;  %v5118_v51 = vpack.c.bf16 %v637_v49, %v636_v48  ;;  %v653_v52 = vld [vmem:[#allocation6 + $0xb8] sm:$0xff]  ;;  %v639_v55 = vld [vmem:[#allocation6 + $0x48] sm:$0xff]  ;;  %vm5826_vm6 = vmmov 0   ;;  %p5795_p5 = por %p5794_p4, %p5793_p3 }
  0x38   :  { %4324 = vmatprep.subr.bf16.mxu1 %v5653_v15  ;;  %v178_v30 = vsel %vm175_vm0, %v171_v11, %v172_v63  ;;  %v179_v29 = vsel %vm175_vm0, %v170_v62, %v171_v11  ;;  %v638_v54 = vld [vmem:[#allocation6 + $0x40] sm:$0xff]  ;;  %v655_v58 = vld [vmem:[#allocation6 + $0xc8] sm:$0xff]  ;;  %v640_v60 = vld [vmem:[#allocation6 + $0x50] sm:$0xff] }
  0x39   :  { %3825 = vmatpush3.bf16.msra.mxu0 %v5651_v14  ;;  %v5106_v14 = vpack.c.bf16 %v631_v1, %v630_v0  ;;  %v3682_v32 = vpack.c.bf16 %v178_v30, %v179_v29  ;;  %v176_v34 = vsel %vm175_vm0, %v173_v13, %v174_v39  ;;  %v177_v35 = vsel %vm175_vm0, %v172_v63, %v173_v13  ;;  %v651_v39 = vld [vmem:[#allocation6 + $0xa8] sm:$0xff]  ;;  %v641_v61 = vld [vmem:[#allocation6 + $0x58] sm:$0xff]  ;;  %v660_v10 = vld [vmem:[#allocation6 + $0xf0] sm:$0xff]  ;;  %p5796_p6 = pnand %p5795_p5, %p5789_p2 }
  0x3a   :  { %3826 = vmatprep.subr.bf16.mxu0 %v5652_v17  ;;  %v226_v17 = vsel %vm224_vm1, %v221_v5, %v222_v8  ;;  %v5122_v57 = vpack.c.bf16 %v639_v55, %v638_v54  ;;  %v5126_v63 = vpack.c.bf16 %v641_v61, %v640_v60  ;;  %v657_v0 = vld [vmem:[#allocation6 + $0xd8] sm:$0xff] }
  0x3b   :  { %4325 = vmatpush3.bf16.msra.mxu1 %v5653_v15  ;;  %v3686_v15 = vpack.c.bf16 %v228_v3, %v229_v4  ;;  %v643_v3 = vld [vmem:[#allocation6 + $0x68] sm:$0xff]  ;;  %v658_v4 = vld [vmem:[#allocation6 + $0xe0] sm:$0xff] }
  0x3c   :  { %4326 = vmatprep.subr.bf16.mxu1 %v5656_v21 }
  0x3d   :  { %3827 = vmatpush3.bf16.msra.mxu0 %v5654_v19  ;;  %v313_v19 = vpack.c.bf16 %v226_v17, %v227_v12  ;;  %v661_v12 = vld [vmem:[#allocation6 + $0xf8] sm:$0xff]  ;;  %v6031_v17 = vsub.s32 0, %v5872_v16 }
  0x3e   :  { %3828 = vmatprep.subr.bf16.mxu0 %v5655_v23  ;;  %v5138_v23 = vpack.c.bf16 %v647_v9, %v646_v6  ;;  %v659_v6 = vld [vmem:[#allocation6 + $0xe8] sm:$0xff]  ;;  %v645_v9 = vld [vmem:[#allocation6 + $0x78] sm:$0xff]  ;;  %v5166_v13 = vpack.c.bf16 %v661_v12, %v660_v10 }
  0x3f   :  { %4327 = vmatpush3.bf16.msra.mxu1 %v5656_v21  ;;  %v180_v21 = vsel %vm175_vm0, %v169_v56, %v170_v62  ;;  %v654_v56 = vld [vmem:[#allocation6 + $0xc0] sm:$0xff]  ;;  %v656_v62 = vld [vmem:[#allocation6 + $0xd0] sm:$0xff] }
  0x40   :  { %4328 = vmatprep.subr.bf16.mxu1 %v5659_v27  ;;  %v308_v24 = vpack.c.bf16 %v180_v21, %v181_v22  ;;  %v5158_v1 = vpack.c.bf16 %v657_v0, %v656_v62 }
  0x41   :  { %3829 = vmatpush3.bf16.msra.mxu0 %v5657_v25  ;;  %v225_v25 = vsel %vm224_vm1, %v222_v8, %v223_v59  ;;  %v644_v8 = vld [vmem:[#allocation6 + $0x70] sm:$0xff] }
  0x42   :  { %3830 = vmatprep.subr.bf16.mxu0 %v5658_v26  ;;  %v232_v26 = vsel %vm224_vm1, %v223_v59, %v216_v36  ;;  %v314_v36 = vpack.c.bf16 %v176_v34, %v177_v35  ;;  %v5154_v59 = vpack.c.bf16 %v655_v58, %v654_v56  ;;  %v5134_v11 = vpack.c.bf16 %v645_v9, %v644_v8 }
  0x43   :  { %4329 = vmatpush3.bf16.msra.mxu1 %v5659_v27  ;;  %v312_v27 = vpack.c.bf16 %v5943_v53, %v5924_v45  ;;  %v3690_v28 = vpack.c.bf16 %v232_v26, %v225_v25  ;;  %v635_v45 = vld [vmem:[#allocation6 + $0x28] sm:$0xff] }
  0x44   :  { %4330 = vmatprep.subr.bf16.mxu1 %v5661_v50  ;;  %v5114_v46 = vpack.c.bf16 %v635_v45, %v634_v44 }
  0x45   :  { %3831 = vmatpush3.bf16.msra.mxu0 %v5660_v47  ;;  %v5146_v47 = vpack.c.bf16 %v651_v39, %v650_v31 }
  0x46   :  { %5107 = vmatprep.subr.bf16.mxu0 %v5106_v14 }
  0x47   :  { %4331 = vmatpush3.bf16.msra.mxu1 %v5661_v50  ;;  %v652_v50 = vld [vmem:[#allocation6 + $0xb0] sm:$0xff] }
  0x48   :  { %3679 = vmatmul.mubr.msk.bf16.vlgmr.msra.gmra.mrb[0].mxu0 %vm5948_vm5, %v3678_v2  ;;  %5139 = vmatprep.subr.bf16.mxu1 %v5138_v23  ;;  %v5150_v53 = vpack.c.bf16 %v653_v52, %v652_v50  ;;  %v642_v2 = vld [vmem:[#allocation6 + $0x60] sm:$0xff] }
  0x49   :  { %505 = vmatprep.mubr.bf16.mxu0 %v309_v7  ;;  %5109 = vmatpush3.bf16.msra.mxu0 %v5106_v14  ;;  %v5130_v5 = vpack.c.bf16 %v643_v3, %v642_v2  ;;  %v5162_v7 = vpack.c.bf16 %v659_v6, %v658_v4  ;;  %v5662_v14 = vld [vmem:[#allocation3 + $0x100] sm:$0xff]  }
  0x4a   :  { %4333 = vmatmul.mubr.msk.bf16.vlgmr.msra.gmra.mrb[0].mxu1 %vm5977_vm8, %v3686_v15  ;;  %5111 = vmatprep.subr.bf16.mxu0 %v5110_v41  ;;  %v6027_v15 = vld [vmem:[#allocation3 + $0x140] sm:$0xff]  }
  0x4b   :  { %4336 = vmatprep.mubr.bf16.mxu1 %v313_v19  ;;  %5141 = vmatpush3.bf16.msra.mxu1 %v5138_v23  ;;  %v6033_v19 = vld [vmem:[#allocation6 + $0x800] sm:$0xff] }
  0x4c   :  { %5143 = vmatprep.subr.bf16.mxu1 %v5142_v43  ;;  %v6037_v21 = vrot.slane %v6033_v19, %v6031_v17 }
  0x4d   :  { %5113 = vmatpush3.bf16.msra.mxu0 %v5110_v41 }
  0x4e   :  { %5115 = vmatprep.subr.bf16.mxu0 %v5114_v46 }
  0x4f   :  { %5145 = vmatpush3.bf16.msra.mxu1 %v5142_v43 }
  0x50   :  { %506 = vmatmul.mubr.bf16.gmra.mrb[4].mxu0 %v308_v24  ;;  %5147 = vmatprep.subr.bf16.mxu1 %v5146_v47 }
  0x51   :  { %513 = vmatprep.mubr.bf16.mxu0 %v312_v27  ;;  %5117 = vmatpush3.bf16.msra.mxu0 %v5114_v46 }
  0x52   :  { %4337 = vmatmul.mubr.msk.bf16.gmra.mrb[4].mxu1 %vm5991_vm9, %v3690_v28  ;;  %5119 = vmatprep.subr.bf16.mxu0 %v5118_v51 }
  0x53   :  { %5149 = vmatpush3.bf16.msra.mxu1 %v5146_v47 }
  0x54   :  { %5151 = vmatprep.subr.bf16.mxu1 %v5150_v53 }
  0x55   :  { %5121 = vmatpush3.bf16.msra.mxu0 %v5118_v51 }
  0x56   :  { %5123 = vmatprep.subr.bf16.mxu0 %v5122_v57 }
  0x57   :  { %5153 = vmatpush3.bf16.msra.mxu1 %v5150_v53 }
  0x58   :  { %3683 = vmatmul.mubr.msk.bf16.gmra.mrb[8].mxu0 %vm3681_vm10, %v3682_v32  ;;  %5155 = vmatprep.subr.bf16.mxu1 %v5154_v59 }
  0x59   :  { %521 = vmatprep.mubr.bf16.mxu0 %v315_v33  ;;  %5125 = vmatpush3.bf16.msra.mxu0 %v5122_v57 }
  0x5a   :  { %5127 = vmatprep.subr.bf16.mxu0 %v5126_v63 }
  0x5b   :  { %5157 = vmatpush3.bf16.msra.mxu1 %v5154_v59 }
  0x5c   :  { %5159 = vmatprep.subr.bf16.mxu1 %v5158_v1 }
  0x5d   :  { %5129 = vmatpush3.bf16.msra.mxu0 %v5126_v63 }
  0x5e   :  { %5131 = vmatprep.subr.bf16.mxu0 %v5130_v5 }
  0x5f   :  { %5161 = vmatpush3.bf16.msra.mxu1 %v5158_v1 }
  0x60   :  { %522 = vmatmul.mubr.bf16.gmra.mrb[12].mxu0 %v314_v36  ;;  %5163 = vmatprep.subr.bf16.mxu1 %v5162_v7 }
  0x61   :  { %5133 = vmatpush3.bf16.msra.mxu0 %v5130_v5 }
  0x62   :  { %5135 = vmatprep.subr.bf16.mxu0 %v5134_v11 }
  0x63   :  { %5165 = vmatpush3.bf16.msra.mxu1 %v5162_v7 }
  0x64   :  { %5167 = vmatprep.subr.bf16.mxu1 %v5166_v13 }
  0x65   :  { %5137 = vmatpush3.bf16.msra.mxu0 %v5134_v11  ;;  %v5663_v11 = vld [vmem:[#allocation3 + $0xc0] sm:$0xff]  }
  0x66   :  { %3908 = vmatprep.subr.bf16.mxu0 %v5662_v14 }
  0x67   :  { %5169 = vmatpush3.bf16.msra.mxu1 %v5166_v13 }
  0x68   :  { %4416 = vmatprep.subr.bf16.mxu1 %v6027_v15 }
 0x11b   :  { %v3832_v20 = vpop.f32.mrb[0].mxu0 }
 0x11c   :  { %v3833_v22 = vpop.f32.mrb[1].mxu0 }
 0x11d   :  { %v3834_v23 = vadd.f32 %v3833_v22, %v3832_v20  ;;  %v3835_v24 = vpop.f32.mrb[2].mxu0  ;;  %v4334_v26 = vpop.f32.mrb[0].mxu1  ;;  %v5665_v20 = vld [vmem:[#allocation3 + $0x108] sm:$0xff]  }
 0x11e   :  { %v3836_v25 = vpop.f32.mrb[3].mxu0  ;;  %v564_v30 = vpop.f32.mrb[1].mxu1  ;;  %v5667_v22 = vld [vmem:[#allocation3 + $0x148] sm:$0xff]  }
 0x11f   :  { %v3837_v27 = vadd.f32 %v3836_v25, %v3835_v24  ;;  %v500_v28 = vadd.f32 %v3834_v23, %v6037_v21  ;;  %v4335_v29 = vpop.f32.mrb[2].mxu1  ;;  %v5666_v25 = vld [vmem:[#allocation3 + $0xc8] sm:$0xff]  }
 0x120   :  { %v567_v34 = vpop.f32.mrb[3].mxu1 }
 0x121   :  { %v565_v32 = vadd.f32 %v564_v30, %v500_v28  ;;  %v503_v33 = vadd.f32 %v3837_v27, %v6037_v21 }
 0x123   :  { %v595_v35 = vmax.f32 %v565_v32, 0.0  ;;  %v568_v36 = vadd.f32 %v567_v34, %v503_v33  ;;  %v3838_v37 = vpop.f32.mrb[4].mxu0 }
 0x124   :  { %v3839_v38 = vpop.f32.mrb[5].mxu0 }
 0x125   :  { %603 = vst [vmem:[#allocation2] sm:$0xff] %v595_v35  ;;  %v596_v40 = vmax.f32 %v568_v36, 0.0  ;;  %v3840_v41 = vadd.f32 %v3839_v38, %v3838_v37  ;;  %v3841_v42 = vpop.f32.mrb[6].mxu0  ;;  %v4338_v44 = vpop.f32.mrb[4].mxu1  ;;  %v5669_v35 = vld [vmem:[#allocation3 + $0xd0] sm:$0xff]   ;;  %v5671_v37 = vld [vmem:[#allocation3 + $0x118] sm:$0xff]  }
 0x126   :  { %v3842_v43 = vpop.f32.mrb[7].mxu0  ;;  %v580_v46 = vpop.f32.mrb[5].mxu1  ;;  %v5670_v36 = vld [vmem:[#allocation3 + $0x150] sm:$0xff]   ;;  %v5672_v38 = vld [vmem:[#allocation3 + $0xd8] sm:$0xff]  }
 0x127   :  { %604 = vst [vmem:[#allocation2 + $0x8] sm:$0xff] %v596_v40  ;;  %v508_v45 = vadd.f32 %v3840_v41, %v6037_v21  ;;  %v3843_v31 = vadd.f32 %v3842_v43, %v3841_v42  ;;  %v4339_v39 = vpop.f32.mrb[6].mxu1  ;;  %v5673_v40 = vld [vmem:[#allocation3 + $0x158] sm:$0xff]   ;;  %v5674_v41 = vld [vmem:[#allocation3 + $0x120] sm:$0xff]  }
 0x128   :  { %v583_v49 = vpop.f32.mrb[7].mxu1  ;;  %v5675_v42 = vld [vmem:[#allocation3 + $0xe0] sm:$0xff]  }
 0x129   :  { %v573_v47 = vadd.f32 %v4334_v26, %v508_v45  ;;  %v511_v48 = vadd.f32 %v3843_v31, %v6037_v21  ;;  %v5676_v43 = vld [vmem:[#allocation3 + $0x160] sm:$0xff]   ;;  %v5679_v45 = vld [vmem:[#allocation3 + $0x168] sm:$0xff]  }
 0x12a   :  { %v5678_v31 = vld [vmem:[#allocation3 + $0xe8] sm:$0xff]  }
 0x12b   :  { %v597_v50 = vmax.f32 %v573_v47, 0.0  ;;  %v576_v51 = vadd.f32 %v4335_v29, %v511_v48  ;;  %v3844_v52 = vpop.f32.mrb[8].mxu0  ;;  %v5682_v47 = vld [vmem:[#allocation3 + $0x170] sm:$0xff]   ;;  %v5683_v48 = vld [vmem:[#allocation3 + $0x138] sm:$0xff]  }
 0x12c   :  { %v3845_v53 = vpop.f32.mrb[9].mxu0 }
 0x12d   :  { %605 = vst [vmem:[#allocation2 + $0x10] sm:$0xff] %v597_v50  ;;  %v598_v54 = vmax.f32 %v576_v51, 0.0  ;;  %v3846_v55 = vadd.f32 %v3845_v53, %v3844_v52  ;;  %v3847_v56 = vpop.f32.mrb[10].mxu0  ;;  %v5685_v50 = vld [vmem:[#allocation3 + $0x178] sm:$0xff]  }
 0x12e   :  { %v3848_v57 = vpop.f32.mrb[11].mxu0  ;;  %v611_v58 = vld [vmem:[#allocation2] ss:$2 sm:$0xff]  ;;  %v619_v59 = vld [vmem:[#allocation2 + $0x1] ss:$2 sm:$0xff] }
 0x12f   :  { %606 = vst [vmem:[#allocation2 + $0x18] sm:$0xff] %v598_v54  ;;  %v3849_v60 = vadd.f32 %v3848_v57, %v3847_v56  ;;  %v516_v61 = vadd.f32 %v3846_v55, %v6037_v21  ;;  %v626_v62 = vmax.f32 %v611_v58, %v619_v59 }
 0x131   :  { %v581_v63 = vadd.f32 %v580_v46, %v516_v61  ;;  %4372 = vmatprep.mubr.f32.mxu0 %v626_v62  ;;  %4410 = vmatprep.mubr.f32.mxu1 %v626_v62  ;;  %v519_v0 = vadd.f32 %v3849_v60, %v6037_v21  ;;  %v5680_v46 = vld [vmem:[#allocation3 + $0x130] sm:$0xff]  }
 0x133   :  { %v599_v1 = vmax.f32 %v581_v63, 0.0  ;;  %v584_v2 = vadd.f32 %v583_v49, %v519_v0  ;;  %v3850_v3 = vpop.f32.mrb[12].mxu0  ;;  %v5684_v49 = vld [vmem:[#allocation3 + $0xf8] sm:$0xff]   ;;  %v6053_v0 = vadd.s32 8, %v5872_v16 }
 0x134   :  { %v3851_v4 = vpop.f32.mrb[13].mxu0 }
 0x135   :  { %607 = vst [vmem:[#allocation2 + $0x20] sm:$0xff] %v599_v1  ;;  %v600_v5 = vmax.f32 %v584_v2, 0.0  ;;  %v3852_v6 = vadd.f32 %v3851_v4, %v3850_v3  ;;  %v3853_v7 = vpop.f32.mrb[14].mxu0  ;;  %v840_v1 = vand.u32 15, %v5872_v16  ;;  %v847_v2 = vand.u32 15, %v6053_v0 }
 0x136   :  { %v3854_v8 = vpop.f32.mrb[15].mxu0  ;;  %v613_v9 = vld [vmem:[#allocation2 + $0x10] ss:$2 sm:$0xff]  ;;  %v621_v10 = vld [vmem:[#allocation2 + $0x11] ss:$2 sm:$0xff]  ;;  %v861_v3 = vand.u32 15, %v5875_v18 }
 0x137   :  { %608 = vst [vmem:[#allocation2 + $0x28] sm:$0xff] %v600_v5  ;;  %v524_v12 = vadd.f32 %v3852_v6, %v6037_v21  ;;  %v3855_v13 = vadd.f32 %v3854_v8, %v3853_v7  ;;  %v627_v14 = vmax.f32 %v613_v9, %v621_v10  ;;  %v57_v9 = vadd.s32 16, %v5872_v16 }
 0x138   :  { %vm3806_vm11 = vcmp.ne.s32.totalorder %v840_v1, 0  ;;  %vm3808_vm12 = vcmp.ne.s32.totalorder %v847_v2, 15  ;;  %vm3809_vm13 = vcmp.ne.s32.totalorder %v861_v3, 15 }
 0x139   :  { %v589_v23 = vadd.f32 %v4338_v44, %v524_v12  ;;  %v527_v24 = vadd.f32 %v3855_v13, %v6037_v21  ;;  %4373 = vmatmul.mubr.f32.vlgmr.msra.gmra.mrb[16].mxu0 %v627_v14  ;;  %4411 = vmatmul.mubr.f32.vlgmr.msra.gmra.mrb[8].mxu1 %v627_v14  ;;  %v5677_v44 = vld [vmem:[#allocation3 + $0x128] sm:$0xff]   ;;  %vm3717_vm14 = vmpackc.low %vm5822_vm4, %vm3806_vm11 }
 0x13a   :  { %3909 = vmatpush3.bf16.msra.mxu0 %v5663_v11  ;;  %4417 = vmatpush3.bf16.msra.mxu1 %v6027_v15  ;;  %v5668_v15 = vld [vmem:[#allocation3 + $0x110] sm:$0xff]   ;;  %vm3725_vm15 = vmpackc.low %vm3808_vm12, %vm5822_vm4 }
 0x13b   :  { %v601_v26 = vmax.f32 %v589_v23, 0.0  ;;  %v592_v27 = vadd.f32 %v4339_v39, %v527_v24  ;;  %3910 = vmatprep.subr.bf16.mxu0 %v5665_v20  ;;  %4418 = vmatprep.subr.bf16.mxu1 %v5667_v22  ;;  %v5681_v39 = vld [vmem:[#allocation3 + $0xf0] sm:$0xff]   ;;  %v854_v23 = vand.u32 15, %v57_v9  ;;  %vm3729_vm2 = vmpackc.low %vm3809_vm13, %vm5822_vm4 }
 0x13d   :  { %609 = vst [vmem:[#allocation2 + $0x30] sm:$0xff] %v601_v26  ;;  %v602_v28 = vmax.f32 %v592_v27, 0.0  ;;  %vm3807_vm3 = vcmp.ne.s32.totalorder %v854_v23, 0 }
 0x13e   :  { %v615_v30 = vld [vmem:[#allocation2 + $0x20] ss:$2 sm:$0xff]  ;;  %v623_v29 = vld [vmem:[#allocation2 + $0x21] ss:$2 sm:$0xff]  ;;  %3911 = vmatpush3.bf16.msra.mxu0 %v5666_v25  ;;  %4419 = vmatpush3.bf16.msra.mxu1 %v5667_v22  ;;  %vm3721_vm5 = vmpackc.low %vm5822_vm4, %vm3807_vm3  ;;  %vm1232_vm4 = vcmask 261120  }
 0x13f   :  { %610 = vst [vmem:[#allocation2 + $0x38] sm:$0xff] %v602_v28  ;;  %v628_v32 = vmax.f32 %v615_v30, %v623_v29  ;;  %3912 = vmatprep.subr.bf16.mxu0 %v5668_v15  ;;  %4420 = vmatprep.subr.bf16.mxu1 %v5670_v36  ;;  %v5824_v15 = vmov 0.0|0.0  }
 0x141   :  { %4375 = vmatprep.mubr.f32.mxu0 %v628_v32  ;;  %4413 = vmatprep.mubr.f32.mxu1 %v628_v32 }
 0x142   :  { %3913 = vmatpush3.bf16.msra.mxu0 %v5669_v35  ;;  %4421 = vmatpush3.bf16.msra.mxu1 %v5670_v36  ;;  %v1309_v36 = vld [vmem:[#allocation6 + $0x410] sm:$0xff] }
 0x143   :  { %3914 = vmatprep.subr.bf16.mxu0 %v5671_v37  ;;  %4422 = vmatprep.subr.bf16.mxu1 %v5673_v40  ;;  %v1310_v37 = vld [vmem:[#allocation6 + $0x418] sm:$0xff] }
 0x146   :  { %v617_v21 = vld [vmem:[#allocation2 + $0x30] ss:$2 sm:$0xff]  ;;  %v625_v33 = vld [vmem:[#allocation2 + $0x31] ss:$2 sm:$0xff]  ;;  %3915 = vmatpush3.bf16.msra.mxu0 %v5672_v38  ;;  %4423 = vmatpush3.bf16.msra.mxu1 %v5673_v40  ;;  %v6080_v38 = vpack.c.bf16 %v1310_v37, %v1309_v36  ;;  %v1311_v40 = vld [vmem:[#allocation6 + $0x420] sm:$0xff] }
 0x147   :  { %v629_v34 = vmax.f32 %v617_v21, %v625_v33  ;;  %3916 = vmatprep.subr.bf16.mxu0 %v5674_v41  ;;  %4424 = vmatprep.subr.bf16.mxu1 %v5676_v43  ;;  %v5823_v21 = vmov 0.0   ;;  %v1307_v33 = vld [vmem:[#allocation6 + $0x400] sm:$0xff]  ;;  %v1312_v41 = vld [vmem:[#allocation6 + $0x428] sm:$0xff] }
 0x148   :  { %v1486_v36 = vld [vmem:[#allocation6 + $0x4a0] sm:$0xff]  ;;  %v1487_v37 = vld [vmem:[#allocation6 + $0x4a8] sm:$0xff] }
 0x149   :  { %4376 = vmatmul.mubr.f32.gmra.mrb[18].mxu0 %v629_v34  ;;  %4414 = vmatmul.mubr.f32.gmra.mrb[10].mxu1 %v629_v34  ;;  %v1308_v34 = vld [vmem:[#allocation6 + $0x408] sm:$0xff] }
 0x14a   :  { %3917 = vmatpush3.bf16.msra.mxu0 %v5675_v42  ;;  %4425 = vmatpush3.bf16.msra.mxu1 %v5676_v43  ;;  %v6077_v35 = vpack.c.bf16 %v1308_v34, %v1307_v33  ;;  %v6084_v42 = vpack.c.bf16 %v1312_v41, %v1311_v40  ;;  %v1313_v43 = vld [vmem:[#allocation6 + $0x430] sm:$0xff]  ;;  %v1485_v34 = vld [vmem:[#allocation6 + $0x498] sm:$0xff] }
 0x14b   :  { %3918 = vmatprep.subr.bf16.mxu0 %v5677_v44  ;;  %4426 = vmatprep.subr.bf16.mxu1 %v5679_v45  ;;  %v1314_v44 = vld [vmem:[#allocation6 + $0x438] sm:$0xff]  ;;  %v1484_v33 = vld [vmem:[#allocation6 + $0x490] sm:$0xff] }
 0x14c   :  { %v1488_v40 = vld [vmem:[#allocation6 + $0x4b0] sm:$0xff]  ;;  %v1489_v41 = vld [vmem:[#allocation6 + $0x4b8] sm:$0xff] }
 0x14e   :  { %3919 = vmatpush3.bf16.msra.mxu0 %v5678_v31  ;;  %4427 = vmatpush3.bf16.msra.mxu1 %v5679_v45  ;;  %v6088_v45 = vpack.c.bf16 %v1314_v44, %v1313_v43  ;;  %v1315_v31 = vld [vmem:[#allocation6 + $0x440] sm:$0xff]  ;;  %v1491_v44 = vld [vmem:[#allocation6 + $0x4c8] sm:$0xff] }
 0x14f   :  { %3920 = vmatprep.subr.bf16.mxu0 %v5680_v46  ;;  %4428 = vmatprep.subr.bf16.mxu1 %v5682_v47  ;;  %v1316_v46 = vld [vmem:[#allocation6 + $0x448] sm:$0xff]  ;;  %v1490_v43 = vld [vmem:[#allocation6 + $0x4c0] sm:$0xff] }
 0x152   :  { %3921 = vmatpush3.bf16.msra.mxu0 %v5681_v39  ;;  %4429 = vmatpush3.bf16.msra.mxu1 %v5682_v47  ;;  %v5191_v39 = vpack.c.bf16 %v1316_v46, %v1315_v31  ;;  %v1317_v47 = vld [vmem:[#allocation6 + $0x450] sm:$0xff]  ;;  %v1493_v46 = vld [vmem:[#allocation6 + $0x4d8] sm:$0xff] }
 0x153   :  { %3922 = vmatprep.subr.bf16.mxu0 %v5683_v48  ;;  %4430 = vmatprep.subr.bf16.mxu1 %v5685_v50  ;;  %v1318_v48 = vld [vmem:[#allocation6 + $0x458] sm:$0xff]  ;;  %v1492_v31 = vld [vmem:[#allocation6 + $0x4d0] sm:$0xff] }
 0x156   :  { %3923 = vmatpush3.bf16.msra.mxu0 %v5684_v49  ;;  %4431 = vmatpush3.bf16.msra.mxu1 %v5685_v50  ;;  %v5194_v49 = vpack.c.bf16 %v1318_v48, %v1317_v47  ;;  %v1319_v50 = vld [vmem:[#allocation6 + $0x460] sm:$0xff]  ;;  %v1495_v48 = vld [vmem:[#allocation6 + $0x4e8] sm:$0xff] }
 0x157   :  { %5178 = vmatprep.subr.bf16.mxu0 %v5824_v15  ;;  %v1494_v47 = vld [vmem:[#allocation6 + $0x4e0] sm:$0xff] }
 0x20c   :  { %v4374_v51 = vpop.f32.mrb[16].mxu0  ;;  %v4412_v52 = vpop.f32.mrb[8].mxu1 }
 0x20d   :  { %v833_v53 = vmax.f32 %v4374_v51, %v4412_v52  ;;  %v728_v54 = vpop.f32.mrb[17].mxu0  ;;  %v813_v55 = vpop.f32.mrb[9].mxu1  ;;  %v1320_v51 = vld [vmem:[#allocation6 + $0x468] sm:$0xff] }
 0x20e   :  { %v832_v56 = vmax.f32 %v728_v54, %v813_v55  ;;  %v5197_v52 = vpack.c.bf16 %v1320_v51, %v1319_v50  ;;  %v1322_v54 = vld [vmem:[#allocation6 + $0x478] sm:$0xff]  ;;  %v1496_v50 = vld [vmem:[#allocation6 + $0x4f0] sm:$0xff] }
 0x20f   :  { %v889_v57 = vrot.slane %v833_v53, 7  ;;  %v913_v58 = vrot.slane %v833_v53, 1  ;;  %v1497_v51 = vld [vmem:[#allocation6 + $0x4f8] sm:$0xff] }
 0x210   :  { %v888_v59 = vrot.slane %v832_v56, 7  ;;  %v912_v60 = vrot.slane %v832_v56, 1  ;;  %v981_v61 = vpack.c.bf16 %v833_v53, %v832_v56  ;;  %v1321_v53 = vld [vmem:[#allocation6 + $0x470] sm:$0xff] }
 0x211   :  { %v5200_v55 = vpack.c.bf16 %v1322_v54, %v1321_v53  ;;  %v1672_v53 = vld [vmem:[#allocation6 + $0x100] sm:$0xff]  ;;  %v1673_v54 = vld [vmem:[#allocation6 + $0x108] sm:$0xff] }
 0x212   :  { %v894_v62 = vsel %vm175_vm0, %v888_v59, %v889_v57  ;;  %1162 = vmatprep.mubr.bf16.mxu0 %v981_v61  ;;  %v918_v63 = vsel %vm224_vm1, %v912_v60, %v913_v58 }
 0x21c   :  { %v4377_v4 = vpop.f32.mrb[18].mxu0  ;;  %v4415_v5 = vpop.f32.mrb[10].mxu1 }
 0x21d   :  { %v835_v6 = vmax.f32 %v4377_v4, %v4415_v5  ;;  %v738_v7 = vpop.f32.mrb[19].mxu0  ;;  %v823_v8 = vpop.f32.mrb[11].mxu1 }
 0x21e   :  { %v834_v10 = vmax.f32 %v738_v7, %v823_v8 }
 0x21f   :  { %v891_v11 = vrot.slane %v835_v6, 7  ;;  %v915_v12 = vrot.slane %v835_v6, 1 }
 0x220   :  { %v890_v13 = vrot.slane %v834_v10, 7  ;;  %v914_v14 = vrot.slane %v834_v10, 1  ;;  %v984_v20 = vpack.c.bf16 %v835_v6, %v834_v10 }
 0x221   :  { %v895_v22 = vsel %vm175_vm0, %v891_v11, %v888_v59  ;;  %v919_v18 = vsel %vm224_vm1, %v915_v12, %v912_v60 }
 0x222   :  { %v3718_v24 = vpack.c.bf16 %v894_v62, %v895_v22  ;;  %v916_v25 = vsel %vm224_vm1, %v914_v14, %v915_v12  ;;  %v917_v26 = vsel %vm224_vm1, %v913_v58, %v914_v14  ;;  %v892_v27 = vsel %vm175_vm0, %v890_v13, %v891_v11 }
 0x223   :  { %v3730_v28 = vpack.c.bf16 %v919_v18, %v916_v25  ;;  %v3726_v30 = vpack.c.bf16 %v917_v26, %v918_v63  ;;  %v893_v29 = vsel %vm175_vm0, %v889_v57, %v890_v13  ;;  %v5825_v26 = vmov 1.0  }
 0x224   :  { %3719 = vmatmul.mubr.msk.bf16.vlgmr.msra.gmra.mrb[20].mxu0 %vm3717_vm14, %v3718_v24  ;;  %v3722_v32 = vpack.c.bf16 %v892_v27, %v893_v29  ;;  %v1482_v27 = vld [vmem:[#allocation6 + $0x480] sm:$0xff] }
 0x225   :  { %1170 = vmatprep.mubr.bf16.mxu0 %v984_v20  ;;  %4432 = vmatprep.mubr.msk.bf16.mxu1 %vm3725_vm15, %v3726_v30  ;;  %vm2663_vm15 = vcmask 64512  }
 0x226   :  { %4433 = vmatmul.mubr.msk.bf16.vlgmr.msra.gmra.mrb[12].mxu1 %vm3729_vm2, %v3730_v28  ;;  %5180 = vmatpush3.bf16.msra.mxu0 %v6077_v35  ;;  %v1483_v28 = vld [vmem:[#allocation6 + $0x488] sm:$0xff]  ;;  %vm3623_vm2 = vcmask 1041408  }
 0x227   :  { %1300 = vmatprep.mubr.f32.mxu1 %v5823_v21  ;;  %5181 = vmatprep.subr.bf16.mxu0 %v5824_v15  ;;  %v5227_v30 = vpack.c.bf16 %v1483_v28, %v1482_v27 }
 0x22a   :  { %5183 = vmatpush3.bf16.msra.mxu0 %v6080_v38 }
 0x22b   :  { %5184 = vmatprep.subr.bf16.mxu0 %v5824_v15 }
 0x22c   :  { %3723 = vmatmul.mubr.msk.bf16.gmra.mrb[24].mxu0 %vm3721_vm5, %v3722_v32 }
 0x22d   :  { %4468 = vmatprep.mubr.msk.f32.mxu0 %vm5826_vm6, %v5823_v21 }
 0x22e   :  { %5186 = vmatpush3.bf16.msra.mxu0 %v6084_v42 }
 0x22f   :  { %5187 = vmatprep.subr.bf16.mxu0 %v5824_v15 }
 0x232   :  { %5189 = vmatpush3.bf16.msra.mxu0 %v6088_v45 }
 0x233   :  { %5190 = vmatprep.subr.bf16.mxu0 %v5824_v15 }
 0x236   :  { %5192 = vmatpush3.bf16.msra.mxu0 %v5191_v39 }
 0x237   :  { %5193 = vmatprep.subr.bf16.mxu0 %v5824_v15 }
 0x23a   :  { %5195 = vmatpush3.bf16.msra.mxu0 %v5194_v49 }
 0x23b   :  { %5196 = vmatprep.subr.bf16.mxu0 %v5824_v15 }
 0x23e   :  { %5198 = vmatpush3.bf16.msra.mxu0 %v5197_v52 }
 0x23f   :  { %5199 = vmatprep.subr.bf16.mxu0 %v5824_v15 }
 0x242   :  { %5201 = vmatpush3.bf16.msra.mxu0 %v5200_v55 }
 0x243   :  { %5226 = vmatprep.subr.bf16.mxu0 %v5824_v15 }
 0x2f7   :  { %v3924_v56 = vpop.f32.mrb[20].mxu0 }
 0x2f8   :  { %v3925_v57 = vpop.f32.mrb[21].mxu0 }
 0x2f9   :  { %v3926_v58 = vadd.f32 %v3925_v57, %v3924_v56  ;;  %v3927_v59 = vpop.f32.mrb[22].mxu0  ;;  %v4434_v60 = vpop.f32.mrb[12].mxu1  ;;  %v5274_v56 = vpack.c.bf16 %v1673_v54, %v1672_v53  ;;  %v1689_v57 = vld [vmem:[#allocation6 + $0x188] sm:$0xff]  ;;  %v1684_v53 = vld [vmem:[#allocation6 + $0x160] sm:$0xff] }
 0x2fa   :  { %v3928_v61 = vpop.f32.mrb[23].mxu0  ;;  %v1213_v62 = vpop.f32.mrb[13].mxu1  ;;  %v1685_v54 = vld [vmem:[#allocation6 + $0x168] sm:$0xff] }
 0x2fb   :  { %v3929_v63 = vadd.f32 %v3928_v61, %v3927_v59  ;;  %v6097_v1 = vadd.f32 %v3926_v58, %v1213_v62  ;;  %v4435_v2 = vpop.f32.mrb[14].mxu1 }
 0x2fc   :  { %v1216_v3 = vpop.f32.mrb[15].mxu1 }
 0x2fd   :  { %v6099_v4 = vadd.f32 %v3929_v63, %v1216_v3  ;;  %v1228_v5 = vmul.f32 %v6097_v1, %v6097_v1 }
 0x2ff   :  { %v1229_v6 = vmul.f32 %v6099_v4, %v6099_v4  ;;  %v3930_v7 = vpop.f32.mrb[24].mxu0  ;;  %v5172_v12 = vpack.c.bf16 %v6099_v4, %v6097_v1 }
 0x300   :  { %v3931_v8 = vpop.f32.mrb[25].mxu0 }
 0x301   :  { %v3932_v9 = vadd.f32 %v3931_v8, %v3930_v7  ;;  %v3933_v10 = vpop.f32.mrb[26].mxu0  ;;  %v5170_v11 = vpack.c.bf16 %v1229_v6, %v1228_v5 }
 0x302   :  { %v3934_v13 = vpop.f32.mrb[27].mxu0 }
 0x303   :  { %v6107_v14 = vadd.f32 %v4434_v60, %v3932_v9  ;;  %v3935_v20 = vadd.f32 %v3934_v13, %v3933_v10  ;;  %5171 = vmatprep.subr.bf16.mxu1 %v5170_v11  ;;  %v1674_v10 = vld [vmem:[#allocation6 + $0x110] sm:$0xff]  ;;  %v1675_v11 = vld [vmem:[#allocation6 + $0x118] sm:$0xff] }
 0x304   :  { %5173 = vmatpush1.bf16.msra.mxu1 %v5172_v12 }
 0x305   :  { %v6109_v22 = vadd.f32 %v4435_v2, %v3935_v20  ;;  %v1230_v18 = vmul.f32 %v6107_v14, %v6107_v14  ;;  %v5278_v20 = vpack.c.bf16 %v1675_v11, %v1674_v10 }
 0x307   :  { %v1231_v23 = vmul.f32 %v6109_v22, %v6109_v22  ;;  %v5176_v25 = vpack.c.bf16 %v6109_v22, %v6107_v14 }
 0x309   :  { %v5174_v24 = vpack.c.bf16 %v1231_v23, %v1230_v18 }
 0x30b   :  { %5175 = vmatprep.subr.bf16.mxu1 %v5174_v24  ;;  %v1690_v24 = vld [vmem:[#allocation6 + $0x190] sm:$0xff] }
 0x30c   :  { %5177 = vmatpush1.bf16.msra.mxu1 %v5176_v25  ;;  %v1691_v25 = vld [vmem:[#allocation6 + $0x198] sm:$0xff] }
 0x30d   :  { %5202 = vmatprep.subr.bf16.mxu1 %v5824_v15 }
 0x30f   :  { %3732 = vmatmul.mubr.msk.f32.vlgmr.msra.gmra.mrb[16].mxu1 %vm1232_vm4, %v5825_v26 }
 0x310   :  { %5204 = vmatpush3.bf16.msra.mxu1 %v6077_v35  ;;  %4503 = vmatprep.mubr.msk.f32.mxu1 %vm5826_vm6, %v5823_v21  ;;  %v5230_v35 = vpack.c.bf16 %v1485_v34, %v1484_v33  ;;  %v1692_v33 = vld [vmem:[#allocation6 + $0x1a0] sm:$0xff] }
 0x311   :  { %5205 = vmatprep.subr.bf16.mxu1 %v5824_v15 }
 0x314   :  { %5207 = vmatpush3.bf16.msra.mxu1 %v6080_v38  ;;  %v5233_v38 = vpack.c.bf16 %v1487_v37, %v1486_v36  ;;  %v1678_v37 = vld [vmem:[#allocation6 + $0x130] sm:$0xff] }
 0x315   :  { %5208 = vmatprep.subr.bf16.mxu1 %v5824_v15 }
 0x318   :  { %5210 = vmatpush3.bf16.msra.mxu1 %v6084_v42  ;;  %v5236_v42 = vpack.c.bf16 %v1489_v41, %v1488_v40  ;;  %v1694_v40 = vld [vmem:[#allocation6 + $0x1b0] sm:$0xff]  ;;  %v1695_v41 = vld [vmem:[#allocation6 + $0x1b8] sm:$0xff] }
 0x319   :  { %5211 = vmatprep.subr.bf16.mxu1 %v5824_v15 }
 0x31c   :  { %5213 = vmatpush3.bf16.msra.mxu1 %v6088_v45  ;;  %v5239_v45 = vpack.c.bf16 %v1491_v44, %v1490_v43  ;;  %v1680_v43 = vld [vmem:[#allocation6 + $0x140] sm:$0xff]  ;;  %v1681_v44 = vld [vmem:[#allocation6 + $0x148] sm:$0xff] }
 0x31d   :  { %5214 = vmatprep.subr.bf16.mxu1 %v5824_v15 }
 0x320   :  { %5216 = vmatpush3.bf16.msra.mxu1 %v5191_v39  ;;  %v5242_v39 = vpack.c.bf16 %v1493_v46, %v1492_v31  ;;  %v5290_v31 = vpack.c.bf16 %v1681_v44, %v1680_v43  ;;  %v1697_v46 = vld [vmem:[#allocation6 + $0x1c8] sm:$0xff]  ;;  %v5696_v43 = vld [vmem:[#allocation3 + $0x198] sm:$0xff]  }
 0x321   :  { %5217 = vmatprep.subr.bf16.mxu1 %v5824_v15  ;;  %v5697_v44 = vld [vmem:[#allocation3 + $0x218] sm:$0xff]  }
 0x324   :  { %5219 = vmatpush3.bf16.msra.mxu1 %v5194_v49  ;;  %v5245_v49 = vpack.c.bf16 %v1495_v48, %v1494_v47  ;;  %v1682_v47 = vld [vmem:[#allocation6 + $0x150] sm:$0xff]  ;;  %v1683_v48 = vld [vmem:[#allocation6 + $0x158] sm:$0xff] }
 0x325   :  { %5220 = vmatprep.subr.bf16.mxu1 %v5824_v15 }
 0x328   :  { %5222 = vmatpush3.bf16.msra.mxu1 %v5197_v52  ;;  %v5248_v52 = vpack.c.bf16 %v1497_v51, %v1496_v50  ;;  %v5294_v50 = vpack.c.bf16 %v1683_v48, %v1682_v47  ;;  %v1699_v51 = vld [vmem:[#allocation6 + $0x1d8] sm:$0xff]  ;;  %v5702_v47 = vld [vmem:[#allocation3 + $0x1a8] sm:$0xff]  }
 0x329   :  { %5223 = vmatprep.subr.bf16.mxu1 %v5824_v15  ;;  %v5703_v48 = vld [vmem:[#allocation3 + $0x228] sm:$0xff]  }
 0x32c   :  { %5225 = vmatpush3.bf16.msra.mxu1 %v5200_v55  ;;  %v1688_v55 = vld [vmem:[#allocation6 + $0x180] sm:$0xff] }
 0x32d   :  { %5250 = vmatprep.subr.bf16.mxu1 %v5824_v15  ;;  %v5306_v58 = vpack.c.bf16 %v1689_v57, %v1688_v55  ;;  %v1700_v55 = vld [vmem:[#allocation6 + $0x1e0] sm:$0xff]  ;;  %v1701_v57 = vld [vmem:[#allocation6 + $0x1e8] sm:$0xff] }
 0x3e2   :  { %v1302_v29 = vpop.f32.mrb[16].mxu1 }
 0x3e3   :  { %v1304_v32 = vpop.f32.mrb[17].mxu1  ;;  %4469 = vmatmul.mubr.f32.vlgmr.msra.gmra.mrb[28].mxu0 %v1302_v29  ;;  %v1676_v29 = vld [vmem:[#allocation6 + $0x120] sm:$0xff] }
 0x3e4   :  { %4504 = vmatmul.mubr.f32.vlgmr.msra.gmra.mrb[18].mxu1 %v1304_v32  ;;  %5228 = vmatpush3.bf16.msra.mxu0 %v5227_v30  ;;  %v1677_v32 = vld [vmem:[#allocation6 + $0x128] sm:$0xff] }
 0x3e5   :  { %5229 = vmatprep.subr.bf16.mxu0 %v5824_v15  ;;  %5252 = vmatpush3.bf16.msra.mxu1 %v5227_v30  ;;  %v5310_v30 = vpack.c.bf16 %v1691_v25, %v1690_v24  ;;  %v5282_v34 = vpack.c.bf16 %v1677_v32, %v1676_v29 }
 0x3e6   :  { %5253 = vmatprep.subr.bf16.mxu1 %v5824_v15  ;;  %4538 = vmatprep.mubr.msk.f32.mxu0 %vm5826_vm6, %v5823_v21 }
 0x3e7   :  { %4573 = vmatprep.mubr.msk.f32.mxu1 %vm5826_vm6, %v5823_v21 }
 0x3e8   :  { %5231 = vmatpush3.bf16.msra.mxu0 %v5230_v35 }
 0x3e9   :  { %5255 = vmatpush3.bf16.msra.mxu1 %v5230_v35  ;;  %5232 = vmatprep.subr.bf16.mxu0 %v5824_v15  ;;  %v1693_v35 = vld [vmem:[#allocation6 + $0x1a8] sm:$0xff] }
 0x3ea   :  { %5256 = vmatprep.subr.bf16.mxu1 %v5824_v15  ;;  %v5314_v36 = vpack.c.bf16 %v1693_v35, %v1692_v33  ;;  %v5687_v33 = vld [vmem:[#allocation3 + $0x180] sm:$0xff]  }
 0x3ec   :  { %5234 = vmatpush3.bf16.msra.mxu0 %v5233_v38 }
 0x3ed   :  { %5258 = vmatpush3.bf16.msra.mxu1 %v5233_v38  ;;  %5235 = vmatprep.subr.bf16.mxu0 %v5824_v15  ;;  %v1679_v38 = vld [vmem:[#allocation6 + $0x138] sm:$0xff] }
 0x3ee   :  { %5259 = vmatprep.subr.bf16.mxu1 %v5824_v15 }
 0x3f0   :  { %5237 = vmatpush3.bf16.msra.mxu0 %v5236_v42 }
 0x3f1   :  { %5261 = vmatpush3.bf16.msra.mxu1 %v5236_v42  ;;  %5238 = vmatprep.subr.bf16.mxu0 %v5824_v15  ;;  %v5318_v42 = vpack.c.bf16 %v1695_v41, %v1694_v40  ;;  %v5692_v40 = vld [vmem:[#allocation3 + $0x1d0] sm:$0xff]  }
 0x3f2   :  { %5262 = vmatprep.subr.bf16.mxu1 %v5824_v15  ;;  %v5694_v41 = vld [vmem:[#allocation3 + $0x210] sm:$0xff]  }
 0x3f4   :  { %5240 = vmatpush3.bf16.msra.mxu0 %v5239_v45 }
 0x3f5   :  { %5264 = vmatpush3.bf16.msra.mxu1 %v5239_v45  ;;  %5241 = vmatprep.subr.bf16.mxu0 %v5824_v15  ;;  %v1696_v45 = vld [vmem:[#allocation6 + $0x1c0] sm:$0xff] }
 0x3f6   :  { %5265 = vmatprep.subr.bf16.mxu1 %v5824_v15 }
 0x3f8   :  { %5243 = vmatpush3.bf16.msra.mxu0 %v5242_v39 }
 0x3f9   :  { %5267 = vmatpush3.bf16.msra.mxu1 %v5242_v39  ;;  %5244 = vmatprep.subr.bf16.mxu0 %v5824_v15  ;;  %v5322_v39 = vpack.c.bf16 %v1697_v46, %v1696_v45  ;;  %v5698_v45 = vld [vmem:[#allocation3 + $0x1e0] sm:$0xff]  }
 0x3fa   :  { %5268 = vmatprep.subr.bf16.mxu1 %v5824_v15  ;;  %v5700_v46 = vld [vmem:[#allocation3 + $0x220] sm:$0xff]  }
 0x3fc   :  { %5246 = vmatpush3.bf16.msra.mxu0 %v5245_v49 }
 0x3fd   :  { %5270 = vmatpush3.bf16.msra.mxu1 %v5245_v49  ;;  %5247 = vmatprep.subr.bf16.mxu0 %v5824_v15  ;;  %v1698_v49 = vld [vmem:[#allocation6 + $0x1d0] sm:$0xff] }
 0x3fe   :  { %5271 = vmatprep.subr.bf16.mxu1 %v5824_v15 }
 0x400   :  { %5249 = vmatpush3.bf16.msra.mxu0 %v5248_v52 }
 0x401   :  { %5273 = vmatpush3.bf16.msra.mxu1 %v5248_v52  ;;  %5275 = vmatprep.subr.bf16.mxu0 %v5274_v56  ;;  %v5326_v52 = vpack.c.bf16 %v1699_v51, %v1698_v49  ;;  %v5704_v49 = vld [vmem:[#allocation3 + $0x1f0] sm:$0xff]  }
 0x402   :  { %5307 = vmatprep.subr.bf16.mxu1 %v5306_v58  ;;  %v5706_v51 = vld [vmem:[#allocation3 + $0x230] sm:$0xff]  }
 0x4b6   :  { %v1389_v59 = vpop.f32.mrb[28].mxu0 }
 0x4b7   :  { %v1393_v60 = vmul.f32 0.001953125, %v1389_v59  ;;  %v4470_v61 = vpop.f32.mrb[29].mxu0  ;;  %v1460_v62 = vpop.f32.mrb[18].mxu1  ;;  %v1687_v59 = vld [vmem:[#allocation6 + $0x178] sm:$0xff] }
 0x4b8   :  { %v1464_v63 = vmul.f32 0.001953125, %v1460_v62  ;;  %v4505_v2 = vpop.f32.mrb[19].mxu1  ;;  %v1702_v62 = vld [vmem:[#allocation6 + $0x1f0] sm:$0xff] }
 0x4b9   :  { %v1465_v3 = vmul.f32 %v1393_v60, %v1393_v60 }
 0x4bb   :  { %v1466_v5 = vsub.f32 %v1464_v63, %v1465_v3  ;;  %v1703_v63 = vld [vmem:[#allocation6 + $0x1f8] sm:$0xff]  ;;  %v5686_v3 = vld [vmem:[#allocation3 + $0x1c0] sm:$0xff]  }
 0x4bc   :  { %v5334_v2 = vpack.c.bf16 %v1703_v63, %v1702_v62  ;;  %v2192_v62 = vld [vmem:[#allocation6 + $0x200] sm:$0xff] }
 0x4bd   :  { %v1467_v6 = vmax.f32 %v1466_v5, 0.0 }
 0x4bf   :  { %v1468_v7 = vadd.f32 1e-05, %v1467_v6 }
 0x4c1   :  { %5734 = vrsqrt.f32 %v1468_v7 }
 0x4cb   :  { %v5735_v8 = vpop.eup %5734 }
 0x4cc   :  { %v1471_v9 = vrot.slane %v5735_v8, 6 }
 0x4ce   :  { %v1473_v12 = vmul.f32 %v1471_v9, %v6033_v19 }
 0x4d0   :  { %v1475_v13 = vrot.slane %v1473_v12, 2 }
 0x4d2   :  { %v1477_v18 = vmul.f32 %v1475_v13, %v1393_v60  ;;  %4539 = vmatmul.mubr.f32.vlgmr.msra.gmra.mrb[30].mxu0 %v1475_v13  ;;  %v5330_v60 = vpack.c.bf16 %v1701_v57, %v1700_v55  ;;  %v1860_v55 = vand.u32 7, %v5872_v16 }
 0x4d3   :  { %5277 = vmatpush3.bf16.msra.mxu0 %v5274_v56  ;;  %v5298_v56 = vpack.c.bf16 %v1685_v54, %v1684_v53  ;;  %v5708_v53 = vld [vmem:[#allocation3 + $0x1b8] sm:$0xff]  }
 0x4d4   :  { %v1479_v23 = vrot.slane %v1477_v18, 5  ;;  %5279 = vmatprep.subr.bf16.mxu0 %v5278_v20  ;;  %v5709_v54 = vld [vmem:[#allocation3 + $0x238] sm:$0xff]   ;;  %vm6179_vm8 = vcmp.ne.s32.totalorder %v1860_v55, 0  ;;  %vm6187_vm10 = vcmp.ne.s32.totalorder %v1860_v55, 7  ;;  %v2204_v55 = vld [vmem:[#allocation6 + $0x260] sm:$0xff] }
 0x4d6   :  { %v1481_v27 = vsub.f32 %v6033_v19, %v1479_v23  ;;  %v5286_v19 = vpack.c.bf16 %v1679_v38, %v1678_v37  ;;  %v5690_v37 = vld [vmem:[#allocation3 + $0x188] sm:$0xff]  }
 0x4d7   :  { %5281 = vmatpush3.bf16.msra.mxu0 %v5278_v20  ;;  %v5691_v38 = vld [vmem:[#allocation3 + $0x208] sm:$0xff]  }
 0x4d8   :  { %v1577_v28 = vrot.slane %v1481_v27, 3  ;;  %5283 = vmatprep.subr.bf16.mxu0 %v5282_v34 }
 0x4da   :  { %4574 = vmatmul.mubr.f32.vlgmr.msra.gmra.mrb[20].mxu1 %v1577_v28 }
 0x4db   :  { %5309 = vmatpush3.bf16.msra.mxu1 %v5306_v58  ;;  %5285 = vmatpush3.bf16.msra.mxu0 %v5282_v34  ;;  %v1686_v58 = vld [vmem:[#allocation6 + $0x170] sm:$0xff]  ;;  %v5688_v34 = vld [vmem:[#allocation3 + $0x200] sm:$0xff]  }
 0x4dc   :  { %5311 = vmatprep.subr.bf16.mxu1 %v5310_v30  ;;  %5287 = vmatprep.subr.bf16.mxu0 %v5286_v19  ;;  %v5302_v61 = vpack.c.bf16 %v1687_v59, %v1686_v58 }
 0x4df   :  { %5313 = vmatpush3.bf16.msra.mxu1 %v5310_v30  ;;  %5289 = vmatpush3.bf16.msra.mxu0 %v5286_v19  ;;  %v5693_v19 = vld [vmem:[#allocation3 + $0x190] sm:$0xff]  }
 0x4e0   :  { %5315 = vmatprep.subr.bf16.mxu1 %v5314_v36  ;;  %5291 = vmatprep.subr.bf16.mxu0 %v5290_v31 }
 0x4e3   :  { %5317 = vmatpush3.bf16.msra.mxu1 %v5314_v36  ;;  %5293 = vmatpush3.bf16.msra.mxu0 %v5290_v31  ;;  %v5689_v36 = vld [vmem:[#allocation3 + $0x1c8] sm:$0xff]   ;;  %v5699_v31 = vld [vmem:[#allocation3 + $0x1a0] sm:$0xff]  }
 0x4e4   :  { %5319 = vmatprep.subr.bf16.mxu1 %v5318_v42  ;;  %5295 = vmatprep.subr.bf16.mxu0 %v5294_v50 }
 0x4e7   :  { %5321 = vmatpush3.bf16.msra.mxu1 %v5318_v42  ;;  %5297 = vmatpush3.bf16.msra.mxu0 %v5294_v50  ;;  %v5695_v42 = vld [vmem:[#allocation3 + $0x1d8] sm:$0xff]   ;;  %v5705_v50 = vld [vmem:[#allocation3 + $0x1b0] sm:$0xff]  }
 0x4e8   :  { %5323 = vmatprep.subr.bf16.mxu1 %v5322_v39  ;;  %5299 = vmatprep.subr.bf16.mxu0 %v5298_v56 }
 0x4eb   :  { %5325 = vmatpush3.bf16.msra.mxu1 %v5322_v39  ;;  %5301 = vmatpush3.bf16.msra.mxu0 %v5298_v56  ;;  %v5701_v39 = vld [vmem:[#allocation3 + $0x1e8] sm:$0xff]   ;;  %v1867_v56 = vand.u32 7, %v6053_v0 }
 0x4ec   :  { %5327 = vmatprep.subr.bf16.mxu1 %v5326_v52  ;;  %5303 = vmatprep.subr.bf16.mxu0 %v5302_v61 }
 0x4ed   :  { %vm6175_vm7 = vcmp.ne.s32.totalorder %v1867_v56, 0  ;;  %vm6183_vm9 = vcmp.ne.s32.totalorder %v1867_v56, 7  ;;  %v2205_v56 = vld [vmem:[#allocation6 + $0x268] sm:$0xff] }
 0x4ee   :  { %vm3759_vm11 = vmpackc.low %vm6175_vm7, %vm6179_vm8 }
 0x4ef   :  { %5329 = vmatpush3.bf16.msra.mxu1 %v5326_v52  ;;  %5305 = vmatpush3.bf16.msra.mxu0 %v5302_v61  ;;  %v5707_v52 = vld [vmem:[#allocation3 + $0x1f8] sm:$0xff]   ;;  %vm3764_vm12 = vmpackc.low %vm6183_vm9, %vm6187_vm10 }
 0x4f0   :  { %5331 = vmatprep.subr.bf16.mxu1 %v5330_v60  ;;  %4050 = vmatprep.subr.bf16.mxu0 %v5686_v3 }
 0x4f3   :  { %5333 = vmatpush3.bf16.msra.mxu1 %v5330_v60 }
 0x4f4   :  { %5335 = vmatprep.subr.bf16.mxu1 %v5334_v2 }
 0x4f7   :  { %5337 = vmatpush3.bf16.msra.mxu1 %v5334_v2  ;;  %v2223_v2 = vld [vmem:[#allocation6 + $0x2f8] sm:$0xff] }
 0x4f8   :  { %4646 = vmatprep.subr.bf16.mxu1 %v5823_v21 }
 0x5a5   :  { %v1564_v5 = vpop.f32.mrb[30].mxu0 }
 0x5a6   :  { %v4540_v6 = vpop.f32.mrb[31].mxu0  ;;  %v1571_v7 = vrot.slane %v1564_v5, %v6031_v17  ;;  %v2193_v5 = vld [vmem:[#allocation6 + $0x208] sm:$0xff] }
 0x5a7   :  { %v2208_v6 = vld [vmem:[#allocation6 + $0x280] sm:$0xff] }
 0x5a8   :  { %v1572_v8 = vmul.f32 %v1571_v7, %v6097_v1  ;;  %v1573_v10 = vmul.f32 %v1571_v7, %v6099_v4  ;;  %v1574_v11 = vmul.f32 %v1571_v7, %v6107_v14  ;;  %v1575_v12 = vmul.f32 %v1571_v7, %v6109_v22  ;;  %v2209_v7 = vld [vmem:[#allocation6 + $0x288] sm:$0xff] }
 0x5ad   :  { %v1645_v9 = vpop.f32.mrb[20].mxu1 }
 0x5ae   :  { %v1652_v13 = vrot.slane %v1645_v9, %v6031_v17  ;;  %v4575_v20 = vpop.f32.mrb[21].mxu1  ;;  %v6227_v9 = vld [vmem:[#allocation6 + $0x800] sm:$0xff] }
 0x5af   :  { %v5339_v20 = vpack.c.bf16 %v2193_v5, %v2192_v62 }
 0x5b0   :  { %v1653_v18 = vadd.f32 %v1652_v13, %v1572_v8  ;;  %v1654_v23 = vadd.f32 %v1652_v13, %v1573_v10  ;;  %v1655_v24 = vadd.f32 %v1652_v13, %v1574_v11  ;;  %v1656_v25 = vadd.f32 %v1652_v13, %v1575_v12 }
 0x5b2   :  { %v1657_v27 = vmax.f32 %v1653_v18, 0.0  ;;  %v1658_v28 = vmax.f32 %v1654_v23, 0.0  ;;  %v1659_v30 = vmax.f32 %v1655_v24, 0.0  ;;  %v1660_v29 = vmax.f32 %v1656_v25, 0.0 }
 0x5b3   :  { %v5363_v18 = vpack.c.bf16 %v2209_v7, %v2208_v6  ;;  %v5710_v6 = vld [vmem:[#allocation3 + $0x280] sm:$0xff]   ;;  %v1957_v7 = vsub.s32 1, %v5872_v16 }
 0x5b4   :  { %1661 = vst [vmem:[#allocation2] sm:$0xff] %v1657_v27  ;;  %1662 = vst [vmem:[#allocation2 + $0x8] sm:$0xff] %v1658_v28  ;;  %v2194_v28 = vld [vmem:[#allocation6 + $0x210] sm:$0xff] }
 0x5b5   :  { %1663 = vst [vmem:[#allocation2 + $0x10] sm:$0xff] %v1659_v30  ;;  %1664 = vst [vmem:[#allocation2 + $0x18] sm:$0xff] %v1660_v29  ;;  %v1958_v10 = vrot.slane %v6227_v9, %v1957_v7  ;;  %v2739_v7 = vld [vmem:[#allocation6 + $0x510] sm:$0xff] }
 0x5bb   :  { %v1665_v1 = vld [vmem:[#allocation2] ss:$2 sm:$0xff]  ;;  %v1668_v4 = vld [vmem:[#allocation2 + $0x1] ss:$2 sm:$0xff] }
 0x5bc   :  { %v1667_v14 = vld [vmem:[#allocation2 + $0x10] ss:$2 sm:$0xff]  ;;  %v1670_v32 = vmax.f32 %v1665_v1, %v1668_v4  ;;  %v1669_v22 = vld [vmem:[#allocation2 + $0x11] ss:$2 sm:$0xff] }
 0x5bd   :  { %v1671_v35 = vmax.f32 %v1667_v14, %v1669_v22  ;;  %v2195_v1 = vld [vmem:[#allocation6 + $0x218] sm:$0xff]  ;;  %v2210_v4 = vld [vmem:[#allocation6 + $0x290] sm:$0xff] }
 0x5be   :  { %4608 = vmatprep.mubr.f32.mxu0 %v1670_v32  ;;  %4643 = vmatprep.mubr.f32.mxu1 %v1670_v32  ;;  %v2211_v14 = vld [vmem:[#allocation6 + $0x298] sm:$0xff]  ;;  %v5342_v32 = vpack.c.bf16 %v2195_v1, %v2194_v28 }
 0x5bf   :  { %4609 = vmatmul.mubr.f32.vlgmr.msra.gmra.mrb[32].mxu0 %v1671_v35  ;;  %4644 = vmatmul.mubr.f32.vlgmr.msra.gmra.mrb[22].mxu1 %v1671_v35  ;;  %v5366_v22 = vpack.c.bf16 %v2211_v14, %v2210_v4  ;;  %v2212_v35 = vld [vmem:[#allocation6 + $0x2a0] sm:$0xff] }
 0x5c0   :  { %4051 = vmatpush3.bf16.msra.mxu0 %v5687_v33  ;;  %4647 = vmatpush3.bf16.msra.mxu1 %v5688_v34  ;;  %v2196_v33 = vld [vmem:[#allocation6 + $0x220] sm:$0xff]  ;;  %v2197_v34 = vld [vmem:[#allocation6 + $0x228] sm:$0xff] }
 0x5c1   :  { %4052 = vmatprep.subr.bf16.mxu0 %v5689_v36  ;;  %4648 = vmatprep.subr.bf16.mxu1 %v5823_v21  ;;  %v2213_v36 = vld [vmem:[#allocation6 + $0x2a8] sm:$0xff]  ;;  %v5711_v14 = vld [vmem:[#allocation3 + $0x240] sm:$0xff]  }
 0x5c2   :  { %4662 = vmatprep.mubr.msk.bf16.mxu1 %vm5826_vm6, %v5823_v21 }
 0x5c4   :  { %4053 = vmatpush3.bf16.msra.mxu0 %v5690_v37  ;;  %4649 = vmatpush3.bf16.msra.mxu1 %v5691_v38  ;;  %v5345_v37 = vpack.c.bf16 %v2197_v34, %v2196_v33  ;;  %v5369_v38 = vpack.c.bf16 %v2213_v36, %v2212_v35  ;;  %v5712_v33 = vld [vmem:[#allocation3 + $0x2c0] sm:$0xff]   ;;  %v5713_v35 = vld [vmem:[#allocation3 + $0x288] sm:$0xff]  }
 0x5c5   :  { %4054 = vmatprep.subr.bf16.mxu0 %v5692_v40  ;;  %4650 = vmatprep.subr.bf16.mxu1 %v5823_v21  ;;  %v2198_v40 = vld [vmem:[#allocation6 + $0x230] sm:$0xff]  ;;  %v5714_v36 = vld [vmem:[#allocation3 + $0x248] sm:$0xff]  }
 0x5c8   :  { %4055 = vmatpush3.bf16.msra.mxu0 %v5693_v19  ;;  %4651 = vmatpush3.bf16.msra.mxu1 %v5694_v41  ;;  %v2199_v19 = vld [vmem:[#allocation6 + $0x238] sm:$0xff]  ;;  %v2214_v41 = vld [vmem:[#allocation6 + $0x2b0] sm:$0xff] }
 0x5c9   :  { %4056 = vmatprep.subr.bf16.mxu0 %v5695_v42  ;;  %4652 = vmatprep.subr.bf16.mxu1 %v5823_v21  ;;  %v5348_v42 = vpack.c.bf16 %v2199_v19, %v2198_v40  ;;  %v5717_v40 = vld [vmem:[#allocation3 + $0x250] sm:$0xff]  }
 0x5ca   :  { %v5718_v19 = vld [vmem:[#allocation3 + $0x2d0] sm:$0xff]  }
 0x5cc   :  { %4057 = vmatpush3.bf16.msra.mxu0 %v5696_v43  ;;  %4653 = vmatpush3.bf16.msra.mxu1 %v5697_v44  ;;  %v2215_v43 = vld [vmem:[#allocation6 + $0x2b8] sm:$0xff] }
 0x5cd   :  { %4058 = vmatprep.subr.bf16.mxu0 %v5698_v45  ;;  %4654 = vmatprep.subr.bf16.mxu1 %v5823_v21  ;;  %v5372_v44 = vpack.c.bf16 %v2215_v43, %v2214_v41  ;;  %v2200_v45 = vld [vmem:[#allocation6 + $0x240] sm:$0xff]  ;;  %v5719_v41 = vld [vmem:[#allocation3 + $0x298] sm:$0xff]  }
 0x5ce   :  { %v5721_v43 = vld [vmem:[#allocation3 + $0x2d8] sm:$0xff]  }
 0x5d0   :  { %4059 = vmatpush3.bf16.msra.mxu0 %v5699_v31  ;;  %4655 = vmatpush3.bf16.msra.mxu1 %v5700_v46  ;;  %v2201_v31 = vld [vmem:[#allocation6 + $0x248] sm:$0xff]  ;;  %v2216_v46 = vld [vmem:[#allocation6 + $0x2c0] sm:$0xff] }
 0x5d1   :  { %4060 = vmatprep.subr.bf16.mxu0 %v5701_v39  ;;  %4656 = vmatprep.subr.bf16.mxu1 %v5823_v21  ;;  %v5351_v39 = vpack.c.bf16 %v2201_v31, %v2200_v45  ;;  %v5723_v45 = vld [vmem:[#allocation3 + $0x260] sm:$0xff]  }
 0x5d2   :  { %v5724_v31 = vld [vmem:[#allocation3 + $0x2e0] sm:$0xff]  }
 0x5d4   :  { %4061 = vmatpush3.bf16.msra.mxu0 %v5702_v47  ;;  %4657 = vmatpush3.bf16.msra.mxu1 %v5703_v48  ;;  %v2217_v47 = vld [vmem:[#allocation6 + $0x2c8] sm:$0xff] }
 0x5d5   :  { %4658 = vmatprep.subr.bf16.mxu1 %v5823_v21  ;;  %4062 = vmatprep.subr.bf16.mxu0 %v5704_v49  ;;  %v5375_v48 = vpack.c.bf16 %v2217_v47, %v2216_v46  ;;  %v2202_v49 = vld [vmem:[#allocation6 + $0x250] sm:$0xff]  ;;  %v5725_v46 = vld [vmem:[#allocation3 + $0x2a8] sm:$0xff]  }
 0x5d6   :  { %v5727_v47 = vld [vmem:[#allocation3 + $0x2e8] sm:$0xff]  }
 0x5d8   :  { %4063 = vmatpush3.bf16.msra.mxu0 %v5705_v50  ;;  %4659 = vmatpush3.bf16.msra.mxu1 %v5706_v51  ;;  %v2203_v50 = vld [vmem:[#allocation6 + $0x258] sm:$0xff]  ;;  %v2218_v51 = vld [vmem:[#allocation6 + $0x2d0] sm:$0xff] }
 0x5d9   :  { %4660 = vmatprep.subr.bf16.mxu1 %v5823_v21  ;;  %4064 = vmatprep.subr.bf16.mxu0 %v5707_v52  ;;  %v5354_v52 = vpack.c.bf16 %v2203_v50, %v2202_v49  ;;  %v5729_v49 = vld [vmem:[#allocation3 + $0x270] sm:$0xff]  }
 0x5da   :  { %v5730_v50 = vld [vmem:[#allocation3 + $0x2f0] sm:$0xff]  }
 0x5dc   :  { %4065 = vmatpush3.bf16.msra.mxu0 %v5708_v53  ;;  %4661 = vmatpush3.bf16.msra.mxu1 %v5709_v54  ;;  %v2219_v53 = vld [vmem:[#allocation6 + $0x2d8] sm:$0xff] }
 0x5dd   :  { %5338 = vmatprep.subr.bf16.mxu0 %v5824_v15  ;;  %5362 = vmatprep.subr.bf16.mxu1 %v5824_v15  ;;  %v5378_v54 = vpack.c.bf16 %v2219_v53, %v2218_v51  ;;  %v5731_v51 = vld [vmem:[#allocation3 + $0x2b8] sm:$0xff]  }
 0x5de   :  { %v5733_v53 = vld [vmem:[#allocation3 + $0x2f8] sm:$0xff]  }
 0x692   :  { %v4610_v57 = vpop.f32.mrb[32].mxu0  ;;  %v4645_v58 = vpop.f32.mrb[22].mxu1 }
 0x693   :  { %v1855_v59 = vmax.f32 %v4610_v57, %v4645_v58  ;;  %v1770_v60 = vpop.f32.mrb[33].mxu0  ;;  %v1845_v61 = vpop.f32.mrb[23].mxu1  ;;  %v2220_v57 = vld [vmem:[#allocation6 + $0x2e0] sm:$0xff]  ;;  %v5357_v58 = vpack.c.bf16 %v2205_v56, %v2204_v55 }
 0x694   :  { %v1854_v63 = vmax.f32 %v1770_v60, %v1845_v61  ;;  %v2206_v60 = vld [vmem:[#allocation6 + $0x270] sm:$0xff]  ;;  %v2207_v61 = vld [vmem:[#allocation6 + $0x278] sm:$0xff] }
 0x695   :  { %v1883_v8 = vrot.slane %v1855_v59, 7  ;;  %v1895_v0 = vrot.slane %v1855_v59, 1  ;;  %v5360_v3 = vpack.c.bf16 %v2207_v61, %v2206_v60 }
 0x696   :  { %v1882_v11 = vrot.slane %v1854_v63, 7  ;;  %v1894_v12 = vrot.slane %v1854_v63, 1  ;;  %v1953_v13 = vpack.c.bf16 %v1855_v59, %v1854_v63  ;;  %v2221_v59 = vld [vmem:[#allocation6 + $0x2e8] sm:$0xff]  ;;  %v2222_v63 = vld [vmem:[#allocation6 + $0x2f0] sm:$0xff] }
 0x697   :  { %v5381_v62 = vpack.c.bf16 %v2221_v59, %v2220_v57  ;;  %v5384_v5 = vpack.c.bf16 %v2223_v2, %v2222_v63 }
 0x698   :  { %v1884_v23 = vsel %vm175_vm0, %v1882_v11, %v1883_v8  ;;  %v1885_v24 = vsel %vm175_vm0, %v1883_v8, %v1882_v11  ;;  %v1896_v25 = vsel %vm224_vm1, %v1894_v12, %v1895_v0  ;;  %v1897_v27 = vsel %vm224_vm1, %v1895_v0, %v1894_v12  ;;  %2135 = vmatprep.mubr.bf16.mxu0 %v1953_v13 }
 0x699   :  { %v3760_v30 = vpack.c.bf16 %v1884_v23, %v1885_v24  ;;  %v3765_v29 = vpack.c.bf16 %v1897_v27, %v1896_v25 }
 0x69b   :  { %3761 = vmatmul.mubr.msk.bf16.vlgmr.msra.gmra.mrb[36].mxu0 %vm3759_vm11, %v3760_v30  ;;  %4663 = vmatmul.mubr.msk.bf16.vlgmr.msra.gmra.mrb[24].mxu1 %vm3764_vm12, %v3765_v29 }
 0x69c   :  { %5340 = vmatpush3.bf16.msra.mxu0 %v5339_v20  ;;  %5364 = vmatpush3.bf16.msra.mxu1 %v5363_v18 }
 0x69d   :  { %5341 = vmatprep.subr.bf16.mxu0 %v5824_v15  ;;  %5365 = vmatprep.subr.bf16.mxu1 %v5824_v15 }
 0x69e   :  { %4698 = vmatprep.mubr.msk.f32.mxu0 %vm5826_vm6, %v5823_v21  ;;  %4733 = vmatprep.mubr.msk.f32.mxu1 %vm5826_vm6, %v5823_v21 }
 0x6a0   :  { %5343 = vmatpush3.bf16.msra.mxu0 %v5342_v32  ;;  %5367 = vmatpush3.bf16.msra.mxu1 %v5366_v22 }
 0x6a1   :  { %5344 = vmatprep.subr.bf16.mxu0 %v5824_v15  ;;  %5368 = vmatprep.subr.bf16.mxu1 %v5824_v15 }
 0x6a4   :  { %5346 = vmatpush3.bf16.msra.mxu0 %v5345_v37  ;;  %5370 = vmatpush3.bf16.msra.mxu1 %v5369_v38  ;;  %v5715_v37 = vld [vmem:[#allocation3 + $0x2c8] sm:$0xff]   ;;  %v5716_v38 = vld [vmem:[#allocation3 + $0x290] sm:$0xff]  }
 0x6a5   :  { %5347 = vmatprep.subr.bf16.mxu0 %v5824_v15  ;;  %5371 = vmatprep.subr.bf16.mxu1 %v5824_v15 }
 0x6a8   :  { %5349 = vmatpush3.bf16.msra.mxu0 %v5348_v42  ;;  %5373 = vmatpush3.bf16.msra.mxu1 %v5372_v44  ;;  %v5720_v42 = vld [vmem:[#allocation3 + $0x258] sm:$0xff]   ;;  %v5722_v44 = vld [vmem:[#allocation3 + $0x2a0] sm:$0xff]  }
 0x6a9   :  { %5350 = vmatprep.subr.bf16.mxu0 %v5824_v15  ;;  %5374 = vmatprep.subr.bf16.mxu1 %v5824_v15 }
 0x6ac   :  { %5352 = vmatpush3.bf16.msra.mxu0 %v5351_v39  ;;  %5376 = vmatpush3.bf16.msra.mxu1 %v5375_v48  ;;  %v5726_v39 = vld [vmem:[#allocation3 + $0x268] sm:$0xff]   ;;  %v5728_v48 = vld [vmem:[#allocation3 + $0x2b0] sm:$0xff]  }
 0x6ad   :  { %5353 = vmatprep.subr.bf16.mxu0 %v5824_v15  ;;  %5377 = vmatprep.subr.bf16.mxu1 %v5824_v15 }
 0x6b0   :  { %5355 = vmatpush3.bf16.msra.mxu0 %v5354_v52  ;;  %5379 = vmatpush3.bf16.msra.mxu1 %v5378_v54  ;;  %v5732_v52 = vld [vmem:[#allocation3 + $0x278] sm:$0xff]   ;;  %v2369_v54 = vand.u32 3, %v5872_v16 }
 0x6b1   :  { %5356 = vmatprep.subr.bf16.mxu0 %v5824_v15  ;;  %5380 = vmatprep.subr.bf16.mxu1 %v5824_v15 }
 0x6b2   :  { %vm3814_vm0 = vcmp.ne.s32.totalorder %v2369_v54, 0  ;;  %vm3815_vm1 = vcmp.ne.s32.totalorder %v2369_v54, 3 }
 0x6b3   :  { %vm3793_vm13 = vmpackc.low %vm3814_vm0, %vm3814_vm0 }
 0x6b4   :  { %5358 = vmatpush3.bf16.msra.mxu0 %v5357_v58  ;;  %5382 = vmatpush3.bf16.msra.mxu1 %v5381_v62  ;;  %vm3798_vm14 = vmpackc.low %vm3815_vm1, %vm3815_vm1 }
 0x6b5   :  { %5359 = vmatprep.subr.bf16.mxu0 %v5824_v15  ;;  %5383 = vmatprep.subr.bf16.mxu1 %v5824_v15 }
 0x6b8   :  { %5361 = vmatpush3.bf16.msra.mxu0 %v5360_v3  ;;  %5385 = vmatpush3.bf16.msra.mxu1 %v5384_v5  ;;  %v2737_v3 = vld [vmem:[#allocation6 + $0x500] sm:$0xff]  ;;  %v2738_v5 = vld [vmem:[#allocation6 + $0x508] sm:$0xff] }
 0x6b9   :  { %4736 = vmatprep.subr.bf16.mxu1 %v5823_v21  ;;  %4115 = vmatprep.subr.bf16.mxu0 %v5710_v6  ;;  %v5387_v6 = vpack.c.bf16 %v2738_v5, %v2737_v3  ;;  %v2927_v3 = vld [vmem:[#allocation6 + $0x5f8] sm:$0xff] }
 0x76e   :  { %v4066_v8 = vpop.f32.mrb[36].mxu0  ;;  %v2178_v0 = vpop.f32.mrb[24].mxu1 }
 0x76f   :  { %v4067_v11 = vpop.f32.mrb[37].mxu0  ;;  %v4664_v12 = vpop.f32.mrb[25].mxu1 }
 0x770   :  { %v4068_v13 = vadd.f32 %v4067_v11, %v4066_v8  ;;  %v4069_v20 = vpop.f32.mrb[38].mxu0  ;;  %v2181_v18 = vpop.f32.mrb[26].mxu1  ;;  %v2740_v8 = vld [vmem:[#allocation6 + $0x518] sm:$0xff]  ;;  %v2742_v11 = vld [vmem:[#allocation6 + $0x528] sm:$0xff] }
 0x771   :  { %v4070_v23 = vpop.f32.mrb[39].mxu0  ;;  %v4665_v24 = vpop.f32.mrb[27].mxu1 }
 0x772   :  { %v2138_v25 = vadd.f32 %v4068_v13, %v1958_v10  ;;  %v4071_v27 = vadd.f32 %v4070_v23, %v4069_v20  ;;  %v2743_v13 = vld [vmem:[#allocation6 + $0x530] sm:$0xff]  ;;  %v2744_v20 = vld [vmem:[#allocation6 + $0x538] sm:$0xff]  ;;  %v2745_v23 = vld [vmem:[#allocation6 + $0x540] sm:$0xff] }
 0x773   :  { %v2746_v24 = vld [vmem:[#allocation6 + $0x548] sm:$0xff] }
 0x774   :  { %v2179_v28 = vadd.f32 %v2178_v0, %v2138_v25  ;;  %v2141_v30 = vadd.f32 %v4071_v27, %v1958_v10  ;;  %v5390_v0 = vpack.c.bf16 %v2740_v8, %v2739_v7  ;;  %v2741_v10 = vld [vmem:[#allocation6 + $0x520] sm:$0xff]  ;;  %v5399_v25 = vpack.c.bf16 %v2746_v24, %v2745_v23  ;;  %v2747_v27 = vld [vmem:[#allocation6 + $0x550] sm:$0xff] }
 0x775   :  { %v5393_v12 = vpack.c.bf16 %v2742_v11, %v2741_v10 }
 0x776   :  { %v2185_v29 = vmax.f32 %v2179_v28, 0.0  ;;  %v2182_v1 = vadd.f32 %v2181_v18, %v2141_v30  ;;  %v5396_v18 = vpack.c.bf16 %v2744_v20, %v2743_v13  ;;  %v2748_v28 = vld [vmem:[#allocation6 + $0x558] sm:$0xff] }
 0x777   :  { %v5402_v30 = vpack.c.bf16 %v2748_v28, %v2747_v27  ;;  %v3087_v27 = vld [vmem:[#allocation6 + $0x308] sm:$0xff] }
 0x778   :  { %2187 = vst [vmem:[#allocation2] sm:$0xff] %v2185_v29  ;;  %v2186_v4 = vmax.f32 %v2182_v1, 0.0  ;;  %v2749_v29 = vld [vmem:[#allocation6 + $0x560] sm:$0xff]  ;;  %v2750_v1 = vld [vmem:[#allocation6 + $0x568] sm:$0xff] }
 0x77a   :  { %2188 = vst [vmem:[#allocation2 + $0x8] sm:$0xff] %v2186_v4  ;;  %v5405_v4 = vpack.c.bf16 %v2750_v1, %v2749_v29  ;;  %v3088_v1 = vld [vmem:[#allocation6 + $0x310] sm:$0xff] }
 0x781   :  { %v2189_v32 = vld [vmem:[#allocation2] ss:$2 sm:$0xff]  ;;  %v2190_v22 = vld [vmem:[#allocation2 + $0x1] ss:$2 sm:$0xff] }
 0x782   :  { %v2191_v34 = vmax.f32 %v2189_v32, %v2190_v22  ;;  %v2752_v32 = vld [vmem:[#allocation6 + $0x578] sm:$0xff] }
 0x784   :  { %4699 = vmatmul.mubr.f32.vlgmr.msra.gmra.mrb[34].mxu0 %v2191_v34  ;;  %4734 = vmatmul.mubr.f32.vlgmr.msra.gmra.mrb[28].mxu1 %v2191_v34 }
 0x785   :  { %4116 = vmatpush3.bf16.msra.mxu0 %v5711_v14  ;;  %4737 = vmatpush3.bf16.msra.mxu1 %v5712_v33  ;;  %v2751_v14 = vld [vmem:[#allocation6 + $0x570] sm:$0xff] }
 0x786   :  { %4117 = vmatprep.subr.bf16.mxu0 %v5713_v35  ;;  %4738 = vmatprep.subr.bf16.mxu1 %v5823_v21  ;;  %v5408_v22 = vpack.c.bf16 %v2752_v32, %v2751_v14 }
 0x787   :  { %4752 = vmatprep.mubr.msk.bf16.mxu1 %vm5826_vm6, %v5823_v21 }
 0x789   :  { %4118 = vmatpush3.bf16.msra.mxu0 %v5714_v36  ;;  %4739 = vmatpush3.bf16.msra.mxu1 %v5715_v37 }
 0x78a   :  { %4119 = vmatprep.subr.bf16.mxu0 %v5716_v38  ;;  %4740 = vmatprep.subr.bf16.mxu1 %v5823_v21 }
 0x78d   :  { %4120 = vmatpush3.bf16.msra.mxu0 %v5717_v40  ;;  %4741 = vmatpush3.bf16.msra.mxu1 %v5718_v19 }
 0x78e   :  { %4121 = vmatprep.subr.bf16.mxu0 %v5719_v41  ;;  %4742 = vmatprep.subr.bf16.mxu1 %v5823_v21 }
 0x791   :  { %4122 = vmatpush3.bf16.msra.mxu0 %v5720_v42  ;;  %4743 = vmatpush3.bf16.msra.mxu1 %v5721_v43 }
 0x792   :  { %4123 = vmatprep.subr.bf16.mxu0 %v5722_v44  ;;  %4744 = vmatprep.subr.bf16.mxu1 %v5823_v21  ;;  %v2913_v44 = vld [vmem:[#allocation6 + $0x588] sm:$0xff] }
 0x795   :  { %4124 = vmatpush3.bf16.msra.mxu0 %v5723_v45  ;;  %4745 = vmatpush3.bf16.msra.mxu1 %v5724_v31 }
 0x796   :  { %4125 = vmatprep.subr.bf16.mxu0 %v5725_v46  ;;  %4746 = vmatprep.subr.bf16.mxu1 %v5823_v21 }
 0x799   :  { %4126 = vmatpush3.bf16.msra.mxu0 %v5726_v39  ;;  %4747 = vmatpush3.bf16.msra.mxu1 %v5727_v47  ;;  %v2914_v39 = vld [vmem:[#allocation6 + $0x590] sm:$0xff]  ;;  %v2915_v47 = vld [vmem:[#allocation6 + $0x598] sm:$0xff] }
 0x79a   :  { %4127 = vmatprep.subr.bf16.mxu0 %v5728_v48  ;;  %4748 = vmatprep.subr.bf16.mxu1 %v5823_v21  ;;  %v5438_v48 = vpack.c.bf16 %v2915_v47, %v2914_v39  ;;  %v3108_v39 = vld [vmem:[#allocation6 + $0x3b0] sm:$0xff] }
 0x79d   :  { %4128 = vmatpush3.bf16.msra.mxu0 %v5729_v49  ;;  %4749 = vmatpush3.bf16.msra.mxu1 %v5730_v50  ;;  %v2916_v49 = vld [vmem:[#allocation6 + $0x5a0] sm:$0xff]  ;;  %v2917_v50 = vld [vmem:[#allocation6 + $0x5a8] sm:$0xff] }
 0x79e   :  { %4750 = vmatprep.subr.bf16.mxu1 %v5823_v21  ;;  %4129 = vmatprep.subr.bf16.mxu0 %v5731_v51  ;;  %v5441_v51 = vpack.c.bf16 %v2917_v50, %v2916_v49  ;;  %v3094_v50 = vld [vmem:[#allocation6 + $0x340] sm:$0xff] }
 0x7a1   :  { %4130 = vmatpush3.bf16.msra.mxu0 %v5732_v52  ;;  %4751 = vmatpush3.bf16.msra.mxu1 %v5733_v53  ;;  %v2918_v52 = vld [vmem:[#allocation6 + $0x5b0] sm:$0xff]  ;;  %v2919_v53 = vld [vmem:[#allocation6 + $0x5b8] sm:$0xff] }
 0x7a2   :  { %5410 = vmatprep.subr.bf16.mxu1 %v5824_v15  ;;  %v5444_v54 = vpack.c.bf16 %v2919_v53, %v2918_v52  ;;  %v3110_v52 = vld [vmem:[#allocation6 + $0x3c0] sm:$0xff] }
 0x857   :  { %v2290_v55 = vpop.f32.mrb[34].mxu0  ;;  %v2360_v56 = vpop.f32.mrb[28].mxu1 }
 0x858   :  { %v2364_v57 = vmax.f32 %v2290_v55, %v2360_v56  ;;  %v4700_v58 = vpop.f32.mrb[35].mxu0  ;;  %v4735_v59 = vpop.f32.mrb[29].mxu1  ;;  %v2920_v55 = vld [vmem:[#allocation6 + $0x5c0] sm:$0xff]  ;;  %v2921_v56 = vld [vmem:[#allocation6 + $0x5c8] sm:$0xff] }
 0x859   :  { %v2922_v58 = vld [vmem:[#allocation6 + $0x5d0] sm:$0xff]  ;;  %v2923_v59 = vld [vmem:[#allocation6 + $0x5d8] sm:$0xff] }
 0x85a   :  { %v2378_v60 = vrot.slane %v2364_v57, 7  ;;  %v2383_v61 = vrot.slane %v2364_v57, 1  ;;  %v2436_v62 = vpack.c.bf16 %v2364_v57, %v2364_v57  ;;  %v5447_v57 = vpack.c.bf16 %v2921_v56, %v2920_v55  ;;  %v3096_v56 = vld [vmem:[#allocation6 + $0x350] sm:$0xff] }
 0x85c   :  { %v3794_v63 = vpack.c.bf16 %v2378_v60, %v2378_v60  ;;  %v3799_v2 = vpack.c.bf16 %v2383_v61, %v2383_v61  ;;  %2614 = vmatprep.mubr.bf16.mxu0 %v2436_v62  ;;  %v5450_v60 = vpack.c.bf16 %v2923_v59, %v2922_v58  ;;  %v2924_v61 = vld [vmem:[#allocation6 + $0x5e0] sm:$0xff]  ;;  %v2925_v62 = vld [vmem:[#allocation6 + $0x5e8] sm:$0xff]  ;;  %v3112_v58 = vld [vmem:[#allocation6 + $0x3d0] sm:$0xff] }
 0x85e   :  { %3795 = vmatmul.mubr.msk.bf16.vlgmr.msra.gmra.mrb[40].mxu0 %vm3793_vm13, %v3794_v63  ;;  %4753 = vmatmul.mubr.msk.bf16.vlgmr.msra.gmra.mrb[32].mxu1 %vm3798_vm14, %v3799_v2  ;;  %v5453_v63 = vpack.c.bf16 %v2925_v62, %v2924_v61  ;;  %v2926_v2 = vld [vmem:[#allocation6 + $0x5f0] sm:$0xff]  ;;  %v3098_v62 = vld [vmem:[#allocation6 + $0x360] sm:$0xff] }
 0x85f   :  { %2730 = vmatprep.mubr.f32.mxu0 %v5823_v21  ;;  %4823 = vmatprep.mubr.msk.f32.mxu1 %vm5826_vm6, %v5823_v21  ;;  %v5456_v5 = vpack.c.bf16 %v2927_v3, %v2926_v2  ;;  %v3114_v2 = vld [vmem:[#allocation6 + $0x3e0] sm:$0xff] }
 0x860   :  { %5412 = vmatpush3.bf16.msra.mxu1 %v5387_v6 }
 0x861   :  { %5413 = vmatprep.subr.bf16.mxu1 %v5824_v15 }
 0x864   :  { %5415 = vmatpush3.bf16.msra.mxu1 %v5390_v0 }
 0x865   :  { %5416 = vmatprep.subr.bf16.mxu1 %v5824_v15 }
 0x868   :  { %5418 = vmatpush3.bf16.msra.mxu1 %v5393_v12 }
 0x869   :  { %5419 = vmatprep.subr.bf16.mxu1 %v5824_v15 }
 0x86c   :  { %5421 = vmatpush3.bf16.msra.mxu1 %v5396_v18 }
 0x86d   :  { %5422 = vmatprep.subr.bf16.mxu1 %v5824_v15 }
 0x870   :  { %5424 = vmatpush3.bf16.msra.mxu1 %v5399_v25 }
 0x871   :  { %5425 = vmatprep.subr.bf16.mxu1 %v5824_v15 }
 0x874   :  { %5427 = vmatpush3.bf16.msra.mxu1 %v5402_v30 }
 0x875   :  { %5428 = vmatprep.subr.bf16.mxu1 %v5824_v15 }
 0x878   :  { %5430 = vmatpush3.bf16.msra.mxu1 %v5405_v4 }
 0x879   :  { %5431 = vmatprep.subr.bf16.mxu1 %v5824_v15 }
 0x87c   :  { %5433 = vmatpush3.bf16.msra.mxu1 %v5408_v22 }
 0x87d   :  { %5458 = vmatprep.subr.bf16.mxu1 %v5824_v15 }
 0x931   :  { %v4131_v33 = vpop.f32.mrb[40].mxu0  ;;  %v2656_v34 = vpop.f32.mrb[32].mxu1 }
 0x932   :  { %v4132_v35 = vpop.f32.mrb[41].mxu0  ;;  %v4754_v36 = vpop.f32.mrb[33].mxu1 }
 0x933   :  { %v4133_v37 = vadd.f32 %v4132_v35, %v4131_v33  ;;  %v4134_v38 = vpop.f32.mrb[42].mxu0  ;;  %v2659_v40 = vpop.f32.mrb[34].mxu1  ;;  %v3102_v33 = vld [vmem:[#allocation6 + $0x380] sm:$0xff] }
 0x934   :  { %v4135_v19 = vpop.f32.mrb[43].mxu0  ;;  %v4755_v41 = vpop.f32.mrb[35].mxu1  ;;  %v3104_v38 = vld [vmem:[#allocation6 + $0x390] sm:$0xff]  ;;  %v3105_v40 = vld [vmem:[#allocation6 + $0x398] sm:$0xff] }
 0x935   :  { %v6252_v42 = vadd.f32 %v4133_v37, %v2656_v34  ;;  %v3103_v34 = vld [vmem:[#allocation6 + $0x388] sm:$0xff]  ;;  %v5510_v19 = vpack.c.bf16 %v3105_v40, %v3104_v38  ;;  %v3090_v41 = vld [vmem:[#allocation6 + $0x320] sm:$0xff]  ;;  %v3266_v38 = vld [vmem:[#allocation6 + $0x610] sm:$0xff] }
 0x936   :  { %v5507_v36 = vpack.c.bf16 %v3103_v34, %v3102_v33  ;;  %v3267_v40 = vld [vmem:[#allocation6 + $0x618] sm:$0xff] }
 0x937   :  { %v2662_v43 = vmul.f32 %v6252_v42, %v6252_v42 }
 0x939   :  { %2666 = vmatprep.subr.mxu0 %v2662_v43  ;;  %v3106_v43 = vld [vmem:[#allocation6 + $0x3a0] sm:$0xff] }
 0x93a   :  { %2667 = vmatpush1.msra.mxu0 %v6252_v42 }
 0x93b   :  { %3801 = vmatmul.mubr.msk.f32.vlgmr.msra.gmra.mrb[44].mxu0 %vm2663_vm15, %v5825_v26  ;;  %5386 = vmatprep.subr.bf16.mxu0 %v5824_v15  ;;  %v2912_v26 = vld [vmem:[#allocation6 + $0x580] sm:$0xff] }
 0x93c   :  { %5388 = vmatpush3.bf16.msra.mxu0 %v5387_v6  ;;  %4788 = vmatprep.mubr.msk.f32.mxu0 %vm5826_vm6, %v5823_v21  ;;  %v5435_v45 = vpack.c.bf16 %v2913_v44, %v2912_v26  ;;  %v3107_v44 = vld [vmem:[#allocation6 + $0x3a8] sm:$0xff] }
 0x93d   :  { %5389 = vmatprep.subr.bf16.mxu0 %v5824_v15 }
 0x940   :  { %5391 = vmatpush3.bf16.msra.mxu0 %v5390_v0 }
 0x941   :  { %5392 = vmatprep.subr.bf16.mxu0 %v5824_v15 }
 0x944   :  { %5394 = vmatpush3.bf16.msra.mxu0 %v5393_v12 }
 0x945   :  { %5395 = vmatprep.subr.bf16.mxu0 %v5824_v15 }
 0x948   :  { %5397 = vmatpush3.bf16.msra.mxu0 %v5396_v18 }
 0x949   :  { %5398 = vmatprep.subr.bf16.mxu0 %v5824_v15 }
 0x94c   :  { %5400 = vmatpush3.bf16.msra.mxu0 %v5399_v25  ;;  %v3086_v25 = vld [vmem:[#allocation6 + $0x300] sm:$0xff] }
 0x94d   :  { %5401 = vmatprep.subr.bf16.mxu0 %v5824_v15 }
 0x950   :  { %5403 = vmatpush3.bf16.msra.mxu0 %v5402_v30  ;;  %v5483_v30 = vpack.c.bf16 %v3087_v27, %v3086_v25 }
 0x951   :  { %5404 = vmatprep.subr.bf16.mxu0 %v5824_v15 }
 0x954   :  { %5406 = vmatpush3.bf16.msra.mxu0 %v5405_v4  ;;  %v3089_v4 = vld [vmem:[#allocation6 + $0x318] sm:$0xff] }
 0x955   :  { %5407 = vmatprep.subr.bf16.mxu0 %v5824_v15  ;;  %v5486_v32 = vpack.c.bf16 %v3089_v4, %v3088_v1  ;;  %v3281_v1 = vld [vmem:[#allocation6 + $0x688] sm:$0xff]  ;;  %v3264_v4 = vld [vmem:[#allocation6 + $0x600] sm:$0xff] }
 0x958   :  { %5409 = vmatpush3.bf16.msra.mxu0 %v5408_v22 }
 0x959   :  { %5434 = vmatprep.subr.bf16.mxu0 %v5824_v15 }
 0xa0e   :  { %v2732_v31 = vpop.f32.mrb[44].mxu0 }
 0xa0f   :  { %4789 = vmatmul.mubr.f32.vlgmr.msra.gmra.mrb[46].mxu0 %v2732_v31  ;;  %v2734_v46 = vpop.f32.mrb[45].mxu0  ;;  %v3092_v31 = vld [vmem:[#allocation6 + $0x330] sm:$0xff] }
 0xa10   :  { %4824 = vmatmul.mubr.f32.vlgmr.msra.gmra.mrb[30].mxu1 %v2734_v46  ;;  %5436 = vmatpush3.bf16.msra.mxu0 %v5435_v45  ;;  %v3093_v46 = vld [vmem:[#allocation6 + $0x338] sm:$0xff] }
 0xa11   :  { %5437 = vmatprep.subr.bf16.mxu0 %v5824_v15  ;;  %5460 = vmatpush3.bf16.msra.mxu1 %v5435_v45  ;;  %v5513_v45 = vpack.c.bf16 %v3107_v44, %v3106_v43  ;;  %v5492_v47 = vpack.c.bf16 %v3093_v46, %v3092_v31  ;;  %v3268_v43 = vld [vmem:[#allocation6 + $0x620] sm:$0xff]  ;;  %v3286_v31 = vld [vmem:[#allocation6 + $0x6b0] sm:$0xff]  ;;  %v3287_v46 = vld [vmem:[#allocation6 + $0x6b8] sm:$0xff] }
 0xa12   :  { %5461 = vmatprep.subr.bf16.mxu1 %v5824_v15  ;;  %4858 = vmatprep.mubr.msk.f32.mxu0 %vm5826_vm6, %v5823_v21 }
 0xa13   :  { %4893 = vmatprep.mubr.msk.f32.mxu1 %vm5826_vm6, %v5823_v21 }
 0xa14   :  { %5439 = vmatpush3.bf16.msra.mxu0 %v5438_v48 }
 0xa15   :  { %5463 = vmatpush3.bf16.msra.mxu1 %v5438_v48  ;;  %5440 = vmatprep.subr.bf16.mxu0 %v5824_v15  ;;  %v3109_v48 = vld [vmem:[#allocation6 + $0x3b8] sm:$0xff] }
 0xa16   :  { %5464 = vmatprep.subr.bf16.mxu1 %v5824_v15  ;;  %v5516_v49 = vpack.c.bf16 %v3109_v48, %v3108_v39  ;;  %v3270_v39 = vld [vmem:[#allocation6 + $0x630] sm:$0xff]  ;;  %v5540_v48 = vpack.c.bf16 %v3287_v46, %v3286_v31  ;;  %v3533_v31 = vld [vmem:[#allocation6 + $0x780] sm:$0xff]  ;;  %v3534_v46 = vld [vmem:[#allocation6 + $0x788] sm:$0xff] }
 0xa18   :  { %5442 = vmatpush3.bf16.msra.mxu0 %v5441_v51 }
 0xa19   :  { %5466 = vmatpush3.bf16.msra.mxu1 %v5441_v51  ;;  %5443 = vmatprep.subr.bf16.mxu0 %v5824_v15  ;;  %v3095_v51 = vld [vmem:[#allocation6 + $0x348] sm:$0xff] }
 0xa1a   :  { %5467 = vmatprep.subr.bf16.mxu1 %v5824_v15  ;;  %v5495_v53 = vpack.c.bf16 %v3095_v51, %v3094_v50  ;;  %v3288_v50 = vld [vmem:[#allocation6 + $0x6c0] sm:$0xff]  ;;  %v3289_v51 = vld [vmem:[#allocation6 + $0x6c8] sm:$0xff] }
 0xa1c   :  { %5445 = vmatpush3.bf16.msra.mxu0 %v5444_v54 }
 0xa1d   :  { %5469 = vmatpush3.bf16.msra.mxu1 %v5444_v54  ;;  %5446 = vmatprep.subr.bf16.mxu0 %v5824_v15  ;;  %v3111_v54 = vld [vmem:[#allocation6 + $0x3c8] sm:$0xff] }
 0xa1e   :  { %5470 = vmatprep.subr.bf16.mxu1 %v5824_v15  ;;  %v5519_v55 = vpack.c.bf16 %v3111_v54, %v3110_v52  ;;  %v3272_v52 = vld [vmem:[#allocation6 + $0x640] sm:$0xff]  ;;  %v5543_v54 = vpack.c.bf16 %v3289_v51, %v3288_v50  ;;  %v3538_v51 = vld [vmem:[#allocation6 + $0x7a8] sm:$0xff] }
 0xa1f   :  { %v3537_v50 = vld [vmem:[#allocation6 + $0x7a0] sm:$0xff] }
 0xa20   :  { %5448 = vmatpush3.bf16.msra.mxu0 %v5447_v57 }
 0xa21   :  { %5472 = vmatpush3.bf16.msra.mxu1 %v5447_v57  ;;  %5449 = vmatprep.subr.bf16.mxu0 %v5824_v15  ;;  %v3097_v57 = vld [vmem:[#allocation6 + $0x358] sm:$0xff] }
 0xa22   :  { %5473 = vmatprep.subr.bf16.mxu1 %v5824_v15  ;;  %v5498_v59 = vpack.c.bf16 %v3097_v57, %v3096_v56  ;;  %v3290_v56 = vld [vmem:[#allocation6 + $0x6d0] sm:$0xff]  ;;  %v3291_v57 = vld [vmem:[#allocation6 + $0x6d8] sm:$0xff] }
 0xa24   :  { %5451 = vmatpush3.bf16.msra.mxu0 %v5450_v60 }
 0xa25   :  { %5475 = vmatpush3.bf16.msra.mxu1 %v5450_v60  ;;  %5452 = vmatprep.subr.bf16.mxu0 %v5824_v15  ;;  %v3113_v60 = vld [vmem:[#allocation6 + $0x3d8] sm:$0xff] }
 0xa26   :  { %5476 = vmatprep.subr.bf16.mxu1 %v5824_v15  ;;  %v5522_v61 = vpack.c.bf16 %v3113_v60, %v3112_v58  ;;  %v3274_v58 = vld [vmem:[#allocation6 + $0x650] sm:$0xff]  ;;  %v3275_v60 = vld [vmem:[#allocation6 + $0x658] sm:$0xff] }
 0xa28   :  { %5454 = vmatpush3.bf16.msra.mxu0 %v5453_v63 }
 0xa29   :  { %5478 = vmatpush3.bf16.msra.mxu1 %v5453_v63  ;;  %5455 = vmatprep.subr.bf16.mxu0 %v5824_v15  ;;  %v3099_v63 = vld [vmem:[#allocation6 + $0x368] sm:$0xff] }
 0xa2a   :  { %5479 = vmatprep.subr.bf16.mxu1 %v5824_v15  ;;  %v5501_v3 = vpack.c.bf16 %v3099_v63, %v3098_v62  ;;  %v3292_v62 = vld [vmem:[#allocation6 + $0x6e0] sm:$0xff]  ;;  %v3293_v63 = vld [vmem:[#allocation6 + $0x6e8] sm:$0xff] }
 0xa2c   :  { %5457 = vmatpush3.bf16.msra.mxu0 %v5456_v5 }
 0xa2d   :  { %5481 = vmatpush3.bf16.msra.mxu1 %v5456_v5  ;;  %5482 = vmatprep.subr.bf16.mxu0 %v5824_v15  ;;  %v3115_v5 = vld [vmem:[#allocation6 + $0x3e8] sm:$0xff] }
 0xa2e   :  { %5506 = vmatprep.subr.bf16.mxu1 %v5824_v15 }
 0xae2   :  { %v2819_v6 = vpop.f32.mrb[46].mxu0 }
 0xae3   :  { %v2823_v7 = vmul.f32 0.03125, %v2819_v6  ;;  %v2890_v8 = vpop.f32.mrb[30].mxu1  ;;  %v4790_v0 = vpop.f32.mrb[47].mxu0  ;;  %v3100_v6 = vld [vmem:[#allocation6 + $0x370] sm:$0xff] }
 0xae4   :  { %v2894_v10 = vmul.f32 0.03125, %v2890_v8  ;;  %v4825_v11 = vpop.f32.mrb[31].mxu1  ;;  %v5525_v8 = vpack.c.bf16 %v3115_v5, %v3114_v2  ;;  %v3116_v0 = vld [vmem:[#allocation6 + $0x3f0] sm:$0xff]  ;;  %v3276_v2 = vld [vmem:[#allocation6 + $0x660] sm:$0xff]  ;;  %v3277_v5 = vld [vmem:[#allocation6 + $0x668] sm:$0xff] }
 0xae5   :  { %v2895_v12 = vmul.f32 %v2823_v7, %v2823_v7 }
 0xae7   :  { %v2896_v13 = vsub.f32 %v2894_v10, %v2895_v12  ;;  %v3117_v10 = vld [vmem:[#allocation6 + $0x3f8] sm:$0xff] }
 0xae8   :  { %v5528_v12 = vpack.c.bf16 %v3117_v10, %v3116_v0  ;;  %v3278_v0 = vld [vmem:[#allocation6 + $0x670] sm:$0xff]  ;;  %v3279_v10 = vld [vmem:[#allocation6 + $0x678] sm:$0xff] }
 0xae9   :  { %v2897_v20 = vmax.f32 %v2896_v13, 0.0 }
 0xaeb   :  { %v2898_v18 = vadd.f32 1e-05, %v2897_v20 }
 0xaed   :  { %5736 = vrsqrt.f32 %v2898_v18 }
 0xaf7   :  { %v5737_v23 = vpop.eup %5736 }
 0xaf8   :  { %v2901_v24 = vrot.slane %v5737_v23, 4 }
 0xafa   :  { %v2903_v28 = vmul.f32 %v6227_v9, %v2901_v24 }
 0xafc   :  { %v2905_v29 = vrot.slane %v2903_v28, 4 }
 0xafe   :  { %v2907_v14 = vmul.f32 %v2905_v29, %v2823_v7  ;;  %4859 = vmatmul.mubr.f32.vlgmr.msra.gmra.mrb[48].mxu0 %v2905_v29  ;;  %v3101_v7 = vld [vmem:[#allocation6 + $0x378] sm:$0xff]  ;;  %v3280_v29 = vld [vmem:[#allocation6 + $0x680] sm:$0xff] }
 0xaff   :  { %5484 = vmatpush3.bf16.msra.mxu0 %v5483_v30  ;;  %4928 = vmatprep.mubr.msk.f32.mxu0 %vm5826_vm6, %v5823_v21  ;;  %v5504_v11 = vpack.c.bf16 %v3101_v7, %v3100_v6  ;;  %v5531_v34 = vpack.c.bf16 %v3281_v1, %v3280_v29  ;;  %v3294_v6 = vld [vmem:[#allocation6 + $0x6f0] sm:$0xff]  ;;  %v3295_v7 = vld [vmem:[#allocation6 + $0x6f8] sm:$0xff] }
 0xb00   :  { %v2909_v22 = vrot.slane %v2907_v14, 3  ;;  %5485 = vmatprep.subr.bf16.mxu0 %v5824_v15  ;;  %v3265_v14 = vld [vmem:[#allocation6 + $0x608] sm:$0xff]  ;;  %v3445_v29 = vld [vmem:[#allocation6 + $0x718] sm:$0xff] }
 0xb02   :  { %v2911_v35 = vsub.f32 %v6227_v9, %v2909_v22  ;;  %v3091_v9 = vld [vmem:[#allocation6 + $0x328] sm:$0xff] }
 0xb03   :  { %5487 = vmatpush3.bf16.msra.mxu0 %v5486_v32  ;;  %v5489_v26 = vpack.c.bf16 %v3091_v9, %v3090_v41  ;;  %v3282_v32 = vld [vmem:[#allocation6 + $0x690] sm:$0xff]  ;;  %v3284_v41 = vld [vmem:[#allocation6 + $0x6a0] sm:$0xff]  ;;  %v3285_v9 = vld [vmem:[#allocation6 + $0x6a8] sm:$0xff] }
 0xb04   :  { %v3004_v37 = vrot.slane %v2911_v35, 5  ;;  %5488 = vmatprep.subr.bf16.mxu0 %v5824_v15  ;;  %v5555_v35 = vpack.c.bf16 %v3265_v14, %v3264_v4  ;;  %v5537_v44 = vpack.c.bf16 %v3285_v9, %v3284_v41  ;;  %v3454_v41 = vld [vmem:[#allocation6 + $0x760] sm:$0xff]  ;;  %v3455_v9 = vld [vmem:[#allocation6 + $0x768] sm:$0xff] }
 0xb06   :  { %4894 = vmatmul.mubr.f32.vlgmr.msra.gmra.mrb[36].mxu1 %v3004_v37  ;;  %v3283_v37 = vld [vmem:[#allocation6 + $0x698] sm:$0xff] }
 0xb07   :  { %5508 = vmatpush3.bf16.msra.mxu1 %v5507_v36  ;;  %4963 = vmatprep.mubr.msk.f32.mxu1 %vm5826_vm6, %v5823_v21 }
 0xb08   :  { %5509 = vmatprep.subr.bf16.mxu1 %v5824_v15  ;;  %5490 = vmatpush3.bf16.msra.mxu0 %v5489_v26  ;;  %v3269_v26 = vld [vmem:[#allocation6 + $0x628] sm:$0xff] }
 0xb09   :  { %5491 = vmatprep.subr.bf16.mxu0 %v5824_v15 }
 0xb0b   :  { %5511 = vmatpush3.bf16.msra.mxu1 %v5510_v19  ;;  %v5558_v19 = vpack.c.bf16 %v3267_v40, %v3266_v38  ;;  %v3451_v38 = vld [vmem:[#allocation6 + $0x748] sm:$0xff] }
 0xb0c   :  { %5512 = vmatprep.subr.bf16.mxu1 %v5824_v15  ;;  %5493 = vmatpush3.bf16.msra.mxu0 %v5492_v47  ;;  %v3271_v47 = vld [vmem:[#allocation6 + $0x638] sm:$0xff] }
 0xb0d   :  { %5494 = vmatprep.subr.bf16.mxu0 %v5824_v15 }
 0xb0f   :  { %5514 = vmatpush3.bf16.msra.mxu1 %v5513_v45  ;;  %v5561_v45 = vpack.c.bf16 %v3269_v26, %v3268_v43  ;;  %v5597_v43 = vpack.c.bf16 %v3455_v9, %v3454_v41  ;;  %v3456_v26 = vld [vmem:[#allocation6 + $0x770] sm:$0xff] }
 0xb10   :  { %5515 = vmatprep.subr.bf16.mxu1 %v5824_v15  ;;  %5496 = vmatpush3.bf16.msra.mxu0 %v5495_v53  ;;  %v3273_v53 = vld [vmem:[#allocation6 + $0x648] sm:$0xff] }
 0xb11   :  { %5497 = vmatprep.subr.bf16.mxu0 %v5824_v15 }
 0xb13   :  { %5517 = vmatpush3.bf16.msra.mxu1 %v5516_v49  ;;  %v5564_v49 = vpack.c.bf16 %v3271_v47, %v3270_v39  ;;  %v3535_v39 = vld [vmem:[#allocation6 + $0x790] sm:$0xff]  ;;  %v5603_v47 = vpack.c.bf16 %v3534_v46, %v3533_v31 }
 0xb14   :  { %5518 = vmatprep.subr.bf16.mxu1 %v5824_v15  ;;  %5499 = vmatpush3.bf16.msra.mxu0 %v5498_v59  ;;  %v5546_v59 = vpack.c.bf16 %v3291_v57, %v3290_v56  ;;  %v3541_v56 = vld [vmem:[#allocation6 + $0x7c0] sm:$0xff]  ;;  %v3542_v57 = vld [vmem:[#allocation6 + $0x7c8] sm:$0xff] }
 0xb15   :  { %5500 = vmatprep.subr.bf16.mxu0 %v5824_v15 }
 0xb17   :  { %5520 = vmatpush3.bf16.msra.mxu1 %v5519_v55  ;;  %v5567_v55 = vpack.c.bf16 %v3273_v53, %v3272_v52  ;;  %v5609_v52 = vpack.c.bf16 %v3538_v51, %v3537_v50  ;;  %v3539_v53 = vld [vmem:[#allocation6 + $0x7b0] sm:$0xff] }
 0xb18   :  { %5521 = vmatprep.subr.bf16.mxu1 %v5824_v15  ;;  %5502 = vmatpush3.bf16.msra.mxu0 %v5501_v3  ;;  %v5549_v3 = vpack.c.bf16 %v3293_v63, %v3292_v62  ;;  %v3545_v62 = vld [vmem:[#allocation6 + $0x7e0] sm:$0xff]  ;;  %v3546_v63 = vld [vmem:[#allocation6 + $0x7e8] sm:$0xff] }
 0xb19   :  { %5503 = vmatprep.subr.bf16.mxu0 %v5824_v15 }
 0xb1b   :  { %5523 = vmatpush3.bf16.msra.mxu1 %v5522_v61  ;;  %v5570_v61 = vpack.c.bf16 %v3275_v60, %v3274_v58  ;;  %v5615_v58 = vpack.c.bf16 %v3542_v57, %v3541_v56  ;;  %v3544_v60 = vld [vmem:[#allocation6 + $0x7d8] sm:$0xff] }
 0xb1c   :  { %5524 = vmatprep.subr.bf16.mxu1 %v5824_v15  ;;  %5505 = vmatpush3.bf16.msra.mxu0 %v5504_v11  ;;  %v5552_v11 = vpack.c.bf16 %v3295_v7, %v3294_v6 }
 0xb1d   :  { %5530 = vmatprep.subr.bf16.mxu0 %v5824_v15 }
 0xb1f   :  { %5526 = vmatpush3.bf16.msra.mxu1 %v5525_v8  ;;  %v5573_v8 = vpack.c.bf16 %v3277_v5, %v3276_v2  ;;  %v5621_v2 = vpack.c.bf16 %v3546_v63, %v3545_v62  ;;  %v5743_v5 = vld [vmem:[#allocation6 + $0x800] sm:$0xff] }
 0xb20   :  { %5527 = vmatprep.subr.bf16.mxu1 %v5824_v15 }
 0xb23   :  { %5529 = vmatpush3.bf16.msra.mxu1 %v5528_v12  ;;  %v5576_v12 = vpack.c.bf16 %v3279_v10, %v3278_v0 }
 0xb24   :  { %5554 = vmatprep.subr.bf16.mxu1 %v5824_v15 }
 0xbd1   :  { %v2994_v13 = vpop.f32.mrb[48].mxu0 }
 0xbd2   :  { %v4860_v20 = vpop.f32.mrb[49].mxu0  ;;  %v3001_v18 = vrot.slane %v2994_v13, %v6031_v17 }
 0xbd4   :  { %v3002_v24 = vmul.f32 %v3001_v18, %v6252_v42  ;;  %v5534_v42 = vpack.c.bf16 %v3283_v37, %v3282_v32  ;;  %v3446_v32 = vld [vmem:[#allocation6 + $0x720] sm:$0xff] }
 0xbd5   :  { %v3450_v37 = vld [vmem:[#allocation6 + $0x740] sm:$0xff] }
 0xbd6   :  { %v5591_v40 = vpack.c.bf16 %v3451_v38, %v3450_v37 }
 0xbd9   :  { %v3072_v23 = vpop.f32.mrb[36].mxu1 }
 0xbda   :  { %v3079_v25 = vrot.slane %v3072_v23, %v6031_v17  ;;  %v4895_v27 = vpop.f32.mrb[37].mxu1 }
 0xbdb   :  { %v3443_v27 = vld [vmem:[#allocation6 + $0x708] sm:$0xff] }
 0xbdc   :  { %v3080_v28 = vadd.f32 %v3079_v25, %v3002_v24  ;;  %v3442_v25 = vld [vmem:[#allocation6 + $0x700] sm:$0xff] }
 0xbde   :  { %v3081_v30 = vmax.f32 %v3080_v28, 0.0  ;;  %v5579_v28 = vpack.c.bf16 %v3443_v27, %v3442_v25 }
 0xbe0   :  { %3082 = vst [vmem:[#allocation2] sm:$0xff] %v3081_v30  ;;  %v3444_v30 = vld [vmem:[#allocation6 + $0x710] sm:$0xff] }
 0xbe1   :  { %v5582_v14 = vpack.c.bf16 %v3445_v29, %v3444_v30  ;;  %v45_v29 = vld [vmem:[#allocation6 + $0x808] sm:$0xff] }
 0xbe7   :  { %v3083_v22 = vld [vmem:[#allocation2] ss:$2 sm:$0xf]  ;;  %v3084_v33 = vld [vmem:[#allocation2 + $0x1] ss:$2 sm:$0xf] }
 0xbe8   :  { %v3085_v36 = vmax.f32 %v3083_v22, %v3084_v33  ;;  %v3447_v22 = vld [vmem:[#allocation6 + $0x728] sm:$0xff] }
 0xbe9   :  { %v5585_v33 = vpack.c.bf16 %v3447_v22, %v3446_v32 }
 0xbea   :  { %4929 = vmatmul.mubr.f32.vlgmr.msra.gmra.mrb[50].mxu0 %v3085_v36  ;;  %4964 = vmatmul.mubr.f32.vlgmr.msra.gmra.mrb[38].mxu1 %v3085_v36 }
 0xbeb   :  { %5532 = vmatpush3.bf16.msra.mxu0 %v5531_v34  ;;  %5556 = vmatpush3.bf16.msra.mxu1 %v5555_v35  ;;  %v3448_v34 = vld [vmem:[#allocation6 + $0x730] sm:$0xff]  ;;  %v3449_v35 = vld [vmem:[#allocation6 + $0x738] sm:$0xff] }
 0xbec   :  { %5533 = vmatprep.subr.bf16.mxu0 %v5824_v15  ;;  %5557 = vmatprep.subr.bf16.mxu1 %v5824_v15  ;;  %v5588_v36 = vpack.c.bf16 %v3449_v35, %v3448_v34 }
 0xbed   :  { %4998 = vmatprep.mubr.msk.f32.mxu0 %vm5826_vm6, %v5823_v21  ;;  %5033 = vmatprep.mubr.msk.f32.mxu1 %vm5826_vm6, %v5823_v21 }
 0xbef   :  { %5535 = vmatpush3.bf16.msra.mxu0 %v5534_v42  ;;  %5559 = vmatpush3.bf16.msra.mxu1 %v5558_v19  ;;  %v3452_v42 = vld [vmem:[#allocation6 + $0x750] sm:$0xff]  ;;  %v3453_v19 = vld [vmem:[#allocation6 + $0x758] sm:$0xff] }
 0xbf0   :  { %5536 = vmatprep.subr.bf16.mxu0 %v5824_v15  ;;  %5560 = vmatprep.subr.bf16.mxu1 %v5824_v15 }
 0xbf3   :  { %5538 = vmatpush3.bf16.msra.mxu0 %v5537_v44  ;;  %5562 = vmatpush3.bf16.msra.mxu1 %v5561_v45  ;;  %v3457_v44 = vld [vmem:[#allocation6 + $0x778] sm:$0xff] }
 0xbf4   :  { %5539 = vmatprep.subr.bf16.mxu0 %v5824_v15  ;;  %5563 = vmatprep.subr.bf16.mxu1 %v5824_v15  ;;  %v5600_v45 = vpack.c.bf16 %v3457_v44, %v3456_v26 }
 0xbf7   :  { %5541 = vmatpush3.bf16.msra.mxu0 %v5540_v48  ;;  %5565 = vmatpush3.bf16.msra.mxu1 %v5564_v49  ;;  %v3536_v48 = vld [vmem:[#allocation6 + $0x798] sm:$0xff] }
 0xbf8   :  { %5542 = vmatprep.subr.bf16.mxu0 %v5824_v15  ;;  %5566 = vmatprep.subr.bf16.mxu1 %v5824_v15  ;;  %v5606_v49 = vpack.c.bf16 %v3536_v48, %v3535_v39 }
 0xbfb   :  { %5544 = vmatpush3.bf16.msra.mxu0 %v5543_v54  ;;  %5568 = vmatpush3.bf16.msra.mxu1 %v5567_v55  ;;  %v3540_v54 = vld [vmem:[#allocation6 + $0x7b8] sm:$0xff] }
 0xbfc   :  { %5545 = vmatprep.subr.bf16.mxu0 %v5824_v15  ;;  %5569 = vmatprep.subr.bf16.mxu1 %v5824_v15  ;;  %v5612_v55 = vpack.c.bf16 %v3540_v54, %v3539_v53 }
 0xbff   :  { %5547 = vmatpush3.bf16.msra.mxu0 %v5546_v59  ;;  %5571 = vmatpush3.bf16.msra.mxu1 %v5570_v61  ;;  %v3543_v59 = vld [vmem:[#allocation6 + $0x7d0] sm:$0xff] }
 0xc00   :  { %5548 = vmatprep.subr.bf16.mxu0 %v5824_v15  ;;  %5572 = vmatprep.subr.bf16.mxu1 %v5824_v15  ;;  %v5618_v61 = vpack.c.bf16 %v3544_v60, %v3543_v59 }
 0xc03   :  { %5550 = vmatpush3.bf16.msra.mxu0 %v5549_v3  ;;  %5574 = vmatpush3.bf16.msra.mxu1 %v5573_v8  ;;  %v3438_v3 = vsub.s32 6, %v5872_v16 }
 0xc04   :  { %5551 = vmatprep.subr.bf16.mxu0 %v5824_v15  ;;  %5575 = vmatprep.subr.bf16.mxu1 %v5824_v15 }
 0xc05   :  { %v3439_v6 = vrot.slane %v5743_v5, %v3438_v3 }
 0xc07   :  { %5553 = vmatpush3.bf16.msra.mxu0 %v5552_v11  ;;  %5577 = vmatpush3.bf16.msra.mxu1 %v5576_v12 }
 0xc08   :  { %5578 = vmatprep.subr.bf16.mxu0 %v5824_v15  ;;  %5602 = vmatprep.subr.bf16.mxu1 %v5824_v15 }
 0xcbd   :  { %v3184_v13 = vpop.f32.mrb[50].mxu0  ;;  %v3254_v20 = vpop.f32.mrb[38].mxu1 }
 0xcbe   :  { %v3258_v18 = vmax.f32 %v3184_v13, %v3254_v20  ;;  %v4930_v23 = vpop.f32.mrb[51].mxu0  ;;  %v4965_v24 = vpop.f32.mrb[39].mxu1  ;;  %v3547_v20 = vld [vmem:[#allocation6 + $0x7f0] sm:$0xff] }
 0xcbf   :  { %v3460_v24 = vsub.s32 7, %v5872_v16 }
 0xcc0   :  { %3259 = vst [vmem:[#allocation2 + $0x8] sm:$0xf] %v3258_v18  ;;  %v3548_v18 = vld [vmem:[#allocation6 + $0x7f8] sm:$0xff] }
 0xcc1   :  { %v5624_v23 = vpack.c.bf16 %v3548_v18, %v3547_v20  ;;  %v3461_v25 = vrot.slane %v5743_v5, %v3460_v24 }
 0xcc7   :  { %v3263_v1 = vld [vmem:[#allocation2 + $0x9] ss:$2 sm:$0x3]  ;;  %v3261_v4 = vld [vmem:[#allocation2 + $0x8] ss:$2 sm:$0x3] }
 0xcc8   :  { %4999 = vmatmul.mubr.f32.vlgmr.msra.gmra.mrb[52].mxu0 %v3263_v1  ;;  %5034 = vmatmul.mubr.f32.vlgmr.msra.gmra.mrb[40].mxu1 %v3261_v4  ;;  %v3552_v1 = vrot.slane %v45_v29, %v6031_v17 }
 0xcc9   :  { %5580 = vmatpush3.bf16.msra.mxu0 %v5579_v28  ;;  %5068 = vmatprep.mubr.msk.f32.mxu0 %vm5826_vm6, %v5823_v21 }
 0xcca   :  { %5581 = vmatprep.subr.bf16.mxu0 %v5824_v15  ;;  %5103 = vmatprep.mubr.msk.f32.mxu1 %vm5826_vm6, %v5823_v21  ;;  %v5594_v21 = vpack.c.bf16 %v3453_v19, %v3452_v42 }
 0xccb   :  { %5604 = vmatpush3.bf16.msra.mxu1 %v5603_v47 }
 0xccc   :  { %5605 = vmatprep.subr.bf16.mxu1 %v5824_v15 }
 0xccd   :  { %5583 = vmatpush3.bf16.msra.mxu0 %v5582_v14 }
 0xcce   :  { %5584 = vmatprep.subr.bf16.mxu0 %v5824_v15 }
 0xccf   :  { %5607 = vmatpush3.bf16.msra.mxu1 %v5606_v49 }
 0xcd0   :  { %5608 = vmatprep.subr.bf16.mxu1 %v5824_v15 }
 0xcd1   :  { %5586 = vmatpush3.bf16.msra.mxu0 %v5585_v33 }
 0xcd2   :  { %5587 = vmatprep.subr.bf16.mxu0 %v5824_v15 }
 0xcd3   :  { %5610 = vmatpush3.bf16.msra.mxu1 %v5609_v52 }
 0xcd4   :  { %5611 = vmatprep.subr.bf16.mxu1 %v5824_v15 }
 0xcd5   :  { %5589 = vmatpush3.bf16.msra.mxu0 %v5588_v36 }
 0xcd6   :  { %5590 = vmatprep.subr.bf16.mxu0 %v5824_v15 }
 0xcd7   :  { %5613 = vmatpush3.bf16.msra.mxu1 %v5612_v55 }
 0xcd8   :  { %5614 = vmatprep.subr.bf16.mxu1 %v5824_v15 }
 0xcd9   :  { %5592 = vmatpush3.bf16.msra.mxu0 %v5591_v40 }
 0xcda   :  { %5593 = vmatprep.subr.bf16.mxu0 %v5824_v15 }
 0xcdb   :  { %5616 = vmatpush3.bf16.msra.mxu1 %v5615_v58 }
 0xcdc   :  { %5617 = vmatprep.subr.bf16.mxu1 %v5824_v15 }
 0xcdd   :  { %5595 = vmatpush3.bf16.msra.mxu0 %v5594_v21 }
 0xcde   :  { %5596 = vmatprep.subr.bf16.mxu0 %v5824_v15 }
 0xcdf   :  { %5619 = vmatpush3.bf16.msra.mxu1 %v5618_v61 }
 0xce0   :  { %5620 = vmatprep.subr.bf16.mxu1 %v5824_v15 }
 0xce1   :  { %5598 = vmatpush3.bf16.msra.mxu0 %v5597_v43 }
 0xce2   :  { %5599 = vmatprep.subr.bf16.mxu0 %v5824_v15 }
 0xce3   :  { %5622 = vmatpush3.bf16.msra.mxu1 %v5621_v2 }
 0xce4   :  { %5623 = vmatprep.subr.bf16.mxu1 %v5824_v15 }
 0xce5   :  { %5601 = vmatpush3.bf16.msra.mxu0 %v5600_v45 }
 0xce7   :  { %5625 = vmatpush3.bf16.msra.mxu1 %v5624_v23 }
 0xd9b   :  { %v3362_v7 = vpop.f32.mrb[52].mxu0  ;;  %v3432_v8 = vpop.f32.mrb[40].mxu1 }
 0xd9c   :  { %v3433_v0 = vadd.f32 %v3432_v8, %v3362_v7  ;;  %v5000_v10 = vpop.f32.mrb[53].mxu0  ;;  %v5035_v11 = vpop.f32.mrb[41].mxu1 }
 0xd9e   :  { %v3440_v12 = vadd.f32 %v3439_v6, %v3433_v0 }
 0xda0   :  { %v3441_v13 = vmax.f32 %v3440_v12, 0.0 }
 0xda2   :  { %5069 = vmatmul.mubr.f32.vlgmr.msra.gmra.mrb[54].mxu0 %v3441_v13 }
 0xe75   :  { %v3528_v15 = vpop.f32.mrb[54].mxu0 }
 0xe76   :  { %v3529_v27 = vadd.f32 %v3528_v15, %v3461_v25  ;;  %v5070_v28 = vpop.f32.mrb[55].mxu0 }
 0xe78   :  { %v3532_v30 = vmax.f32 %v3529_v27, 0.0 }
 0xe7a   :  { %5104 = vmatmul.mubr.f32.vlgmr.msra.gmra.mrb[42].mxu1 %v3532_v30 }
 0xf4d   :  { %v3619_v4 = vpop.f32.mrb[42].mxu1 }
 0xf4e   :  { %v3620_v14 = vadd.f32 %v3619_v4, %v3552_v1  ;;  %v5105_v32 = vpop.f32.mrb[43].mxu1 }
 0xf50   :  { %v3624_v22 = vsel %vm3623_vm2, %v3620_v14, -inf }
 0xf51   :  { %3625 = vmax.xlane.f32.xlu0 %v3624_v22 }
 0xfde   :  { %v3626_v33 = vpop.xlane.xlu0 %3625 }
 0xfdf   :  { %v3627_v34 = vsub.f32 %v3620_v14, %v3626_v33 }
 0xfe1   :  { %v3628_v35 = vmul.f32 1.442695, %v3627_v34 }
 0xfe3   :  { %5738 = vpow2.f32 %v3628_v35 }
 0xfed   :  { %v5739_v16 = vpop.eup %5738 }
 0xfee   :  { %v3630_v36 = vsel %vm3623_vm2, %v5739_v16, 0.0 }
 0xfef   :  { %3631 = vadd.xlane.f32.xlu0 %v3630_v36 }
0x107c   :  { %v3632_v37 = vpop.xlane.xlu0 %3631 }
0x107d   :  { %5740 = vrcp.f32 %v3632_v37 }
0x1087   :  { %v5741_v38 = vpop.eup %5740 }
0x1088   :  { %v3634_v40 = vmul.f32 %v5741_v38, %v5739_v16 }
0x108a   :  { %3635 = vst [vmem:[#allocation8] sm:$0x3] %v3634_v40 }
0x108b   :  { %5799 = shalt.err (!%p5796_p6)
}
0x108c   :  { %s5800_s4 = scalar_lea.hbm %s6370_s3, 32 }
0x108d   :  { %p5801_p7 = scmp.ne.s32.totalorder %s6370_s3, %s5800_s4  ;;  %p5804_p8 = scmp.lt.u32.totalorder %s5800_s4, %s6370_s3 }
0x108f   :  { %p5806_p9 = pnand %p5804_p8, %p5801_p7 }
0x1091   :  { %5809 = shalt.err (!%p5806_p9)
}
0x1092   :  { %3645 = dma.vmem_to_hbm [thread:$0]  %s3643_s27, 32, %s6370_s3, [#allocation5]  }
0x1093   :  { %5814 = dma.done.wait [#allocation5], 32  }
0x1094   :  { %5815 = vsyncadd [#allocation5], 4294967264 }
0x1095   :  { %3649 = vsyncpa [#allocation4], 1 }
0x1096   :  { %3650 = vsyncpa [#allocation7], 1 }
0x1097   :  { %3651 = vsyncpa [#allocation5], 1 }

</bundles_post_ra>
